<compile_context>
chip_gen: v7x
topology: tpu7x:2x2x1
jax: 0.10.0
libtpu: 0.0.40
codegen_flags: <defaults>
</compile_context>

<pallas_src>
import functools
import math

import jax
import jax.numpy as jnp
import numpy as np
from jax import lax
from jax.experimental import pallas as pl
from jax.experimental.pallas import tpu as pltpu


# ---------------------------------------------------------------------------
# Fused Pallas kernel
# ---------------------------------------------------------------------------
def _resblock_kernel(x_ref, w1_ref, b1_ref, w2_ref, b2_ref, o_ref, xpad_ref,
                     *, H, W, C, K, res_scale):
    """Fused ResBlock for one batch element (channels-last).

    x_ref   : (1, H, W, C)  input plane
    w*_ref  : (K*K*C, C)    packed conv weights, row = (dy*K + dx)*C + cin
    b*_ref  : (1, C)        conv bias
    o_ref   : (1, H, W, C)  output plane
    xpad_ref: VMEM scratch (H+2P, W+2P, C) — zero-padded operand reused by
              both convolutions (border stays zero between them).
    """
    P = K // 2

    # Zero-pad the first conv operand in VMEM (no jnp.pad / extra HBM copies).
    xpad_ref[...] = jnp.zeros_like(xpad_ref)
    xpad_ref[pl.ds(P, H), pl.ds(P, W), :] = x_ref[0]

    def conv(w_ref):
        # K*K MXU matmuls over spatially shifted slabs: (H*W, C) x (C, C).
        acc = None
        for dy in range(K):
            for dx in range(K):
                slab = xpad_ref[pl.ds(dy, H), pl.ds(dx, W), :]       # (H, W, C)
                slab2 = slab.reshape(H * W, C)
                wmat = w_ref[pl.ds((dy * K + dx) * C, C), :]         # (C, C)
                part = jnp.dot(slab2, wmat,
                               preferred_element_type=jnp.float32)
                acc = part if acc is None else acc + part
        return acc                                                    # (H*W, C)

    # conv1 + bias + ReLU
    h1 = jnp.maximum(conv(w1_ref) + b1_ref[...], 0.0)

    # Reuse the padded scratch for conv2's operand (border is still zero).
    xpad_ref[pl.ds(P, H), pl.ds(P, W), :] = h1.reshape(H, W, C)

    # conv2 + bias, residual scale + add
    h2 = (conv(w2_ref) + b2_ref[...]).reshape(H, W, C)
    if res_scale != 1.0:
        h2 = h2 * jnp.float32(res_scale)
    o_ref[0] = (h2 + x_ref[0]).astype(o_ref.dtype)


# ---------------------------------------------------------------------------
# Wrapper (layout packing + pallas_call)
# ---------------------------------------------------------------------------
def resblock_forward_pallas(x, params, *, res_scale=1.0):
    """x: (N, C, H, W) float32 (PyTorch NCHW). Returns (N, C, H, W)."""
    w1, b1 = params['conv1']
    w2, b2 = params['conv2']
    N, C, H, W = x.shape
    K = w1.shape[-1]
    P = K // 2
    assert w1.shape == (C, C, K, K) and w2.shape == (C, C, K, K)
    assert W % 8 == 0, "W must be a multiple of 8 for the in-kernel reshape"

    # Channels-last so C sits on lanes; one transpose in, one out.
    x_nhwc = jnp.transpose(x, (0, 2, 3, 1)).astype(jnp.float32)

    def pack_w(w):  # OIHW -> (K*K*Cin, Cout), row = (dy*K + dx)*Cin + cin
        return jnp.transpose(w, (2, 3, 1, 0)).reshape(K * K * C, C).astype(jnp.float32)

    w1m, w2m = pack_w(w1), pack_w(w2)
    b1m = b1.reshape(1, C).astype(jnp.float32)
    b2m = b2.reshape(1, C).astype(jnp.float32)

    kern = functools.partial(_resblock_kernel, H=H, W=W, C=C, K=K,
                             res_scale=float(res_scale))
    out = pl.pallas_call(
        kern,
        out_shape=jax.ShapeDtypeStruct((N, H, W, C), jnp.float32),
        grid=(N,),
        in_specs=[
            pl.BlockSpec((1, H, W, C), lambda n: (n, 0, 0, 0)),
            pl.BlockSpec((K * K * C, C), lambda n: (0, 0)),
            pl.BlockSpec((1, C), lambda n: (0, 0)),
            pl.BlockSpec((K * K * C, C), lambda n: (0, 0)),
            pl.BlockSpec((1, C), lambda n: (0, 0)),
        ],
        out_specs=pl.BlockSpec((1, H, W, C), lambda n: (n, 0, 0, 0)),
        scratch_shapes=[pltpu.VMEM((H + 2 * P, W + 2 * P, C), jnp.float32)],
        compiler_params=pltpu.CompilerParams(
            dimension_semantics=("parallel",)),
    )(x_nhwc, w1m, b1m, w2m, b2m)
    return jnp.transpose(out, (0, 3, 1, 2))


# ---------------------------------------------------------------------------
# Parameters + pure-JAX reference (correctness check)
# ---------------------------------------------------------------------------
def resblock_init_params(key, n_feats=64, kernel_size=3):
    def init_conv(k):
        kw, kb = jax.random.split(k)
        bound = 1.0 / math.sqrt(n_feats * kernel_size * kernel_size)
        w = jax.random.uniform(kw, (n_feats, n_feats, kernel_size, kernel_size),
                               jnp.float32, -bound, bound)
        b = jax.random.uniform(kb, (n_feats,), jnp.float32, -bound, bound)
        return w, b

    k1, k2 = jax.random.split(key)
    return {'conv1': init_conv(k1), 'conv2': init_conv(k2)}


def resblock_forward_ref(x, params, *, res_scale=1.0):
    def conv(v, w, b):
        p = w.shape[-1] // 2
        y = lax.conv_general_dilated(
            v, w, window_strides=(1, 1), padding=[(p, p), (p, p)],
            dimension_numbers=('NCHW', 'OIHW', 'NCHW'))
        return y + b.reshape(1, -1, 1, 1)

    h = jax.nn.relu(conv(x, *params['conv1']))
    return conv(h, *params['conv2']) * res_scale + x


# ---------------------------------------------------------------------------
if __name__ == "__main__":
    key = jax.random.PRNGKey(0)
    kx, kp = jax.random.split(key)

    N, C, H, W = 2, 64, 16, 16          # n_feats=64, kernel_size=3 ResBlock
    RES_SCALE = 0.5

    x = jax.random.normal(kx, (N, C, H, W), jnp.float32)
    params = resblock_init_params(kp, n_feats=C, kernel_size=3)

    out = jax.block_until_ready(
        resblock_forward_pallas(x, params, res_scale=RES_SCALE))
    ref = jax.block_until_ready(
        resblock_forward_ref(x, params, res_scale=RES_SCALE))

    assert out.shape == (N, C, H, W), out.shape
    assert bool(jnp.all(jnp.isfinite(out)))
    np.testing.assert_allclose(np.asarray(out), np.asarray(ref),
                               rtol=1e-3, atol=1e-3)
    print("KERNEL_OK")
</pallas_src>

<mosaic_0001>
module attributes {stable_mosaic.version = 11 : i64} {
  func.func @_resblock_kernel(%arg0: i32, %arg1: memref<1x16x16x64xf32, #tpu.memory_space<vmem>>, %arg2: memref<576x64xf32, #tpu.memory_space<vmem>>, %arg3: memref<1x64xf32, #tpu.memory_space<vmem>>, %arg4: memref<576x64xf32, #tpu.memory_space<vmem>>, %arg5: memref<1x64xf32, #tpu.memory_space<vmem>>, %arg6: memref<1x16x16x64xf32, #tpu.memory_space<vmem>>, %arg7: memref<18x18x64xf32, #tpu.memory_space<vmem>>) attributes {dimension_semantics = [#tpu.dimension_semantics<parallel>], iteration_bounds = array<i64: 2>, scalar_prefetch = 0 : i64, scratch_operands = 1 : i64, tpu.core_type = #tpu.core_type<tc>, window_params = [{transform_indices = @transform_0, window_bounds = array<i64: 1, 16, 16, 64>}, {pipeline_mode = #tpu.pipeline_mode<synchronous>, transform_indices = @transform_1, window_bounds = array<i64: 576, 64>}, {pipeline_mode = #tpu.pipeline_mode<synchronous>, transform_indices = @transform_2, window_bounds = array<i64: 1, 64>}, {pipeline_mode = #tpu.pipeline_mode<synchronous>, transform_indices = @transform_3, window_bounds = array<i64: 576, 64>}, {pipeline_mode = #tpu.pipeline_mode<synchronous>, transform_indices = @transform_4, window_bounds = array<i64: 1, 64>}, {transform_indices = @transform_5, window_bounds = array<i64: 1, 16, 16, 64>}]} {
    %cst = arith.constant 0.000000e+00 : f32
    %0 = vector.broadcast %cst : f32 to vector<18x18x64xf32>
    %c0 = arith.constant 0 : index
    %c0_0 = arith.constant 0 : index
    %c0_1 = arith.constant 0 : index
    %1 = vector.load %arg7[%c0, %c0_0, %c0_1] : memref<18x18x64xf32, #tpu.memory_space<vmem>>, vector<18x18x64xf32>
    tpu.vector_store %arg7[%c0, %c0_0, %c0_1], %0 {strides = array<i32>} : memref<18x18x64xf32, #tpu.memory_space<vmem>>, vector<18x18x64xf32>,
    %c0_2 = arith.constant 0 : index
    %c0_3 = arith.constant 0 : index
    %c0_4 = arith.constant 0 : index
    %c0_5 = arith.constant 0 : index
    %2 = vector.load %arg1[%c0_2, %c0_3, %c0_4, %c0_5] : memref<1x16x16x64xf32, #tpu.memory_space<vmem>>, vector<1x16x16x64xf32>
    %3 = vector.shape_cast %2 : vector<1x16x16x64xf32> to vector<16x16x64xf32>
    %c1 = arith.constant 1 : index
    %c1_6 = arith.constant 1 : index
    %c0_7 = arith.constant 0 : index
    %4 = vector.load %arg7[%c1, %c1_6, %c0_7] : memref<18x18x64xf32, #tpu.memory_space<vmem>>, vector<16x16x64xf32>
    tpu.vector_store %arg7[%c1, %c1_6, %c0_7], %3 {strides = array<i32>} : memref<18x18x64xf32, #tpu.memory_space<vmem>>, vector<16x16x64xf32>,
    %c0_8 = arith.constant 0 : index
    %c0_9 = arith.constant 0 : index
    %c0_10 = arith.constant 0 : index
    %5 = vector.load %arg7[%c0_8, %c0_9, %c0_10] : memref<18x18x64xf32, #tpu.memory_space<vmem>>, vector<16x16x64xf32>
    %6 = vector.shape_cast %5 : vector<16x16x64xf32> to vector<256x64xf32>
    %c0_11 = arith.constant 0 : index
    %c0_12 = arith.constant 0 : index
    %7 = vector.load %arg2[%c0_11, %c0_12] : memref<576x64xf32, #tpu.memory_space<vmem>>, vector<64x64xf32>
    %cst_13 = arith.constant dense<0.000000e+00> : vector<256x64xf32>
    %8 = tpu.matmul %6, %7, %cst_13 {dimension_numbers = #tpu.dot_dimension_numbers<[1], [0], [0], [1], [0, 0, 1, 1], [], []>} : vector<256x64xf32>, vector<64x64xf32>, vector<256x64xf32> -> vector<256x64xf32>
    %c0_14 = arith.constant 0 : index
    %c1_15 = arith.constant 1 : index
    %c0_16 = arith.constant 0 : index
    %9 = vector.load %arg7[%c0_14, %c1_15, %c0_16] : memref<18x18x64xf32, #tpu.memory_space<vmem>>, vector<16x16x64xf32>
    %10 = vector.shape_cast %9 : vector<16x16x64xf32> to vector<256x64xf32>
    %c64 = arith.constant 64 : index
    %c0_17 = arith.constant 0 : index
    %11 = vector.load %arg2[%c64, %c0_17] : memref<576x64xf32, #tpu.memory_space<vmem>>, vector<64x64xf32>
    %cst_18 = arith.constant dense<0.000000e+00> : vector<256x64xf32>
    %12 = tpu.matmul %10, %11, %cst_18 {dimension_numbers = #tpu.dot_dimension_numbers<[1], [0], [0], [1], [0, 0, 1, 1], [], []>} : vector<256x64xf32>, vector<64x64xf32>, vector<256x64xf32> -> vector<256x64xf32>
    %13 = arith.addf %8, %12 : vector<256x64xf32>
    %c0_19 = arith.constant 0 : index
    %c2 = arith.constant 2 : index
    %c0_20 = arith.constant 0 : index
    %14 = vector.load %arg7[%c0_19, %c2, %c0_20] : memref<18x18x64xf32, #tpu.memory_space<vmem>>, vector<16x16x64xf32>
    %15 = vector.shape_cast %14 : vector<16x16x64xf32> to vector<256x64xf32>
    %c128 = arith.constant 128 : index
    %c0_21 = arith.constant 0 : index
    %16 = vector.load %arg2[%c128, %c0_21] : memref<576x64xf32, #tpu.memory_space<vmem>>, vector<64x64xf32>
    %cst_22 = arith.constant dense<0.000000e+00> : vector<256x64xf32>
    %17 = tpu.matmul %15, %16, %cst_22 {dimension_numbers = #tpu.dot_dimension_numbers<[1], [0], [0], [1], [0, 0, 1, 1], [], []>} : vector<256x64xf32>, vector<64x64xf32>, vector<256x64xf32> -> vector<256x64xf32>
    %18 = arith.addf %13, %17 : vector<256x64xf32>
    %c1_23 = arith.constant 1 : index
    %c0_24 = arith.constant 0 : index
    %c0_25 = arith.constant 0 : index
    %19 = vector.load %arg7[%c1_23, %c0_24, %c0_25] : memref<18x18x64xf32, #tpu.memory_space<vmem>>, vector<16x16x64xf32>
    %20 = vector.shape_cast %19 : vector<16x16x64xf32> to vector<256x64xf32>
    %c192 = arith.constant 192 : index
    %c0_26 = arith.constant 0 : index
    %21 = vector.load %arg2[%c192, %c0_26] : memref<576x64xf32, #tpu.memory_space<vmem>>, vector<64x64xf32>
    %cst_27 = arith.constant dense<0.000000e+00> : vector<256x64xf32>
    %22 = tpu.matmul %20, %21, %cst_27 {dimension_numbers = #tpu.dot_dimension_numbers<[1], [0], [0], [1], [0, 0, 1, 1], [], []>} : vector<256x64xf32>, vector<64x64xf32>, vector<256x64xf32> -> vector<256x64xf32>
    %23 = arith.addf %18, %22 : vector<256x64xf32>
    %c1_28 = arith.constant 1 : index
    %c1_29 = arith.constant 1 : index
    %c0_30 = arith.constant 0 : index
    %24 = vector.load %arg7[%c1_28, %c1_29, %c0_30] : memref<18x18x64xf32, #tpu.memory_space<vmem>>, vector<16x16x64xf32>
    %25 = vector.shape_cast %24 : vector<16x16x64xf32> to vector<256x64xf32>
    %c256 = arith.constant 256 : index
    %c0_31 = arith.constant 0 : index
    %26 = vector.load %arg2[%c256, %c0_31] : memref<576x64xf32, #tpu.memory_space<vmem>>, vector<64x64xf32>
    %cst_32 = arith.constant dense<0.000000e+00> : vector<256x64xf32>
    %27 = tpu.matmul %25, %26, %cst_32 {dimension_numbers = #tpu.dot_dimension_numbers<[1], [0], [0], [1], [0, 0, 1, 1], [], []>} : vector<256x64xf32>, vector<64x64xf32>, vector<256x64xf32> -> vector<256x64xf32>
    %28 = arith.addf %23, %27 : vector<256x64xf32>
    %c1_33 = arith.constant 1 : index
    %c2_34 = arith.constant 2 : index
    %c0_35 = arith.constant 0 : index
    %29 = vector.load %arg7[%c1_33, %c2_34, %c0_35] : memref<18x18x64xf32, #tpu.memory_space<vmem>>, vector<16x16x64xf32>
    %30 = vector.shape_cast %29 : vector<16x16x64xf32> to vector<256x64xf32>
    %c320 = arith.constant 320 : index
    %c0_36 = arith.constant 0 : index
    %31 = vector.load %arg2[%c320, %c0_36] : memref<576x64xf32, #tpu.memory_space<vmem>>, vector<64x64xf32>
    %cst_37 = arith.constant dense<0.000000e+00> : vector<256x64xf32>
    %32 = tpu.matmul %30, %31, %cst_37 {dimension_numbers = #tpu.dot_dimension_numbers<[1], [0], [0], [1], [0, 0, 1, 1], [], []>} : vector<256x64xf32>, vector<64x64xf32>, vector<256x64xf32> -> vector<256x64xf32>
    %33 = arith.addf %28, %32 : vector<256x64xf32>
    %c2_38 = arith.constant 2 : index
    %c0_39 = arith.constant 0 : index
    %c0_40 = arith.constant 0 : index
    %34 = vector.load %arg7[%c2_38, %c0_39, %c0_40] : memref<18x18x64xf32, #tpu.memory_space<vmem>>, vector<16x16x64xf32>
    %35 = vector.shape_cast %34 : vector<16x16x64xf32> to vector<256x64xf32>
    %c384 = arith.constant 384 : index
    %c0_41 = arith.constant 0 : index
    %36 = vector.load %arg2[%c384, %c0_41] : memref<576x64xf32, #tpu.memory_space<vmem>>, vector<64x64xf32>
    %cst_42 = arith.constant dense<0.000000e+00> : vector<256x64xf32>
    %37 = tpu.matmul %35, %36, %cst_42 {dimension_numbers = #tpu.dot_dimension_numbers<[1], [0], [0], [1], [0, 0, 1, 1], [], []>} : vector<256x64xf32>, vector<64x64xf32>, vector<256x64xf32> -> vector<256x64xf32>
    %38 = arith.addf %33, %37 : vector<256x64xf32>
    %c2_43 = arith.constant 2 : index
    %c1_44 = arith.constant 1 : index
    %c0_45 = arith.constant 0 : index
    %39 = vector.load %arg7[%c2_43, %c1_44, %c0_45] : memref<18x18x64xf32, #tpu.memory_space<vmem>>, vector<16x16x64xf32>
    %40 = vector.shape_cast %39 : vector<16x16x64xf32> to vector<256x64xf32>
    %c448 = arith.constant 448 : index
    %c0_46 = arith.constant 0 : index
    %41 = vector.load %arg2[%c448, %c0_46] : memref<576x64xf32, #tpu.memory_space<vmem>>, vector<64x64xf32>
    %cst_47 = arith.constant dense<0.000000e+00> : vector<256x64xf32>
    %42 = tpu.matmul %40, %41, %cst_47 {dimension_numbers = #tpu.dot_dimension_numbers<[1], [0], [0], [1], [0, 0, 1, 1], [], []>} : vector<256x64xf32>, vector<64x64xf32>, vector<256x64xf32> -> vector<256x64xf32>
    %43 = arith.addf %38, %42 : vector<256x64xf32>
    %c2_48 = arith.constant 2 : index
    %c2_49 = arith.constant 2 : index
    %c0_50 = arith.constant 0 : index
    %44 = vector.load %arg7[%c2_48, %c2_49, %c0_50] : memref<18x18x64xf32, #tpu.memory_space<vmem>>, vector<16x16x64xf32>
    %45 = vector.shape_cast %44 : vector<16x16x64xf32> to vector<256x64xf32>
    %c512 = arith.constant 512 : index
    %c0_51 = arith.constant 0 : index
    %46 = vector.load %arg2[%c512, %c0_51] : memref<576x64xf32, #tpu.memory_space<vmem>>, vector<64x64xf32>
    %cst_52 = arith.constant dense<0.000000e+00> : vector<256x64xf32>
    %47 = tpu.matmul %45, %46, %cst_52 {dimension_numbers = #tpu.dot_dimension_numbers<[1], [0], [0], [1], [0, 0, 1, 1], [], []>} : vector<256x64xf32>, vector<64x64xf32>, vector<256x64xf32> -> vector<256x64xf32>
    %48 = arith.addf %43, %47 : vector<256x64xf32>
    %c0_53 = arith.constant 0 : index
    %c0_54 = arith.constant 0 : index
    %49 = vector.load %arg3[%c0_53, %c0_54] : memref<1x64xf32, #tpu.memory_space<vmem>>, vector<1x64xf32>
    %50 = vector.broadcast %49 : vector<1x64xf32> to vector<256x64xf32>
    %51 = arith.addf %48, %50 : vector<256x64xf32>
    %cst_55 = arith.constant 0.000000e+00 : f32
    %52 = vector.broadcast %cst_55 : f32 to vector<256x64xf32>
    %53 = arith.maximumf %51, %52 : vector<256x64xf32>
    %54 = vector.shape_cast %53 : vector<256x64xf32> to vector<16x16x64xf32>
    %c1_56 = arith.constant 1 : index
    %c1_57 = arith.constant 1 : index
    %c0_58 = arith.constant 0 : index
    %55 = vector.load %arg7[%c1_56, %c1_57, %c0_58] : memref<18x18x64xf32, #tpu.memory_space<vmem>>, vector<16x16x64xf32>
    tpu.vector_store %arg7[%c1_56, %c1_57, %c0_58], %54 {strides = array<i32>} : memref<18x18x64xf32, #tpu.memory_space<vmem>>, vector<16x16x64xf32>,
    %c0_59 = arith.constant 0 : index
    %c0_60 = arith.constant 0 : index
    %c0_61 = arith.constant 0 : index
    %56 = vector.load %arg7[%c0_59, %c0_60, %c0_61] : memref<18x18x64xf32, #tpu.memory_space<vmem>>, vector<16x16x64xf32>
    %57 = vector.shape_cast %56 : vector<16x16x64xf32> to vector<256x64xf32>
    %c0_62 = arith.constant 0 : index
    %c0_63 = arith.constant 0 : index
    %58 = vector.load %arg4[%c0_62, %c0_63] : memref<576x64xf32, #tpu.memory_space<vmem>>, vector<64x64xf32>
    %cst_64 = arith.constant dense<0.000000e+00> : vector<256x64xf32>
    %59 = tpu.matmul %57, %58, %cst_64 {dimension_numbers = #tpu.dot_dimension_numbers<[1], [0], [0], [1], [0, 0, 1, 1], [], []>} : vector<256x64xf32>, vector<64x64xf32>, vector<256x64xf32> -> vector<256x64xf32>
    %c0_65 = arith.constant 0 : index
    %c1_66 = arith.constant 1 : index
    %c0_67 = arith.constant 0 : index
    %60 = vector.load %arg7[%c0_65, %c1_66, %c0_67] : memref<18x18x64xf32, #tpu.memory_space<vmem>>, vector<16x16x64xf32>
    %61 = vector.shape_cast %60 : vector<16x16x64xf32> to vector<256x64xf32>
    %c64_68 = arith.constant 64 : index
    %c0_69 = arith.constant 0 : index
    %62 = vector.load %arg4[%c64_68, %c0_69] : memref<576x64xf32, #tpu.memory_space<vmem>>, vector<64x64xf32>
    %cst_70 = arith.constant dense<0.000000e+00> : vector<256x64xf32>
    %63 = tpu.matmul %61, %62, %cst_70 {dimension_numbers = #tpu.dot_dimension_numbers<[1], [0], [0], [1], [0, 0, 1, 1], [], []>} : vector<256x64xf32>, vector<64x64xf32>, vector<256x64xf32> -> vector<256x64xf32>
    %64 = arith.addf %59, %63 : vector<256x64xf32>
    %c0_71 = arith.constant 0 : index
    %c2_72 = arith.constant 2 : index
    %c0_73 = arith.constant 0 : index
    %65 = vector.load %arg7[%c0_71, %c2_72, %c0_73] : memref<18x18x64xf32, #tpu.memory_space<vmem>>, vector<16x16x64xf32>
    %66 = vector.shape_cast %65 : vector<16x16x64xf32> to vector<256x64xf32>
    %c128_74 = arith.constant 128 : index
    %c0_75 = arith.constant 0 : index
    %67 = vector.load %arg4[%c128_74, %c0_75] : memref<576x64xf32, #tpu.memory_space<vmem>>, vector<64x64xf32>
    %cst_76 = arith.constant dense<0.000000e+00> : vector<256x64xf32>
    %68 = tpu.matmul %66, %67, %cst_76 {dimension_numbers = #tpu.dot_dimension_numbers<[1], [0], [0], [1], [0, 0, 1, 1], [], []>} : vector<256x64xf32>, vector<64x64xf32>, vector<256x64xf32> -> vector<256x64xf32>
    %69 = arith.addf %64, %68 : vector<256x64xf32>
    %c1_77 = arith.constant 1 : index
    %c0_78 = arith.constant 0 : index
    %c0_79 = arith.constant 0 : index
    %70 = vector.load %arg7[%c1_77, %c0_78, %c0_79] : memref<18x18x64xf32, #tpu.memory_space<vmem>>, vector<16x16x64xf32>
    %71 = vector.shape_cast %70 : vector<16x16x64xf32> to vector<256x64xf32>
    %c192_80 = arith.constant 192 : index
    %c0_81 = arith.constant 0 : index
    %72 = vector.load %arg4[%c192_80, %c0_81] : memref<576x64xf32, #tpu.memory_space<vmem>>, vector<64x64xf32>
    %cst_82 = arith.constant dense<0.000000e+00> : vector<256x64xf32>
    %73 = tpu.matmul %71, %72, %cst_82 {dimension_numbers = #tpu.dot_dimension_numbers<[1], [0], [0], [1], [0, 0, 1, 1], [], []>} : vector<256x64xf32>, vector<64x64xf32>, vector<256x64xf32> -> vector<256x64xf32>
    %74 = arith.addf %69, %73 : vector<256x64xf32>
    %c1_83 = arith.constant 1 : index
    %c1_84 = arith.constant 1 : index
    %c0_85 = arith.constant 0 : index
    %75 = vector.load %arg7[%c1_83, %c1_84, %c0_85] : memref<18x18x64xf32, #tpu.memory_space<vmem>>, vector<16x16x64xf32>
    %76 = vector.shape_cast %75 : vector<16x16x64xf32> to vector<256x64xf32>
    %c256_86 = arith.constant 256 : index
    %c0_87 = arith.constant 0 : index
    %77 = vector.load %arg4[%c256_86, %c0_87] : memref<576x64xf32, #tpu.memory_space<vmem>>, vector<64x64xf32>
    %cst_88 = arith.constant dense<0.000000e+00> : vector<256x64xf32>
    %78 = tpu.matmul %76, %77, %cst_88 {dimension_numbers = #tpu.dot_dimension_numbers<[1], [0], [0], [1], [0, 0, 1, 1], [], []>} : vector<256x64xf32>, vector<64x64xf32>, vector<256x64xf32> -> vector<256x64xf32>
    %79 = arith.addf %74, %78 : vector<256x64xf32>
    %c1_89 = arith.constant 1 : index
    %c2_90 = arith.constant 2 : index
    %c0_91 = arith.constant 0 : index
    %80 = vector.load %arg7[%c1_89, %c2_90, %c0_91] : memref<18x18x64xf32, #tpu.memory_space<vmem>>, vector<16x16x64xf32>
    %81 = vector.shape_cast %80 : vector<16x16x64xf32> to vector<256x64xf32>
    %c320_92 = arith.constant 320 : index
    %c0_93 = arith.constant 0 : index
    %82 = vector.load %arg4[%c320_92, %c0_93] : memref<576x64xf32, #tpu.memory_space<vmem>>, vector<64x64xf32>
    %cst_94 = arith.constant dense<0.000000e+00> : vector<256x64xf32>
    %83 = tpu.matmul %81, %82, %cst_94 {dimension_numbers = #tpu.dot_dimension_numbers<[1], [0], [0], [1], [0, 0, 1, 1], [], []>} : vector<256x64xf32>, vector<64x64xf32>, vector<256x64xf32> -> vector<256x64xf32>
    %84 = arith.addf %79, %83 : vector<256x64xf32>
    %c2_95 = arith.constant 2 : index
    %c0_96 = arith.constant 0 : index
    %c0_97 = arith.constant 0 : index
    %85 = vector.load %arg7[%c2_95, %c0_96, %c0_97] : memref<18x18x64xf32, #tpu.memory_space<vmem>>, vector<16x16x64xf32>
    %86 = vector.shape_cast %85 : vector<16x16x64xf32> to vector<256x64xf32>
    %c384_98 = arith.constant 384 : index
    %c0_99 = arith.constant 0 : index
    %87 = vector.load %arg4[%c384_98, %c0_99] : memref<576x64xf32, #tpu.memory_space<vmem>>, vector<64x64xf32>
    %cst_100 = arith.constant dense<0.000000e+00> : vector<256x64xf32>
    %88 = tpu.matmul %86, %87, %cst_100 {dimension_numbers = #tpu.dot_dimension_numbers<[1], [0], [0], [1], [0, 0, 1, 1], [], []>} : vector<256x64xf32>, vector<64x64xf32>, vector<256x64xf32> -> vector<256x64xf32>
    %89 = arith.addf %84, %88 : vector<256x64xf32>
    %c2_101 = arith.constant 2 : index
    %c1_102 = arith.constant 1 : index
    %c0_103 = arith.constant 0 : index
    %90 = vector.load %arg7[%c2_101, %c1_102, %c0_103] : memref<18x18x64xf32, #tpu.memory_space<vmem>>, vector<16x16x64xf32>
    %91 = vector.shape_cast %90 : vector<16x16x64xf32> to vector<256x64xf32>
    %c448_104 = arith.constant 448 : index
    %c0_105 = arith.constant 0 : index
    %92 = vector.load %arg4[%c448_104, %c0_105] : memref<576x64xf32, #tpu.memory_space<vmem>>, vector<64x64xf32>
    %cst_106 = arith.constant dense<0.000000e+00> : vector<256x64xf32>
    %93 = tpu.matmul %91, %92, %cst_106 {dimension_numbers = #tpu.dot_dimension_numbers<[1], [0], [0], [1], [0, 0, 1, 1], [], []>} : vector<256x64xf32>, vector<64x64xf32>, vector<256x64xf32> -> vector<256x64xf32>
    %94 = arith.addf %89, %93 : vector<256x64xf32>
    %c2_107 = arith.constant 2 : index
    %c2_108 = arith.constant 2 : index
    %c0_109 = arith.constant 0 : index
    %95 = vector.load %arg7[%c2_107, %c2_108, %c0_109] : memref<18x18x64xf32, #tpu.memory_space<vmem>>, vector<16x16x64xf32>
    %96 = vector.shape_cast %95 : vector<16x16x64xf32> to vector<256x64xf32>
    %c512_110 = arith.constant 512 : index
    %c0_111 = arith.constant 0 : index
    %97 = vector.load %arg4[%c512_110, %c0_111] : memref<576x64xf32, #tpu.memory_space<vmem>>, vector<64x64xf32>
    %cst_112 = arith.constant dense<0.000000e+00> : vector<256x64xf32>
    %98 = tpu.matmul %96, %97, %cst_112 {dimension_numbers = #tpu.dot_dimension_numbers<[1], [0], [0], [1], [0, 0, 1, 1], [], []>} : vector<256x64xf32>, vector<64x64xf32>, vector<256x64xf32> -> vector<256x64xf32>
    %99 = arith.addf %94, %98 : vector<256x64xf32>
    %c0_113 = arith.constant 0 : index
    %c0_114 = arith.constant 0 : index
    %100 = vector.load %arg5[%c0_113, %c0_114] : memref<1x64xf32, #tpu.memory_space<vmem>>, vector<1x64xf32>
    %101 = vector.broadcast %100 : vector<1x64xf32> to vector<256x64xf32>
    %102 = arith.addf %99, %101 : vector<256x64xf32>
    %103 = vector.shape_cast %102 : vector<256x64xf32> to vector<16x16x64xf32>
    %cst_115 = arith.constant 5.000000e-01 : f32
    %104 = vector.broadcast %cst_115 : f32 to vector<16x16x64xf32>
    %105 = arith.mulf %103, %104 : vector<16x16x64xf32>
    %c0_116 = arith.constant 0 : index
    %c0_117 = arith.constant 0 : index
    %c0_118 = arith.constant 0 : index
    %c0_119 = arith.constant 0 : index
    %106 = vector.load %arg1[%c0_116, %c0_117, %c0_118, %c0_119] : memref<1x16x16x64xf32, #tpu.memory_space<vmem>>, vector<1x16x16x64xf32>
    %107 = vector.shape_cast %106 : vector<1x16x16x64xf32> to vector<16x16x64xf32>
    %108 = arith.addf %105, %107 : vector<16x16x64xf32>
    %c0_120 = arith.constant 0 : index
    %c0_121 = arith.constant 0 : index
    %c0_122 = arith.constant 0 : index
    %c0_123 = arith.constant 0 : index
    %109 = vector.load %arg6[%c0_120, %c0_121, %c0_122, %c0_123] : memref<1x16x16x64xf32, #tpu.memory_space<vmem>>, vector<1x16x16x64xf32>
    %110 = vector.shape_cast %109 : vector<1x16x16x64xf32> to vector<16x16x64xf32>
    %111 = vector.shape_cast %108 : vector<16x16x64xf32> to vector<1x16x16x64xf32>
    tpu.vector_store %arg6[%c0_120, %c0_121, %c0_122, %c0_123], %111 {strides = array<i32>} : memref<1x16x16x64xf32, #tpu.memory_space<vmem>>, vector<1x16x16x64xf32>,
    return
  }
  func.func @transform_0(%arg0: i32) -> (i32, i32, i32, i32) {
    %c0_i32 = arith.constant 0 : i32
    %c0_i32_0 = arith.constant 0 : i32
    %c0_i32_1 = arith.constant 0 : i32
    %c0_i32_2 = arith.constant 0 : i32
    return %arg0, %c0_i32, %c0_i32_0, %c0_i32_1 : i32, i32, i32, i32
  }
  func.func @transform_1(%arg0: i32) -> (i32, i32) {
    %c0_i32 = arith.constant 0 : i32
    %c0_i32_0 = arith.constant 0 : i32
    %c0_i32_1 = arith.constant 0 : i32
    return %c0_i32, %c0_i32_0 : i32, i32
  }
  func.func @transform_2(%arg0: i32) -> (i32, i32) {
    %c0_i32 = arith.constant 0 : i32
    %c0_i32_0 = arith.constant 0 : i32
    %c0_i32_1 = arith.constant 0 : i32
    return %c0_i32, %c0_i32_0 : i32, i32
  }
  func.func @transform_3(%arg0: i32) -> (i32, i32) {
    %c0_i32 = arith.constant 0 : i32
    %c0_i32_0 = arith.constant 0 : i32
    %c0_i32_1 = arith.constant 0 : i32
    return %c0_i32, %c0_i32_0 : i32, i32
  }
  func.func @transform_4(%arg0: i32) -> (i32, i32) {
    %c0_i32 = arith.constant 0 : i32
    %c0_i32_0 = arith.constant 0 : i32
    %c0_i32_1 = arith.constant 0 : i32
    return %c0_i32, %c0_i32_0 : i32, i32
  }
  func.func @transform_5(%arg0: i32) -> (i32, i32, i32, i32) {
    %c0_i32 = arith.constant 0 : i32
    %c0_i32_0 = arith.constant 0 : i32
    %c0_i32_1 = arith.constant 0 : i32
    %c0_i32_2 = arith.constant 0 : i32
    return %arg0, %c0_i32, %c0_i32_0, %c0_i32_1 : i32, i32, i32, i32
  }
}

</mosaic_0001>

<bundles_post_ra>
// kernel: tpu_custom_call.1
= control target key start
LH: loop header
LB: loop body
LE: loop exit
PB: predicated region body
PF: predicated region fallthrough
CT: control target
= control target key end

     0   :  { %10 = vsyncpa [#allocation4], 0  ;;  %s13373_s0 = inlined_call_operand.vmem [shape: f32[2,16,16,64], index: 0, kind: input, shape index: {}]   ;;  %s13374_s1 = inlined_call_operand.vmem [shape: f32[576,64], index: 1, kind: input, shape index: {}]   ;;  %s13375_s2 = inlined_call_operand.vmem [shape: f32[1,64], index: 2, kind: input, shape index: {}]   ;;  %s13376_s3 = inlined_call_operand.vmem [shape: f32[576,64], index: 3, kind: input, shape index: {}]   ;;  %s13377_s4 = inlined_call_operand.vmem [shape: f32[1,64], index: 4, kind: input, shape index: {}]   ;;  %s13378_s5 = inlined_call_operand.hbm [shape: f32[2,16,16,64], index: 5, kind: output, shape index: {}]  }
   0x1   :  { %12 = vsyncpa [#allocation4 + $0x1], 0  ;;  %s11041_s18 = smov 0   ;;  %s11043_s19 = smov 0  }
   0x2   :  { %s11045_s20 = smov 0   ;;  %s11047_s21 = smov 0  }
   0x3 LB: > { %s11062_s22 = sadd.s32 4294967295, %s11005_s21   ;;  %s7637_s23 = sadd.s32 4294967294, %s11005_s21   ;;  %s11005_s21 = sphi %s11047_s21, %s13650_s21   ;;  %s11001_s20 = sphi %s11045_s20, %s13649_s20   ;;  %s10997_s19 = sphi %s11043_s19, %s13648_s19   ;;  %s10993_s18 = sphi %s11041_s18, %s13647_s18  }
   0x4   : > { %s11066_s24 = sadd.s32 1, %s11005_s21   ;;  %s135_s25 = sadd.s32 1, %s11001_s20 }
   0x5   : > { %s132_s26 = ssub.s32 %s11005_s21, %s11066_s24  ;;  %p145_p0 = scmp.ne.s32.totalorder %s11001_s20, %s10997_s19 }
   0x6   : > { %p133_p1 = scmp.eq.s32.totalorder %s132_s26, 0  ;;  %p146_p2 = scmp.eq.s32.totalorder %s11062_s22, 1 }
   0x7   : > { %p151_p3 = scmp.ne.s32.totalorder %s10997_s19, %s10993_s18  ;;  %p152_p4 = scmp.eq.s32.totalorder %s7637_s23, 1 }
   0x8   : > { %s11077_s27 = scalar_select %p133_p1, %s11001_s20, %s135_s25  }
   0x9   : > { %p11079_p5 = por %p146_p2, %p145_p0  ;;  %p11083_p6 = por %p152_p4, %p151_p3 }
   0xa   : > { %p7640_p7 = scmp.ge.s32.totalorder %s11005_s21, 1  ;;  %p190_p8 = scmp.lt.s32.totalorder %s11005_s21, 3 }
   0xc   : > { %p191_p9 = pnand %p7640_p7, %p190_p8 }
   0xe   : > { %194 = sbr.rel (%p191_p9) target bundleno = 1594 (0x63a), region = 40 }
  0x15   : > { %v416_v0 = vld [vmem:[%s13374_s1 + $0x40] sm:$0xff]  ;;  %v417_v1 = vld [vmem:[%s13374_s1 + $0x48] sm:$0xff]  ;;  %v418_v2 = vld [vmem:[%s13374_s1 + $0x50] sm:$0xff]  ;;  %vm223_vm0 = vcmask 523264   ;;  %vm226_vm1 = vcmask 517120   ;;  %v11007_v5 = vmov 0.0  }
  0x16   : > { %v10101_v3 = vpack.c.bf16 %v417_v1, %v416_v0  ;;  %v419_v4 = vld [vmem:[%s13374_s1 + $0x58] sm:$0xff]  ;;  %224 = vst.msk [vmem:[#allocation2] sm:$0xff] %vm223_vm0, %v11007_v5  ;;  %225 = vst.msk [vmem:[#allocation2 + $0x8] sm:$0xff] %vm223_vm0, %v11007_v5  ;;  %p218_p10 = scmp.lt.s32.totalorder %s11062_s22, 1  ;;  %v420_v7 = vld [vmem:[%s13374_s1 + $0x60] sm:$0xff]  ;;  %s215_s14 = sand.u32 1, %s10997_s19  }
  0x17   : > { %228 = vst.msk [vmem:[#allocation2 + $0x18] sm:$0xff] %vm223_vm0, %v11007_v5  ;;  %229 = vst.msk [vmem:[#allocation2 + $0x20] sm:$0xff] %vm223_vm0, %v11007_v5  ;;  %v10105_v6 = vpack.c.bf16 %v419_v4, %v418_v2  ;;  %v421_v8 = vld [vmem:[%s13374_s1 + $0x68] sm:$0xff]  ;;  %v422_v10 = vld [vmem:[%s13374_s1 + $0x70] sm:$0xff]  ;;  %s8228_s25 = sshll.u32 %s11062_s22, 12  ;;  %s11008_s8 = smov [#allocation3]  }
  0x18   : > { %231 = vst.msk [vmem:[#allocation2 + $0x30] sm:$0xff] %vm223_vm0, %v11007_v5  ;;  %232 = vst.msk [vmem:[#allocation2 + $0x38] sm:$0xff] %vm223_vm0, %v11007_v5  ;;  %10102 = vmatprep.subr.bf16.mxu0 %v10101_v3  ;;  %s219_s17 = scalar_select %p218_p10, %s11062_s22, 1  ;;  %v10109_v9 = vpack.c.bf16 %v421_v8, %v420_v7  ;;  %v423_v11 = vld [vmem:[%s13374_s1 + $0x78] sm:$0xff]  ;;  %v376_v16 = vld [vmem:[%s13374_s1] sm:$0xff] }
  0x19   : > { %234 = vst.msk [vmem:[#allocation2 + $0x48] sm:$0xff] %vm223_vm0, %v11007_v5  ;;  %235 = vst.msk [vmem:[#allocation2 + $0x50] sm:$0xff] %vm223_vm0, %v11007_v5  ;;  %10104 = vmatpush3.bf16.msra.mxu0 %v10101_v3  ;;  %v377_v17 = vld [vmem:[%s13374_s1 + $0x8] sm:$0xff]  ;;  %v10113_v19 = vpack.c.bf16 %v423_v11, %v422_v10  ;;  %v378_v29 = vld [vmem:[%s13374_s1 + $0x10] sm:$0xff]  ;;  %s13322_s7 = scalar_lea.hbm %s13378_s5, %s8228_s25  ;;  %s13332_s22 = scalar_lea.sflag [#allocation4], %s215_s14 }
  0x1a   : > { %237 = vst.msk [vmem:[#allocation2 + $0x60] sm:$0xff] %vm223_vm0, %v11007_v5  ;;  %238 = vst.msk [vmem:[#allocation2 + $0x68] sm:$0xff] %vm223_vm0, %v11007_v5  ;;  %10106 = vmatprep.subr.bf16.mxu0 %v10105_v6  ;;  %s8227_s23 = sshll.u32 %s219_s17, 8  ;;  %v379_v30 = vld [vmem:[%s13374_s1 + $0x18] sm:$0xff]  ;;  %v10117_v34 = vpack.c.bf16 %v377_v17, %v376_v16  ;;  %v380_v46 = vld [vmem:[%s13374_s1 + $0x20] sm:$0xff]  ;;  %s7641_s17 = sshll.u32 %s215_s14, 8 }
  0x1b   : > { %240 = vst.msk [vmem:[#allocation2 + $0x78] sm:$0xff] %vm223_vm0, %v11007_v5  ;;  %241 = vst.msk [vmem:[#allocation2 + $0x80] sm:$0xff] %vm223_vm0, %v11007_v5  ;;  %s11172_s9 = scalar_lea.vmem %s13373_s0, %s8227_s23  ;;  %v10121_v45 = vpack.c.bf16 %v379_v30, %v378_v29  ;;  %v381_v47 = vld [vmem:[%s13374_s1 + $0x28] sm:$0xff]  ;;  %v382_v51 = vld [vmem:[%s13374_s1 + $0x30] sm:$0xff]  ;;  %s13198_s23 = scalar_lea.vmem [#allocation3], %s7641_s17 }
  0x1c   : > { %243 = vst.msk [vmem:[#allocation2 + $0x90] sm:$0xff] %vm223_vm0, %v11007_v5  ;;  %244 = vst.msk [vmem:[#allocation2 + $0x98] sm:$0xff] %vm223_vm0, %v11007_v5  ;;  %v279_v12 = vld [vmem:[%s11172_s9] sm:$0xff]  ;;  %v280_v13 = vld [vmem:[%s11172_s9 + $0x8] sm:$0xff]  ;;  %v10125_v50 = vpack.c.bf16 %v381_v47, %v380_v46  ;;  %s7575_s26 = sshll.u32 %s13198_s23, 4  ;;  %s10947_s10 = sshll.u32 %s11008_s8, 4  ;;  %s13324_s26 = int_to_ptr.vmem [resolvable:$true] %s7575_s26  ;;  %s10948_s10 = int_to_ptr.vmem [resolvable:$false] %s10947_s10 }
  0x1d   : > { %246 = vst.msk [vmem:[#allocation2 + $0xa8] sm:$0xff] %vm223_vm0, %v11007_v5  ;;  %247 = vst.msk [vmem:[#allocation2 + $0xb0] sm:$0xff] %vm223_vm0, %v11007_v5  ;;  %v281_v14 = vld [vmem:[%s11172_s9 + $0x10] sm:$0xff]  ;;  %10108 = vmatpush3.bf16.msra.mxu0 %v10105_v6  ;;  %v384_v15 = vld [vmem:[#allocation2 + $0x1] sm:$0xff]  ;;  %s10949_s11 = scalar_lea.vmem %s10948_s10, 8192  ;;  %p10950_p0 = scmp.lt.s32.totalorder %s13324_s26, %s10948_s10 }
  0x1e   : > { %249 = vst.msk [vmem:[#allocation2 + $0xc0] sm:$0xff] %vm223_vm0, %v11007_v5  ;;  %250 = vst.msk [vmem:[#allocation2 + $0xc8] sm:$0xff] %vm223_vm0, %v11007_v5  ;;  %v282_v18 = vld [vmem:[%s11172_s9 + $0x18] sm:$0xff]  ;;  %10110 = vmatprep.subr.bf16.mxu0 %v10109_v9  ;;  %8965 = vmatprep.mubr.msk.f32.mxu0 %vm223_vm0, %v384_v15  ;;  %v283_v20 = vld [vmem:[%s11172_s9 + $0x20] sm:$0xff] }
  0x1f   : > { %252 = vst.msk [vmem:[#allocation2 + $0xd8] sm:$0xff] %vm223_vm0, %v11007_v5  ;;  %253 = vst.msk [vmem:[#allocation2 + $0xe0] sm:$0xff] %vm223_vm0, %v11007_v5  ;;  %v284_v21 = vld [vmem:[%s11172_s9 + $0x28] sm:$0xff]  ;;  %v285_v22 = vld [vmem:[%s11172_s9 + $0x30] sm:$0xff] }
  0x20   : > { %255 = vst.msk [vmem:[#allocation2 + $0xf0] sm:$0xff] %vm223_vm0, %v11007_v5  ;;  %256 = vst.msk [vmem:[#allocation2 + $0xf8] sm:$0xff] %vm223_vm0, %v11007_v5  ;;  %v286_v23 = vld [vmem:[%s11172_s9 + $0x38] sm:$0xff]  ;;  %v287_v24 = vld [vmem:[%s11172_s9 + $0x40] sm:$0xff] }
  0x21   : > { %258 = vst.msk [vmem:[#allocation2 + $0x108] sm:$0xff] %vm223_vm0, %v11007_v5  ;;  %259 = vst.msk [vmem:[#allocation2 + $0x110] sm:$0xff] %vm223_vm0, %v11007_v5  ;;  %v288_v25 = vld [vmem:[%s11172_s9 + $0x48] sm:$0xff]  ;;  %v289_v26 = vld [vmem:[%s11172_s9 + $0x50] sm:$0xff]  ;;  %10112 = vmatpush3.bf16.msra.mxu0 %v10109_v9 }
  0x22   : > { %261 = vst.msk [vmem:[#allocation2 + $0x120] sm:$0xff] %vm223_vm0, %v11007_v5  ;;  %262 = vst.msk [vmem:[#allocation2 + $0x128] sm:$0xff] %vm223_vm0, %v11007_v5  ;;  %v290_v27 = vld [vmem:[%s11172_s9 + $0x58] sm:$0xff]  ;;  %v291_v28 = vld [vmem:[%s11172_s9 + $0x60] sm:$0xff]  ;;  %10114 = vmatprep.subr.bf16.mxu0 %v10113_v19 }
  0x23   : > { %264 = vst.msk [vmem:[#allocation2 + $0x138] sm:$0xff] %vm223_vm0, %v11007_v5  ;;  %265 = vst.msk [vmem:[#allocation2 + $0x140] sm:$0xff] %vm223_vm0, %v11007_v5  ;;  %v292_v31 = vld [vmem:[%s11172_s9 + $0x68] sm:$0xff]  ;;  %v293_v32 = vld [vmem:[%s11172_s9 + $0x70] sm:$0xff] }
  0x24   : > { %267 = vst.msk [vmem:[#allocation2 + $0x150] sm:$0xff] %vm223_vm0, %v11007_v5  ;;  %268 = vst.msk [vmem:[#allocation2 + $0x158] sm:$0xff] %vm223_vm0, %v11007_v5  ;;  %v294_v33 = vld [vmem:[%s11172_s9 + $0x78] sm:$0xff]  ;;  %v295_v35 = vld [vmem:[%s11172_s9 + $0x80] sm:$0xff] }
  0x25   : > { %270 = vst.msk [vmem:[#allocation2 + $0x168] sm:$0xff] %vm223_vm0, %v11007_v5  ;;  %271 = vst.msk [vmem:[#allocation2 + $0x170] sm:$0xff] %vm223_vm0, %v11007_v5  ;;  %v296_v36 = vld [vmem:[%s11172_s9 + $0x88] sm:$0xff]  ;;  %v297_v37 = vld [vmem:[%s11172_s9 + $0x90] sm:$0xff]  ;;  %10116 = vmatpush3.bf16.msra.mxu0 %v10113_v19 }
  0x26   : > { %273 = vst.msk [vmem:[#allocation2 + $0x180] sm:$0xff] %vm223_vm0, %v11007_v5  ;;  %274 = vst.msk [vmem:[#allocation2 + $0x188] sm:$0xff] %vm223_vm0, %v11007_v5  ;;  %v298_v38 = vld [vmem:[%s11172_s9 + $0x98] sm:$0xff]  ;;  %v299_v39 = vld [vmem:[%s11172_s9 + $0xa0] sm:$0xff]  ;;  %10118 = vmatprep.subr.bf16.mxu0 %v10117_v34 }
  0x27   : > { %276 = vst.msk [vmem:[#allocation2 + $0x198] sm:$0xff] %vm223_vm0, %v11007_v5  ;;  %277 = vst.msk [vmem:[#allocation2 + $0x1a0] sm:$0xff] %vm223_vm0, %v11007_v5  ;;  %v300_v40 = vld [vmem:[%s11172_s9 + $0xa8] sm:$0xff]  ;;  %v301_v42 = vld [vmem:[%s11172_s9 + $0xb0] sm:$0xff] }
  0x28   : > { %227 = vst.msk [vmem:[#allocation2 + $0x10] sm:$0x3] %vm226_vm1, %v11007_v5  ;;  %230 = vst.msk [vmem:[#allocation2 + $0x28] sm:$0x3] %vm226_vm1, %v11007_v5  ;;  %v302_v43 = vld [vmem:[%s11172_s9 + $0xb8] sm:$0xff]  ;;  %v303_v53 = vld [vmem:[%s11172_s9 + $0xc0] sm:$0xff] }
  0x29   : > { %233 = vst.msk [vmem:[#allocation2 + $0x40] sm:$0x3] %vm226_vm1, %v11007_v5  ;;  %236 = vst.msk [vmem:[#allocation2 + $0x58] sm:$0x3] %vm226_vm1, %v11007_v5  ;;  %v383_v52 = vld [vmem:[%s13374_s1 + $0x38] sm:$0xff]  ;;  %v304_v54 = vld [vmem:[%s11172_s9 + $0xc8] sm:$0xff] }
  0x2a   : > { %239 = vst.msk [vmem:[#allocation2 + $0x70] sm:$0x3] %vm226_vm1, %v11007_v5  ;;  %242 = vst.msk [vmem:[#allocation2 + $0x88] sm:$0x3] %vm226_vm1, %v11007_v5  ;;  %v305_v55 = vld [vmem:[%s11172_s9 + $0xd0] sm:$0xff]  ;;  %v306_v57 = vld [vmem:[%s11172_s9 + $0xd8] sm:$0xff]  ;;  %v10129_v59 = vpack.c.bf16 %v383_v52, %v382_v51 }
  0x2b   : > { %245 = vst.msk [vmem:[#allocation2 + $0xa0] sm:$0x3] %vm226_vm1, %v11007_v5  ;;  %248 = vst.msk [vmem:[#allocation2 + $0xb8] sm:$0x3] %vm226_vm1, %v11007_v5  ;;  %v307_v60 = vld [vmem:[%s11172_s9 + $0xe0] sm:$0xff]  ;;  %v308_v61 = vld [vmem:[%s11172_s9 + $0xe8] sm:$0xff] }
  0x2c   : > { %251 = vst.msk [vmem:[#allocation2 + $0xd0] sm:$0x3] %vm226_vm1, %v11007_v5  ;;  %254 = vst.msk [vmem:[#allocation2 + $0xe8] sm:$0x3] %vm226_vm1, %v11007_v5  ;;  %v1098_v62 = vld [vmem:[%s13374_s1 + $0x80] sm:$0xff]  ;;  %v1099_v63 = vld [vmem:[%s13374_s1 + $0x88] sm:$0xff] }
  0x2d   : > { %257 = vst.msk [vmem:[#allocation2 + $0x100] sm:$0x3] %vm226_vm1, %v11007_v5  ;;  %260 = vst.msk [vmem:[#allocation2 + $0x118] sm:$0x3] %vm226_vm1, %v11007_v5  ;;  %v10133_v2 = vpack.c.bf16 %v1099_v63, %v1098_v62  ;;  %v345_v29 = vld [vmem:[#allocation2 + $0x8] sm:$0xff] }
  0x2e   : > { %263 = vst.msk [vmem:[#allocation2 + $0x130] sm:$0x3] %vm226_vm1, %v11007_v5  ;;  %266 = vst.msk [vmem:[#allocation2 + $0x148] sm:$0x3] %vm226_vm1, %v11007_v5 }
  0x2f   : > { %269 = vst.msk [vmem:[#allocation2 + $0x160] sm:$0x3] %vm226_vm1, %v11007_v5  ;;  %272 = vst.msk [vmem:[#allocation2 + $0x178] sm:$0x3] %vm226_vm1, %v11007_v5  ;;  %v385_v41 = vld [vmem:[#allocation2 + $0x9] sm:$0xff] }
  0x30   : > { %275 = vst.msk [vmem:[#allocation2 + $0x190] sm:$0x3] %vm226_vm1, %v11007_v5  ;;  %278 = vst.msk [vmem:[#allocation2 + $0x1a8] sm:$0x3] %vm226_vm1, %v11007_v5  ;;  %8966 = vmatmul.mubr.msk.f32.vlgmr.msra.gmra.mrb[0].mxu0 %vm223_vm0, %v385_v41 }
  0x31   : > { %312 = vst.msk [vmem:[#allocation2 + $0x19] sm:$0xff] %vm223_vm0, %v279_v12  ;;  %313 = vst.msk [vmem:[#allocation2 + $0x21] sm:$0xff] %vm223_vm0, %v280_v13  ;;  %10120 = vmatpush3.bf16.msra.mxu0 %v10117_v34 }
  0x32   : > { %314 = vst.msk [vmem:[#allocation2 + $0x31] sm:$0xff] %vm223_vm0, %v281_v14  ;;  %315 = vst.msk [vmem:[#allocation2 + $0x39] sm:$0xff] %vm223_vm0, %v282_v18  ;;  %10122 = vmatprep.subr.bf16.mxu0 %v10121_v45 }
  0x33   : > { %316 = vst.msk [vmem:[#allocation2 + $0x49] sm:$0xff] %vm223_vm0, %v283_v20  ;;  %317 = vst.msk [vmem:[#allocation2 + $0x51] sm:$0xff] %vm223_vm0, %v284_v21 }
  0x34   : > { %318 = vst.msk [vmem:[#allocation2 + $0x61] sm:$0xff] %vm223_vm0, %v285_v22  ;;  %319 = vst.msk [vmem:[#allocation2 + $0x69] sm:$0xff] %vm223_vm0, %v286_v23 }
  0x35   : > { %320 = vst.msk [vmem:[#allocation2 + $0x79] sm:$0xff] %vm223_vm0, %v287_v24  ;;  %321 = vst.msk [vmem:[#allocation2 + $0x81] sm:$0xff] %vm223_vm0, %v288_v25  ;;  %10124 = vmatpush3.bf16.msra.mxu0 %v10121_v45 }
  0x36   : > { %322 = vst.msk [vmem:[#allocation2 + $0x91] sm:$0xff] %vm223_vm0, %v289_v26  ;;  %323 = vst.msk [vmem:[#allocation2 + $0x99] sm:$0xff] %vm223_vm0, %v290_v27  ;;  %10126 = vmatprep.subr.bf16.mxu0 %v10125_v50  ;;  %v344_v26 = vld [vmem:[#allocation2] sm:$0xff]  ;;  %v1100_v27 = vld [vmem:[%s13374_s1 + $0x90] sm:$0xff] }
  0x37   : > { %324 = vst.msk [vmem:[#allocation2 + $0xa9] sm:$0xff] %vm223_vm0, %v291_v28  ;;  %325 = vst.msk [vmem:[#allocation2 + $0xb1] sm:$0xff] %vm223_vm0, %v292_v31  ;;  %v1101_v28 = vld [vmem:[%s13374_s1 + $0x98] sm:$0xff] }
  0x38   : > { %326 = vst.msk [vmem:[#allocation2 + $0xc1] sm:$0xff] %vm223_vm0, %v293_v32  ;;  %327 = vst.msk [vmem:[#allocation2 + $0xc9] sm:$0xff] %vm223_vm0, %v294_v33  ;;  %v11233_v44 = vld [vmem:[#allocation2 + $0x19] sm:$0xff]  ;;  %v11246_v48 = vld [vmem:[#allocation2 + $0x21] sm:$0xff]  ;;  %v10137_v31 = vpack.c.bf16 %v1101_v28, %v1100_v27 }
  0x39   : > { %328 = vst.msk [vmem:[#allocation2 + $0xd9] sm:$0xff] %vm223_vm0, %v295_v35  ;;  %329 = vst.msk [vmem:[#allocation2 + $0xe1] sm:$0xff] %vm223_vm0, %v296_v36  ;;  %8968 = vmatprep.mubr.msk.f32.mxu0 %vm223_vm0, %v11233_v44  ;;  %v11248_v49 = vld [vmem:[#allocation2 + $0x31] sm:$0xff]  ;;  %v11263_v56 = vld [vmem:[#allocation2 + $0x39] sm:$0xff]  ;;  %10128 = vmatpush3.bf16.msra.mxu0 %v10125_v50 }
  0x3a   : > { %330 = vst.msk [vmem:[#allocation2 + $0xf1] sm:$0xff] %vm223_vm0, %v297_v37  ;;  %331 = vst.msk [vmem:[#allocation2 + $0xf9] sm:$0xff] %vm223_vm0, %v298_v38  ;;  %8969 = vmatmul.mubr.msk.f32.gmra.mrb[2].mxu0 %vm223_vm0, %v11246_v48  ;;  %v11269_v58 = vld [vmem:[#allocation2 + $0x49] sm:$0xff]  ;;  %v11286_v0 = vld [vmem:[#allocation2 + $0x51] sm:$0xff]  ;;  %10130 = vmatprep.subr.bf16.mxu0 %v10129_v59 }
  0x3b   : > { %332 = vst.msk [vmem:[#allocation2 + $0x109] sm:$0xff] %vm223_vm0, %v299_v39  ;;  %333 = vst.msk [vmem:[#allocation2 + $0x111] sm:$0xff] %vm223_vm0, %v300_v40  ;;  %8971 = vmatprep.mubr.msk.f32.mxu0 %vm223_vm0, %v11248_v49  ;;  %v11288_v1 = vld [vmem:[#allocation2 + $0x61] sm:$0xff]  ;;  %v11294_v3 = vld [vmem:[#allocation2 + $0x69] sm:$0xff] }
  0x3c   : > { %334 = vst.msk [vmem:[#allocation2 + $0x121] sm:$0xff] %vm223_vm0, %v301_v42  ;;  %335 = vst.msk [vmem:[#allocation2 + $0x129] sm:$0xff] %vm223_vm0, %v302_v43  ;;  %v11296_v4 = vld [vmem:[#allocation2 + $0x79] sm:$0xff]  ;;  %v11302_v5 = vld [vmem:[#allocation2 + $0x81] sm:$0xff] }
  0x3d   : > { %336 = vst.msk [vmem:[#allocation2 + $0x139] sm:$0xff] %vm223_vm0, %v303_v53  ;;  %337 = vst.msk [vmem:[#allocation2 + $0x141] sm:$0xff] %vm223_vm0, %v304_v54  ;;  %10132 = vmatpush3.bf16.msra.mxu0 %v10129_v59  ;;  %v11304_v6 = vld [vmem:[#allocation2 + $0x91] sm:$0xff]  ;;  %v11310_v7 = vld [vmem:[#allocation2 + $0x99] sm:$0xff] }
  0x3e   : > { %338 = vst.msk [vmem:[#allocation2 + $0x151] sm:$0xff] %vm223_vm0, %v305_v55  ;;  %339 = vst.msk [vmem:[#allocation2 + $0x159] sm:$0xff] %vm223_vm0, %v306_v57  ;;  %8972 = vmatmul.mubr.msk.f32.gmra.mrb[4].mxu0 %vm223_vm0, %v11263_v56  ;;  %10134 = vmatprep.subr.bf16.mxu0 %v10133_v2  ;;  %v11312_v8 = vld [vmem:[#allocation2 + $0xa9] sm:$0xff]  ;;  %v11318_v9 = vld [vmem:[#allocation2 + $0xb1] sm:$0xff] }
  0x3f   : > { %340 = vst.msk [vmem:[#allocation2 + $0x169] sm:$0xff] %vm223_vm0, %v307_v60  ;;  %341 = vst.msk [vmem:[#allocation2 + $0x171] sm:$0xff] %vm223_vm0, %v308_v61  ;;  %8974 = vmatprep.mubr.msk.f32.mxu0 %vm223_vm0, %v11269_v58  ;;  %v11320_v10 = vld [vmem:[#allocation2 + $0xc1] sm:$0xff]  ;;  %v11326_v11 = vld [vmem:[#allocation2 + $0xc9] sm:$0xff] }
  0x40   : > { %v11328_v12 = vld [vmem:[#allocation2 + $0xd9] sm:$0xff]  ;;  %v11334_v13 = vld [vmem:[#allocation2 + $0xe1] sm:$0xff]  ;;  %v11406_v35 = vld [vmem:[#allocation2 + $0x30] sm:$0xff] }
  0x41   : > { %v11336_v14 = vld [vmem:[#allocation2 + $0xf1] sm:$0xff]  ;;  %v11342_v15 = vld [vmem:[#allocation2 + $0xf9] sm:$0xff]  ;;  %v1103_v33 = vld [vmem:[%s13374_s1 + $0xa8] sm:$0xff] }
  0x42   : > { %8975 = vmatmul.mubr.msk.f32.gmra.mrb[6].mxu0 %vm223_vm0, %v11286_v0  ;;  %v11344_v16 = vld [vmem:[#allocation2 + $0x109] sm:$0xff]  ;;  %v11350_v17 = vld [vmem:[#allocation2 + $0x111] sm:$0xff]  ;;  %v1102_v32 = vld [vmem:[%s13374_s1 + $0xa0] sm:$0xff] }
  0x43   : > { %8977 = vmatprep.mubr.msk.f32.mxu0 %vm223_vm0, %v11288_v1  ;;  %v11352_v18 = vld [vmem:[#allocation2 + $0x121] sm:$0xff]  ;;  %v11358_v19 = vld [vmem:[#allocation2 + $0x129] sm:$0xff]  ;;  %v11393_v30 = vld [vmem:[#allocation2 + $0x18] sm:$0xff]  ;;  %v10141_v36 = vpack.c.bf16 %v1103_v33, %v1102_v32 }
  0x44   : > { %13501 = vst [vmem:[#allocation6_spill] sm:$0xff] %v11358_v19  ;;  %v11360_v20 = vld [vmem:[#allocation2 + $0x139] sm:$0xff]  ;;  %v11366_v21 = vld [vmem:[#allocation2 + $0x141] sm:$0xff]  ;;  %v1104_v37 = vld [vmem:[%s13374_s1 + $0xb0] sm:$0xff] }
  0x45   : > { %13502 = vst [vmem:[#allocation7_spill] sm:$0xff] %v11360_v20  ;;  %13503 = vst [vmem:[#allocation8_spill] sm:$0xff] %v11366_v21  ;;  %v11368_v22 = vld [vmem:[#allocation2 + $0x151] sm:$0xff]  ;;  %v11374_v23 = vld [vmem:[#allocation2 + $0x159] sm:$0xff] }
  0x46   : > { %8978 = vmatmul.mubr.msk.f32.gmra.mrb[8].mxu0 %vm223_vm0, %v11294_v3  ;;  %13504 = vst [vmem:[#allocation9_spill] sm:$0xff] %v11368_v22  ;;  %13505 = vst [vmem:[#allocation10_spill] sm:$0xff] %v11374_v23  ;;  %v11376_v24 = vld [vmem:[#allocation2 + $0x169] sm:$0xff]  ;;  %v11382_v25 = vld [vmem:[#allocation2 + $0x171] sm:$0xff] }
  0x47   : > { %8980 = vmatprep.mubr.msk.f32.mxu0 %vm223_vm0, %v11296_v4  ;;  %13506 = vst [vmem:[#allocation11_spill] sm:$0xff] %v11376_v24  ;;  %13507 = vst [vmem:[#allocation12_spill] sm:$0xff] %v11382_v25  ;;  %v11404_v34 = vld [vmem:[#allocation2 + $0x20] sm:$0xff]  ;;  %v1105_v38 = vld [vmem:[%s13374_s1 + $0xb8] sm:$0xff] }
  0x48   : > { %v11418_v39 = vld [vmem:[#allocation2 + $0x38] sm:$0xff]  ;;  %v11420_v40 = vld [vmem:[#allocation2 + $0x48] sm:$0xff]  ;;  %v10145_v41 = vpack.c.bf16 %v1105_v38, %v1104_v37  ;;  %v1491_v42 = vld [vmem:[%s13374_s1 + $0xc0] sm:$0xff] }
  0x49   : > { %v1492_v43 = vld [vmem:[%s13374_s1 + $0xc8] sm:$0xff]  ;;  %v11432_v45 = vld [vmem:[#allocation2 + $0x50] sm:$0xff]  ;;  %v11434_v46 = vld [vmem:[#allocation2 + $0x60] sm:$0xff] }
  0x4a   : > { %8981 = vmatmul.mubr.msk.f32.gmra.mrb[10].mxu0 %vm223_vm0, %v11302_v5  ;;  %v11436_v47 = vpack.c.bf16 %v1492_v43, %v1491_v42  ;;  %v11442_v50 = vld [vmem:[#allocation2 + $0x68] sm:$0xff]  ;;  %v11444_v51 = vld [vmem:[#allocation2 + $0x78] sm:$0xff]  ;;  %v11451_v52 = vld [vmem:[#allocation2 + $0x80] sm:$0xff] }
  0x4b   : > { %8983 = vmatprep.mubr.msk.f32.mxu0 %vm223_vm0, %v11304_v6  ;;  %v11453_v53 = vld [vmem:[#allocation2 + $0x90] sm:$0xff]  ;;  %v11459_v54 = vld [vmem:[#allocation2 + $0x98] sm:$0xff]  ;;  %v11461_v55 = vld [vmem:[#allocation2 + $0xa8] sm:$0xff] }
  0x4c   : > { %v11467_v57 = vld [vmem:[#allocation2 + $0xb0] sm:$0xff]  ;;  %v11469_v59 = vld [vmem:[#allocation2 + $0xc0] sm:$0xff]  ;;  %v11475_v60 = vld [vmem:[#allocation2 + $0xc8] sm:$0xff] }
  0x4d   : > { %v11477_v61 = vld [vmem:[#allocation2 + $0xd8] sm:$0xff]  ;;  %v11483_v62 = vld [vmem:[#allocation2 + $0xe0] sm:$0xff]  ;;  %v11485_v63 = vld [vmem:[#allocation2 + $0xf0] sm:$0xff] }
  0x4e   : > { %8984 = vmatmul.mubr.msk.f32.gmra.mrb[12].mxu0 %vm223_vm0, %v11310_v7  ;;  %v11499_v27 = vld [vmem:[#allocation2 + $0x110] sm:$0xff]  ;;  %v11501_v28 = vld [vmem:[#allocation2 + $0x120] sm:$0xff]  ;;  %v310_v37 = vld [vmem:[%s11172_s9 + $0xf8] sm:$0xff] }
  0x4f   : > { %8986 = vmatprep.mubr.msk.f32.mxu0 %vm223_vm0, %v11312_v8  ;;  %v11515_v32 = vld [vmem:[#allocation2 + $0x140] sm:$0xff]  ;;  %v11517_v33 = vld [vmem:[#allocation2 + $0x150] sm:$0xff]  ;;  %343 = vst.msk [vmem:[#allocation2 + $0x189] sm:$0xff] %vm223_vm0, %v310_v37  ;;  %v11527_v38 = vld [vmem:[#allocation2 + $0x158] sm:$0xff] }
  0x50   : > { %v11535_v42 = vld [vmem:[#allocation2 + $0x170] sm:$0xff]  ;;  %v1066_v43 = vld [vmem:[#allocation2 + $0x2] sm:$0xff]  ;;  %v1494_v37 = vld [vmem:[%s13374_s1 + $0xd8] sm:$0xff] }
  0x52   : > { %8987 = vmatmul.mubr.msk.f32.gmra.mrb[14].mxu0 %vm223_vm0, %v11318_v9 }
  0x53   : > { %8989 = vmatprep.mubr.msk.f32.mxu0 %vm223_vm0, %v11320_v10 }
  0x56   : > { %8990 = vmatmul.mubr.msk.f32.gmra.mrb[16].mxu0 %vm223_vm0, %v11326_v11 }
  0x57   : > { %8992 = vmatprep.mubr.msk.f32.mxu0 %vm223_vm0, %v11328_v12 }
  0x5a   : > { %8993 = vmatmul.mubr.msk.f32.gmra.mrb[18].mxu0 %vm223_vm0, %v11334_v13 }
  0x5b   : > { %8995 = vmatprep.mubr.msk.f32.mxu0 %vm223_vm0, %v11336_v14 }
  0x5e   : > { %8996 = vmatmul.mubr.msk.f32.gmra.mrb[20].mxu0 %vm223_vm0, %v11342_v15 }
  0x5f   : > { %8998 = vmatprep.mubr.msk.f32.mxu0 %vm223_vm0, %v11344_v16 }
  0x62   : > { %8999 = vmatmul.mubr.msk.f32.gmra.mrb[22].mxu0 %vm223_vm0, %v11350_v17 }
  0x63   : > { %9001 = vmatprep.mubr.msk.f32.mxu0 %vm223_vm0, %v11352_v18 }
  0x66   : > { %9002 = vmatmul.mubr.msk.f32.gmra.mrb[24].mxu0 %vm223_vm0, %v11358_v19  ;;  %v1498_v19 = vld [vmem:[%s13374_s1 + $0xf8] sm:$0xff] }
  0x67   : > { %9004 = vmatprep.mubr.msk.f32.mxu0 %vm223_vm0, %v11360_v20  ;;  %v11560_v20 = vld [vmem:[#allocation2 + $0x32] sm:$0xff] }
  0x68   : > { %13509 = vst [vmem:[#allocation14_spill] sm:$0xff] %v11560_v20 }
  0x6a   : > { %9005 = vmatmul.mubr.msk.f32.gmra.mrb[26].mxu0 %vm223_vm0, %v11366_v21  ;;  %v1496_v21 = vld [vmem:[%s13374_s1 + $0xe8] sm:$0xff] }
  0x6b   : > { %9007 = vmatprep.mubr.msk.f32.mxu0 %vm223_vm0, %v11368_v22  ;;  %v1495_v22 = vld [vmem:[%s13374_s1 + $0xe0] sm:$0xff] }
  0x6e   : > { %9008 = vmatmul.mubr.msk.f32.gmra.mrb[28].mxu0 %vm223_vm0, %v11374_v23 }
  0x6f   : > { %9010 = vmatprep.mubr.msk.f32.mxu0 %vm223_vm0, %v11376_v24  ;;  %v11546_v24 = vld [vmem:[#allocation2 + $0x1a] sm:$0xff] }
  0x70   : > { %13508 = vst [vmem:[#allocation13_spill] sm:$0xff] %v11546_v24 }
  0x72   : > { %9011 = vmatmul.mubr.msk.f32.gmra.mrb[30].mxu0 %vm223_vm0, %v11382_v25  ;;  %v1067_v25 = vld [vmem:[#allocation2 + $0xa] sm:$0xff] }
  0x73   : > { %9029 = vmatprep.mubr.msk.f32.mxu0 %vm223_vm0, %v344_v26  ;;  %v11493_v26 = vld [vmem:[#allocation2 + $0x108] sm:$0xff] }
  0x76   : > { %9030 = vmatmul.mubr.msk.f32.vlgmr.msra.gmra.mrb[0].mxu0 %vm223_vm0, %v345_v29  ;;  %v11507_v29 = vld [vmem:[#allocation2 + $0x128] sm:$0xff] }
  0x77   : > { %10136 = vmatpush3.bf16.msra.mxu0 %v10133_v2  ;;  %9032 = vmatprep.mubr.msk.f32.mxu0 %vm223_vm0, %v11393_v30  ;;  %v11491_v2 = vld [vmem:[#allocation2 + $0xf8] sm:$0xff] }
  0x78   : > { %10138 = vmatprep.subr.bf16.mxu0 %v10137_v31 }
  0x7a   : > { %9033 = vmatmul.mubr.msk.f32.gmra.mrb[2].mxu0 %vm223_vm0, %v11404_v34 }
  0x7b   : > { %9035 = vmatprep.mubr.msk.f32.mxu0 %vm223_vm0, %v11406_v35  ;;  %10140 = vmatpush3.bf16.msra.mxu0 %v10137_v31  ;;  %v11509_v31 = vld [vmem:[#allocation2 + $0x138] sm:$0xff] }
  0x7c   : > { %10142 = vmatprep.subr.bf16.mxu0 %v10141_v36 }
  0x7e   : > { %9036 = vmatmul.mubr.msk.f32.gmra.mrb[4].mxu0 %vm223_vm0, %v11418_v39 }
  0x7f   : > { %9038 = vmatprep.mubr.msk.f32.mxu0 %vm223_vm0, %v11420_v40  ;;  %10144 = vmatpush3.bf16.msra.mxu0 %v10141_v36  ;;  %v309_v36 = vld [vmem:[%s11172_s9 + $0xf0] sm:$0xff] }
  0x80   : > { %10146 = vmatprep.subr.bf16.mxu0 %v10145_v41  ;;  %342 = vst.msk [vmem:[#allocation2 + $0x181] sm:$0xff] %vm223_vm0, %v309_v36  ;;  %v1493_v36 = vld [vmem:[%s13374_s1 + $0xd0] sm:$0xff] }
  0x81   : > { %v10153_v23 = vpack.c.bf16 %v1494_v37, %v1493_v36  ;;  %v10157_v36 = vpack.c.bf16 %v1496_v21, %v1495_v22  ;;  %v1497_v37 = vld [vmem:[%s13374_s1 + $0xf0] sm:$0xff]  ;;  %v1884_v22 = vld [vmem:[%s13374_s1 + $0x100] sm:$0xff] }
  0x82   : > { %9039 = vmatmul.mubr.msk.f32.gmra.mrb[6].mxu0 %vm223_vm0, %v11432_v45  ;;  %v10161_v21 = vpack.c.bf16 %v1498_v19, %v1497_v37  ;;  %v11594_v37 = vld [vmem:[#allocation2 + $0x6a] sm:$0xff] }
  0x83   : > { %9041 = vmatprep.mubr.msk.f32.mxu0 %vm223_vm0, %v11434_v46  ;;  %10148 = vmatpush3.bf16.msra.mxu0 %v10145_v41  ;;  %v11529_v41 = vld [vmem:[#allocation2 + $0x168] sm:$0xff]  ;;  %13511 = vst [vmem:[#allocation16_spill] sm:$0xff] %v11594_v37 }
  0x84   : > { %10150 = vmatprep.subr.bf16.mxu0 %v11436_v47 }
  0x86   : > { %9042 = vmatmul.mubr.msk.f32.gmra.mrb[8].mxu0 %vm223_vm0, %v11442_v50 }
  0x87   : > { %9044 = vmatprep.mubr.msk.f32.mxu0 %vm223_vm0, %v11444_v51 }
  0x8a   : > { %9045 = vmatmul.mubr.msk.f32.gmra.mrb[10].mxu0 %vm223_vm0, %v11451_v52 }
  0x8b   : > { %9047 = vmatprep.mubr.msk.f32.mxu0 %vm223_vm0, %v11453_v53 }
  0x8e   : > { %9048 = vmatmul.mubr.msk.f32.gmra.mrb[12].mxu0 %vm223_vm0, %v11459_v54 }
  0x8f   : > { %9050 = vmatprep.mubr.msk.f32.mxu0 %vm223_vm0, %v11461_v55 }
  0x92   : > { %9051 = vmatmul.mubr.msk.f32.gmra.mrb[14].mxu0 %vm223_vm0, %v11467_v57 }
  0x93   : > { %9053 = vmatprep.mubr.msk.f32.mxu0 %vm223_vm0, %v11469_v59 }
  0x96   : > { %9054 = vmatmul.mubr.msk.f32.gmra.mrb[16].mxu0 %vm223_vm0, %v11475_v60 }
  0x97   : > { %9056 = vmatprep.mubr.msk.f32.mxu0 %vm223_vm0, %v11477_v61 }
  0x9a   : > { %9057 = vmatmul.mubr.msk.f32.gmra.mrb[18].mxu0 %vm223_vm0, %v11483_v62 }
  0x9b   : > { %9059 = vmatprep.mubr.msk.f32.mxu0 %vm223_vm0, %v11485_v63 }
  0x9e   : > { %9060 = vmatmul.mubr.msk.f32.gmra.mrb[20].mxu0 %vm223_vm0, %v11491_v2 }
  0x9f   : > { %9062 = vmatprep.mubr.msk.f32.mxu0 %vm223_vm0, %v11493_v26 }
  0xa2   : > { %9063 = vmatmul.mubr.msk.f32.gmra.mrb[22].mxu0 %vm223_vm0, %v11499_v27 }
  0xa3   : > { %9065 = vmatprep.mubr.msk.f32.mxu0 %vm223_vm0, %v11501_v28 }
  0xa6   : > { %9066 = vmatmul.mubr.msk.f32.gmra.mrb[24].mxu0 %vm223_vm0, %v11507_v29 }
  0xa7   : > { %9068 = vmatprep.mubr.msk.f32.mxu0 %vm223_vm0, %v11509_v31 }
  0xaa   : > { %9069 = vmatmul.mubr.msk.f32.gmra.mrb[26].mxu0 %vm223_vm0, %v11515_v32 }
  0xab   : > { %9071 = vmatprep.mubr.msk.f32.mxu0 %vm223_vm0, %v11517_v33 }
  0xae   : > { %9072 = vmatmul.mubr.msk.f32.gmra.mrb[28].mxu0 %vm223_vm0, %v11527_v38 }
  0xaf   : > { %9074 = vmatprep.mubr.msk.f32.mxu0 %vm223_vm0, %v11529_v41 }
  0xb2   : > { %9075 = vmatmul.mubr.msk.f32.gmra.mrb[30].mxu0 %vm223_vm0, %v11535_v42 }
  0xb3   : > { %9093 = vmatprep.mubr.msk.f32.mxu0 %vm223_vm0, %v1066_v43  ;;  %v11558_v43 = vld [vmem:[#allocation2 + $0x22] sm:$0xff] }
  0xb6   : > { %9094 = vmatmul.mubr.msk.f32.vlgmr.msra.gmra.mrb[0].mxu0 %vm223_vm0, %v1067_v25  ;;  %v11572_v25 = vld [vmem:[#allocation2 + $0x3a] sm:$0xff] }
  0xb7   : > { %10152 = vmatpush3.bf16.msra.mxu0 %v11436_v47  ;;  %9096 = vmatprep.mubr.msk.f32.mxu0 %vm223_vm0, %v11546_v24  ;;  %13510 = vst [vmem:[#allocation15_spill] sm:$0xff] %v11572_v25  ;;  %v11574_v47 = vld [vmem:[#allocation2 + $0x4a] sm:$0xff] }
  0xb8   : > { %10154 = vmatprep.subr.bf16.mxu0 %v10153_v23  ;;  %v1885_v24 = vld [vmem:[%s13374_s1 + $0x108] sm:$0xff] }
  0xb9   : > { %v10165_v19 = vpack.c.bf16 %v1885_v24, %v1884_v22  ;;  %v11604_v24 = vld [vmem:[#allocation2 + $0x92] sm:$0xff]  ;;  %v11612_v22 = vld [vmem:[#allocation2 + $0xaa] sm:$0xff] }
  0xba   : > { %9097 = vmatmul.mubr.msk.f32.gmra.mrb[2].mxu0 %vm223_vm0, %v11558_v43  ;;  %13514 = vst [vmem:[#allocation19_spill] sm:$0xff] %v11604_v24  ;;  %13516 = vst [vmem:[#allocation21_spill] sm:$0xff] %v11612_v22 }
  0xbb   : > { %9099 = vmatprep.mubr.msk.f32.mxu0 %vm223_vm0, %v11560_v20  ;;  %10156 = vmatpush3.bf16.msra.mxu0 %v10153_v23  ;;  %v11586_v20 = vld [vmem:[#allocation2 + $0x52] sm:$0xff]  ;;  %v11588_v23 = vld [vmem:[#allocation2 + $0x62] sm:$0xff] }
  0xbc   : > { %10158 = vmatprep.subr.bf16.mxu0 %v10157_v36 }
  0xbe   : > { %9100 = vmatmul.mubr.msk.f32.gmra.mrb[4].mxu0 %vm223_vm0, %v11572_v25  ;;  %v11596_v25 = vld [vmem:[#allocation2 + $0x7a] sm:$0xff] }
  0xbf   : > { %9102 = vmatprep.mubr.msk.f32.mxu0 %vm223_vm0, %v11574_v47  ;;  %10160 = vmatpush3.bf16.msra.mxu0 %v10157_v36  ;;  %13512 = vst [vmem:[#allocation17_spill] sm:$0xff] %v11596_v25  ;;  %v11602_v36 = vld [vmem:[#allocation2 + $0x82] sm:$0xff] }
  0xc0   : > { %10162 = vmatprep.subr.bf16.mxu0 %v10161_v21  ;;  %13513 = vst [vmem:[#allocation18_spill] sm:$0xff] %v11602_v36 }
  0xc2   : > { %9103 = vmatmul.mubr.msk.f32.gmra.mrb[6].mxu0 %vm223_vm0, %v11586_v20 }
  0xc3   : > { %9105 = vmatprep.mubr.msk.f32.mxu0 %vm223_vm0, %v11588_v23  ;;  %10164 = vmatpush3.bf16.msra.mxu0 %v10161_v21  ;;  %v11610_v21 = vld [vmem:[#allocation2 + $0x9a] sm:$0xff] }
  0xc4   : > { %10166 = vmatprep.subr.bf16.mxu0 %v10165_v19  ;;  %13515 = vst [vmem:[#allocation20_spill] sm:$0xff] %v11610_v21 }
  0xc6   : > { %9106 = vmatmul.mubr.msk.f32.gmra.mrb[8].mxu0 %vm223_vm0, %v11594_v37  ;;  %v11620_v37 = vld [vmem:[#allocation2 + $0xc2] sm:$0xff] }
  0xc7   : > { %9108 = vmatprep.mubr.msk.f32.mxu0 %vm223_vm0, %v11596_v25  ;;  %v11618_v25 = vld [vmem:[#allocation2 + $0xb2] sm:$0xff]  ;;  %13518 = vst [vmem:[#allocation23_spill] sm:$0xff] %v11620_v37 }
  0xc8   : > { %13517 = vst [vmem:[#allocation22_spill] sm:$0xff] %v11618_v25 }
  0xca   : > { %9109 = vmatmul.mubr.msk.f32.gmra.mrb[10].mxu0 %vm223_vm0, %v11602_v36  ;;  %v11628_v36 = vld [vmem:[#allocation2 + $0xda] sm:$0xff] }
  0xcb   : > { %9111 = vmatprep.mubr.msk.f32.mxu0 %vm223_vm0, %v11604_v24  ;;  %v11626_v24 = vld [vmem:[#allocation2 + $0xca] sm:$0xff]  ;;  %13520 = vst [vmem:[#allocation25_spill] sm:$0xff] %v11628_v36 }
  0xcc   : > { %13519 = vst [vmem:[#allocation24_spill] sm:$0xff] %v11626_v24 }
  0xce   : > { %9112 = vmatmul.mubr.msk.f32.gmra.mrb[12].mxu0 %vm223_vm0, %v11610_v21  ;;  %v11636_v21 = vld [vmem:[#allocation2 + $0xf2] sm:$0xff] }
  0xcf   : > { %9114 = vmatprep.mubr.msk.f32.mxu0 %vm223_vm0, %v11612_v22  ;;  %v11634_v22 = vld [vmem:[#allocation2 + $0xe2] sm:$0xff]  ;;  %13522 = vst [vmem:[#allocation27_spill] sm:$0xff] %v11636_v21 }
  0xd0   : > { %13521 = vst [vmem:[#allocation26_spill] sm:$0xff] %v11634_v22 }
  0xd2   : > { %9115 = vmatmul.mubr.msk.f32.gmra.mrb[14].mxu0 %vm223_vm0, %v11618_v25  ;;  %v11644_v25 = vld [vmem:[#allocation2 + $0x10a] sm:$0xff] }
  0xd3   : > { %9117 = vmatprep.mubr.msk.f32.mxu0 %vm223_vm0, %v11620_v37  ;;  %v11642_v37 = vld [vmem:[#allocation2 + $0xfa] sm:$0xff]  ;;  %13524 = vst [vmem:[#allocation29_spill] sm:$0xff] %v11644_v25 }
  0xd4   : > { %13523 = vst [vmem:[#allocation28_spill] sm:$0xff] %v11642_v37 }
  0xd6   : > { %9118 = vmatmul.mubr.msk.f32.gmra.mrb[16].mxu0 %vm223_vm0, %v11626_v24  ;;  %v11652_v24 = vld [vmem:[#allocation2 + $0x122] sm:$0xff] }
  0xd7   : > { %9120 = vmatprep.mubr.msk.f32.mxu0 %vm223_vm0, %v11628_v36  ;;  %v11650_v36 = vld [vmem:[#allocation2 + $0x112] sm:$0xff]  ;;  %13526 = vst [vmem:[#allocation31_spill] sm:$0xff] %v11652_v24 }
  0xd8   : > { %13525 = vst [vmem:[#allocation30_spill] sm:$0xff] %v11650_v36 }
  0xda   : > { %9121 = vmatmul.mubr.msk.f32.gmra.mrb[18].mxu0 %vm223_vm0, %v11634_v22  ;;  %v11660_v22 = vld [vmem:[#allocation2 + $0x13a] sm:$0xff] }
  0xdb   : > { %9123 = vmatprep.mubr.msk.f32.mxu0 %vm223_vm0, %v11636_v21  ;;  %v11658_v21 = vld [vmem:[#allocation2 + $0x12a] sm:$0xff]  ;;  %13528 = vst [vmem:[#allocation33_spill] sm:$0xff] %v11660_v22 }
  0xdc   : > { %13527 = vst [vmem:[#allocation32_spill] sm:$0xff] %v11658_v21 }
  0xde   : > { %9124 = vmatmul.mubr.msk.f32.gmra.mrb[20].mxu0 %vm223_vm0, %v11642_v37  ;;  %v11668_v37 = vld [vmem:[#allocation2 + $0x152] sm:$0xff] }
  0xdf   : > { %9126 = vmatprep.mubr.msk.f32.mxu0 %vm223_vm0, %v11644_v25  ;;  %v11666_v25 = vld [vmem:[#allocation2 + $0x142] sm:$0xff]  ;;  %13530 = vst [vmem:[#allocation35_spill] sm:$0xff] %v11668_v37 }
  0xe0   : > { %13529 = vst [vmem:[#allocation34_spill] sm:$0xff] %v11666_v25 }
  0xe2   : > { %9127 = vmatmul.mubr.msk.f32.gmra.mrb[22].mxu0 %vm223_vm0, %v11650_v36  ;;  %v11676_v36 = vld [vmem:[#allocation2 + $0x16a] sm:$0xff] }
  0xe3   : > { %9129 = vmatprep.mubr.msk.f32.mxu0 %vm223_vm0, %v11652_v24  ;;  %v11674_v24 = vld [vmem:[#allocation2 + $0x15a] sm:$0xff]  ;;  %13532 = vst [vmem:[#allocation37_spill] sm:$0xff] %v11676_v36 }
  0xe4   : > { %13531 = vst [vmem:[#allocation36_spill] sm:$0xff] %v11674_v24 }
  0xe6   : > { %9130 = vmatmul.mubr.msk.f32.gmra.mrb[24].mxu0 %vm223_vm0, %v11658_v21  ;;  %v1886_v21 = vld [vmem:[%s13374_s1 + $0x110] sm:$0xff] }
  0xe7   : > { %9132 = vmatprep.mubr.msk.f32.mxu0 %vm223_vm0, %v11660_v22  ;;  %v11682_v22 = vld [vmem:[#allocation2 + $0x172] sm:$0xff] }
  0xe8   : > { %13533 = vst [vmem:[#allocation38_spill] sm:$0xff] %v11682_v22 }
  0xea   : > { %9133 = vmatmul.mubr.msk.f32.gmra.mrb[26].mxu0 %vm223_vm0, %v11666_v25  ;;  %v1889_v25 = vld [vmem:[%s13374_s1 + $0x128] sm:$0xff] }
  0xeb   : > { %9135 = vmatprep.mubr.msk.f32.mxu0 %vm223_vm0, %v11668_v37  ;;  %v1887_v37 = vld [vmem:[%s13374_s1 + $0x118] sm:$0xff] }
  0xee   : > { %9136 = vmatmul.mubr.msk.f32.gmra.mrb[28].mxu0 %vm223_vm0, %v11674_v24  ;;  %v10169_v24 = vpack.c.bf16 %v1887_v37, %v1886_v21  ;;  %v1891_v37 = vld [vmem:[%s13374_s1 + $0x138] sm:$0xff]  ;;  %v11774_v21 = vld [vmem:[#allocation2 + $0x188] sm:$0xff] }
  0xef   : > { %9138 = vmatprep.mubr.msk.f32.mxu0 %vm223_vm0, %v11676_v36  ;;  %v1888_v36 = vld [vmem:[%s13374_s1 + $0x120] sm:$0xff] }
  0xf2   : > { %9139 = vmatmul.mubr.msk.f32.gmra.mrb[30].mxu0 %vm223_vm0, %v11682_v22  ;;  %v10173_v22 = vpack.c.bf16 %v1889_v25, %v1888_v36  ;;  %v2277_v25 = vld [vmem:[%s13374_s1 + $0x140] sm:$0xff] }
  0xf3   : > { %9157 = vmatprep.mubr.msk.f32.mxu0 %vm223_vm0, %v11393_v30  ;;  %v1890_v30 = vld [vmem:[%s13374_s1 + $0x130] sm:$0xff] }
  0xf6   : > { %9158 = vmatmul.mubr.msk.f32.vlgmr.msra.gmra.mrb[0].mxu0 %vm223_vm0, %v11404_v34  ;;  %v10177_v34 = vpack.c.bf16 %v1891_v37, %v1890_v30  ;;  %v2280_v30 = vld [vmem:[%s13374_s1 + $0x158] sm:$0xff] }
  0xf7   : > { %10168 = vmatpush3.bf16.msra.mxu0 %v10165_v19  ;;  %9160 = vmatprep.mubr.msk.f32.mxu0 %vm223_vm0, %v11406_v35  ;;  %v2278_v19 = vld [vmem:[%s13374_s1 + $0x148] sm:$0xff] }
  0xf8   : > { %10170 = vmatprep.subr.bf16.mxu0 %v10169_v24  ;;  %v10181_v36 = vpack.c.bf16 %v2278_v19, %v2277_v25  ;;  %v2282_v25 = vld [vmem:[%s13374_s1 + $0x168] sm:$0xff] }
  0xfa   : > { %9161 = vmatmul.mubr.msk.f32.gmra.mrb[2].mxu0 %vm223_vm0, %v11418_v39 }
  0xfb   : > { %9163 = vmatprep.mubr.msk.f32.mxu0 %vm223_vm0, %v11420_v40  ;;  %10172 = vmatpush3.bf16.msra.mxu0 %v10169_v24  ;;  %v11768_v24 = vld [vmem:[#allocation2 + $0x180] sm:$0xff] }
  0xfc   : > { %10174 = vmatprep.subr.bf16.mxu0 %v10173_v22 }
  0xfe   : > { %9164 = vmatmul.mubr.msk.f32.gmra.mrb[4].mxu0 %vm223_vm0, %v11432_v45 }
  0xff   : > { %9166 = vmatprep.mubr.msk.f32.mxu0 %vm223_vm0, %v11434_v46  ;;  %10176 = vmatpush3.bf16.msra.mxu0 %v10173_v22  ;;  %v2279_v22 = vld [vmem:[%s13374_s1 + $0x150] sm:$0xff] }
 0x100   : > { %10178 = vmatprep.subr.bf16.mxu0 %v10177_v34  ;;  %v10185_v37 = vpack.c.bf16 %v2280_v30, %v2279_v22  ;;  %v2284_v22 = vld [vmem:[%s13374_s1 + $0x178] sm:$0xff] }
 0x101   : > { %v13543_v30 = vld [vmem:[#allocation15_spill] sm:$0xff] }
 0x102   : > { %9167 = vmatmul.mubr.msk.f32.gmra.mrb[6].mxu0 %vm223_vm0, %v11442_v50 }
 0x103   : > { %9169 = vmatprep.mubr.msk.f32.mxu0 %vm223_vm0, %v11444_v51  ;;  %10180 = vmatpush3.bf16.msra.mxu0 %v10177_v34  ;;  %v2281_v34 = vld [vmem:[%s13374_s1 + $0x160] sm:$0xff] }
 0x104   : > { %10182 = vmatprep.subr.bf16.mxu0 %v10181_v36  ;;  %v10189_v19 = vpack.c.bf16 %v2282_v25, %v2281_v34  ;;  %v3065_v34 = vld [vmem:[%s13374_s1 + $0x1c8] sm:$0xff] }
 0x106   : > { %9170 = vmatmul.mubr.msk.f32.gmra.mrb[8].mxu0 %vm223_vm0, %v11451_v52 }
 0x107   : > { %9172 = vmatprep.mubr.msk.f32.mxu0 %vm223_vm0, %v11453_v53 }
 0x10a   : > { %9173 = vmatmul.mubr.msk.f32.gmra.mrb[10].mxu0 %vm223_vm0, %v11459_v54 }
 0x10b   : > { %9175 = vmatprep.mubr.msk.f32.mxu0 %vm223_vm0, %v11461_v55 }
 0x10e   : > { %9176 = vmatmul.mubr.msk.f32.gmra.mrb[12].mxu0 %vm223_vm0, %v11467_v57 }
 0x10f   : > { %9178 = vmatprep.mubr.msk.f32.mxu0 %vm223_vm0, %v11469_v59 }
 0x112   : > { %9179 = vmatmul.mubr.msk.f32.gmra.mrb[14].mxu0 %vm223_vm0, %v11475_v60 }
 0x113   : > { %9181 = vmatprep.mubr.msk.f32.mxu0 %vm223_vm0, %v11477_v61 }
 0x116   : > { %9182 = vmatmul.mubr.msk.f32.gmra.mrb[16].mxu0 %vm223_vm0, %v11483_v62 }
 0x117   : > { %9184 = vmatprep.mubr.msk.f32.mxu0 %vm223_vm0, %v11485_v63 }
 0x11a   : > { %9185 = vmatmul.mubr.msk.f32.gmra.mrb[18].mxu0 %vm223_vm0, %v11491_v2 }
 0x11b   : > { %9187 = vmatprep.mubr.msk.f32.mxu0 %vm223_vm0, %v11493_v26 }
 0x11e   : > { %9188 = vmatmul.mubr.msk.f32.gmra.mrb[20].mxu0 %vm223_vm0, %v11499_v27 }
 0x11f   : > { %9190 = vmatprep.mubr.msk.f32.mxu0 %vm223_vm0, %v11501_v28 }
 0x122   : > { %9191 = vmatmul.mubr.msk.f32.gmra.mrb[22].mxu0 %vm223_vm0, %v11507_v29 }
 0x123   : > { %9193 = vmatprep.mubr.msk.f32.mxu0 %vm223_vm0, %v11509_v31 }
 0x126   : > { %9194 = vmatmul.mubr.msk.f32.gmra.mrb[24].mxu0 %vm223_vm0, %v11515_v32 }
 0x127   : > { %9196 = vmatprep.mubr.msk.f32.mxu0 %vm223_vm0, %v11517_v33 }
 0x12a   : > { %9197 = vmatmul.mubr.msk.f32.gmra.mrb[26].mxu0 %vm223_vm0, %v11527_v38 }
 0x12b   : > { %9199 = vmatprep.mubr.msk.f32.mxu0 %vm223_vm0, %v11529_v41 }
 0x12e   : > { %9200 = vmatmul.mubr.msk.f32.gmra.mrb[28].mxu0 %vm223_vm0, %v11535_v42 }
 0x12f   : > { %9202 = vmatprep.mubr.msk.f32.mxu0 %vm223_vm0, %v11768_v24 }
 0x132   : > { %9203 = vmatmul.mubr.msk.f32.gmra.mrb[30].mxu0 %vm223_vm0, %v11774_v21 }
 0x133   : > { %9221 = vmatprep.mubr.msk.f32.mxu0 %vm223_vm0, %v11233_v44  ;;  %v2283_v44 = vld [vmem:[%s13374_s1 + $0x170] sm:$0xff] }
 0x136   : > { %9222 = vmatmul.mubr.msk.f32.vlgmr.msra.gmra.mrb[0].mxu0 %vm223_vm0, %v11246_v48  ;;  %v10193_v48 = vpack.c.bf16 %v2284_v22, %v2283_v44  ;;  %v13545_v44 = vld [vmem:[#allocation17_spill] sm:$0xff]  ;;  %v13546_v22 = vld [vmem:[#allocation18_spill] sm:$0xff] }
 0x137   : > { %10184 = vmatpush3.bf16.msra.mxu0 %v10181_v36  ;;  %9224 = vmatprep.mubr.msk.f32.mxu0 %vm223_vm0, %v11248_v49  ;;  %v2671_v49 = vld [vmem:[%s13374_s1 + $0x180] sm:$0xff]  ;;  %v2672_v36 = vld [vmem:[%s13374_s1 + $0x188] sm:$0xff] }
 0x138   : > { %10186 = vmatprep.subr.bf16.mxu0 %v10185_v37 }
 0x13a   : > { %9225 = vmatmul.mubr.msk.f32.gmra.mrb[2].mxu0 %vm223_vm0, %v11263_v56  ;;  %v10197_v56 = vpack.c.bf16 %v2672_v36, %v2671_v49  ;;  %v13548_v49 = vld [vmem:[#allocation20_spill] sm:$0xff]  ;;  %v13549_v36 = vld [vmem:[#allocation21_spill] sm:$0xff] }
 0x13b   : > { %9227 = vmatprep.mubr.msk.f32.mxu0 %vm223_vm0, %v11269_v58  ;;  %10188 = vmatpush3.bf16.msra.mxu0 %v10185_v37  ;;  %v13534_v58 = vld [vmem:[#allocation6_spill] sm:$0xff]  ;;  %v3064_v37 = vld [vmem:[%s13374_s1 + $0x1c0] sm:$0xff] }
 0x13c   : > { %10190 = vmatprep.subr.bf16.mxu0 %v10189_v19  ;;  %v10213_v25 = vpack.c.bf16 %v3065_v34, %v3064_v37  ;;  %v11958_v37 = vld [vmem:[#allocation2 + $0x18a] sm:$0xff] }
 0x13d   : > { %v3066_v34 = vld [vmem:[%s13374_s1 + $0x1d0] sm:$0xff] }
 0x13e   : > { %9228 = vmatmul.mubr.msk.f32.gmra.mrb[4].mxu0 %vm223_vm0, %v11286_v0  ;;  %v13535_v0 = vld [vmem:[#allocation7_spill] sm:$0xff] }
 0x13f   : > { %9230 = vmatprep.mubr.msk.f32.mxu0 %vm223_vm0, %v11288_v1  ;;  %10192 = vmatpush3.bf16.msra.mxu0 %v10189_v19  ;;  %v13536_v1 = vld [vmem:[#allocation8_spill] sm:$0xff]  ;;  %13568 = vst [vmem:[#allocation7_spill] sm:$0xff] %v11958_v37 }
 0x140   : > { %10194 = vmatprep.subr.bf16.mxu0 %v10193_v48  ;;  %v13544_v19 = vld [vmem:[#allocation16_spill] sm:$0xff] }
 0x142   : > { %9231 = vmatmul.mubr.msk.f32.gmra.mrb[6].mxu0 %vm223_vm0, %v11294_v3  ;;  %v13537_v3 = vld [vmem:[#allocation9_spill] sm:$0xff] }
 0x143   : > { %9233 = vmatprep.mubr.msk.f32.mxu0 %vm223_vm0, %v11296_v4  ;;  %10196 = vmatpush3.bf16.msra.mxu0 %v10193_v48  ;;  %v13538_v4 = vld [vmem:[#allocation10_spill] sm:$0xff]  ;;  %v13547_v48 = vld [vmem:[#allocation19_spill] sm:$0xff] }
 0x144   : > { %10198 = vmatprep.subr.bf16.mxu0 %v10197_v56 }
 0x146   : > { %9234 = vmatmul.mubr.msk.f32.gmra.mrb[8].mxu0 %vm223_vm0, %v11302_v5  ;;  %v13539_v5 = vld [vmem:[#allocation11_spill] sm:$0xff] }
 0x147   : > { %9236 = vmatprep.mubr.msk.f32.mxu0 %vm223_vm0, %v11304_v6  ;;  %v11860_v6 = vld [vmem:[#allocation2 + $0x181] sm:$0xff] }
 0x14a   : > { %9237 = vmatmul.mubr.msk.f32.gmra.mrb[10].mxu0 %vm223_vm0, %v11310_v7  ;;  %v13540_v7 = vld [vmem:[#allocation12_spill] sm:$0xff] }
 0x14b   : > { %9239 = vmatprep.mubr.msk.f32.mxu0 %vm223_vm0, %v11312_v8  ;;  %v11866_v8 = vld [vmem:[#allocation2 + $0x189] sm:$0xff] }
 0x14e   : > { %9240 = vmatmul.mubr.msk.f32.gmra.mrb[12].mxu0 %vm223_vm0, %v11318_v9  ;;  %v2673_v9 = vld [vmem:[%s13374_s1 + $0x190] sm:$0xff] }
 0x14f   : > { %9242 = vmatprep.mubr.msk.f32.mxu0 %vm223_vm0, %v11320_v10  ;;  %v2674_v10 = vld [vmem:[%s13374_s1 + $0x198] sm:$0xff] }
 0x152   : > { %9243 = vmatmul.mubr.msk.f32.gmra.mrb[14].mxu0 %vm223_vm0, %v11326_v11  ;;  %v13541_v11 = vld [vmem:[#allocation13_spill] sm:$0xff] }
 0x153   : > { %9245 = vmatprep.mubr.msk.f32.mxu0 %vm223_vm0, %v11328_v12  ;;  %v10201_v12 = vpack.c.bf16 %v2674_v10, %v2673_v9  ;;  %v13558_v9 = vld [vmem:[#allocation30_spill] sm:$0xff]  ;;  %v13559_v10 = vld [vmem:[#allocation31_spill] sm:$0xff] }
 0x156   : > { %9246 = vmatmul.mubr.msk.f32.gmra.mrb[16].mxu0 %vm223_vm0, %v11334_v13  ;;  %v2675_v13 = vld [vmem:[%s13374_s1 + $0x1a0] sm:$0xff] }
 0x157   : > { %9248 = vmatprep.mubr.msk.f32.mxu0 %vm223_vm0, %v11336_v14  ;;  %v2676_v14 = vld [vmem:[%s13374_s1 + $0x1a8] sm:$0xff] }
 0x15a   : > { %9249 = vmatmul.mubr.msk.f32.gmra.mrb[18].mxu0 %vm223_vm0, %v11342_v15  ;;  %v13542_v15 = vld [vmem:[#allocation14_spill] sm:$0xff] }
 0x15b   : > { %9251 = vmatprep.mubr.msk.f32.mxu0 %vm223_vm0, %v11344_v16  ;;  %v10205_v16 = vpack.c.bf16 %v2676_v14, %v2675_v13  ;;  %v13562_v13 = vld [vmem:[#allocation34_spill] sm:$0xff]  ;;  %v13563_v14 = vld [vmem:[#allocation35_spill] sm:$0xff] }
 0x15e   : > { %9252 = vmatmul.mubr.msk.f32.gmra.mrb[20].mxu0 %vm223_vm0, %v11350_v17  ;;  %v2677_v17 = vld [vmem:[%s13374_s1 + $0x1b0] sm:$0xff] }
 0x15f   : > { %9254 = vmatprep.mubr.msk.f32.mxu0 %vm223_vm0, %v11352_v18  ;;  %v2678_v18 = vld [vmem:[%s13374_s1 + $0x1b8] sm:$0xff] }
 0x162   : > { %9255 = vmatmul.mubr.msk.f32.gmra.mrb[22].mxu0 %vm223_vm0, %v13534_v58  ;;  %v13551_v58 = vld [vmem:[#allocation23_spill] sm:$0xff] }
 0x163   : > { %9257 = vmatprep.mubr.msk.f32.mxu0 %vm223_vm0, %v13535_v0  ;;  %v13552_v0 = vld [vmem:[#allocation24_spill] sm:$0xff] }
 0x166   : > { %9258 = vmatmul.mubr.msk.f32.gmra.mrb[24].mxu0 %vm223_vm0, %v13536_v1  ;;  %v13553_v1 = vld [vmem:[#allocation25_spill] sm:$0xff] }
 0x167   : > { %9260 = vmatprep.mubr.msk.f32.mxu0 %vm223_vm0, %v13537_v3  ;;  %v13554_v3 = vld [vmem:[#allocation26_spill] sm:$0xff] }
 0x16a   : > { %9261 = vmatmul.mubr.msk.f32.gmra.mrb[26].mxu0 %vm223_vm0, %v13538_v4  ;;  %v13555_v4 = vld [vmem:[#allocation27_spill] sm:$0xff] }
 0x16b   : > { %9263 = vmatprep.mubr.msk.f32.mxu0 %vm223_vm0, %v13539_v5  ;;  %v13556_v5 = vld [vmem:[#allocation28_spill] sm:$0xff] }
 0x16e   : > { %9264 = vmatmul.mubr.msk.f32.gmra.mrb[28].mxu0 %vm223_vm0, %v13540_v7  ;;  %v13557_v7 = vld [vmem:[#allocation29_spill] sm:$0xff] }
 0x16f   : > { %9266 = vmatprep.mubr.msk.f32.mxu0 %vm223_vm0, %v11860_v6 }
 0x172   : > { %9267 = vmatmul.mubr.msk.f32.gmra.mrb[30].mxu0 %vm223_vm0, %v11866_v8 }
 0x173   : > { %9285 = vmatprep.mubr.msk.f32.mxu0 %vm223_vm0, %v13541_v11  ;;  %v13560_v11 = vld [vmem:[#allocation32_spill] sm:$0xff] }
 0x176   : > { %9286 = vmatmul.mubr.msk.f32.vlgmr.msra.gmra.mrb[0].mxu0 %vm223_vm0, %v11558_v43  ;;  %v10209_v43 = vpack.c.bf16 %v2678_v18, %v2677_v17  ;;  %v13565_v17 = vld [vmem:[#allocation37_spill] sm:$0xff] }
 0x177   : > { %10200 = vmatpush3.bf16.msra.mxu0 %v10197_v56  ;;  %9288 = vmatprep.mubr.msk.f32.mxu0 %vm223_vm0, %v13542_v15  ;;  %v13550_v56 = vld [vmem:[#allocation22_spill] sm:$0xff]  ;;  %v11952_v18 = vld [vmem:[#allocation2 + $0x182] sm:$0xff] }
 0x178   : > { %10202 = vmatprep.subr.bf16.mxu0 %v10201_v12  ;;  %13566 = vst [vmem:[#allocation6_spill] sm:$0xff] %v11952_v18 }
 0x17a   : > { %9289 = vmatmul.mubr.msk.f32.gmra.mrb[2].mxu0 %vm223_vm0, %v13543_v30 }
 0x17b   : > { %9291 = vmatprep.mubr.msk.f32.mxu0 %vm223_vm0, %v11574_v47  ;;  %10204 = vmatpush3.bf16.msra.mxu0 %v10201_v12  ;;  %v13561_v12 = vld [vmem:[#allocation33_spill] sm:$0xff] }
 0x17c   : > { %10206 = vmatprep.subr.bf16.mxu0 %v10205_v16 }
 0x17e   : > { %9292 = vmatmul.mubr.msk.f32.gmra.mrb[4].mxu0 %vm223_vm0, %v11586_v20 }
 0x17f   : > { %9294 = vmatprep.mubr.msk.f32.mxu0 %vm223_vm0, %v11588_v23  ;;  %10208 = vmatpush3.bf16.msra.mxu0 %v10205_v16  ;;  %v13564_v16 = vld [vmem:[#allocation36_spill] sm:$0xff] }
 0x180   : > { %10210 = vmatprep.subr.bf16.mxu0 %v10209_v43 }
 0x182   : > { %9295 = vmatmul.mubr.msk.f32.gmra.mrb[6].mxu0 %vm223_vm0, %v13544_v19 }
 0x183   : > { %9297 = vmatprep.mubr.msk.f32.mxu0 %vm223_vm0, %v13545_v44  ;;  %10212 = vmatpush3.bf16.msra.mxu0 %v10209_v43  ;;  %v13567_v43 = vld [vmem:[#allocation38_spill] sm:$0xff] }
 0x184   : > { %10214 = vmatprep.subr.bf16.mxu0 %v10213_v25 }
 0x186   : > { %9298 = vmatmul.mubr.msk.f32.gmra.mrb[8].mxu0 %vm223_vm0, %v13546_v22 }
 0x187   : > { %9300 = vmatprep.mubr.msk.f32.mxu0 %vm223_vm0, %v13547_v48 }
 0x18a   : > { %9301 = vmatmul.mubr.msk.f32.gmra.mrb[10].mxu0 %vm223_vm0, %v13548_v49 }
 0x18b   : > { %9303 = vmatprep.mubr.msk.f32.mxu0 %vm223_vm0, %v13549_v36 }
 0x18e   : > { %9304 = vmatmul.mubr.msk.f32.gmra.mrb[12].mxu0 %vm223_vm0, %v13550_v56 }
 0x18f   : > { %9306 = vmatprep.mubr.msk.f32.mxu0 %vm223_vm0, %v13551_v58 }
 0x192   : > { %9307 = vmatmul.mubr.msk.f32.gmra.mrb[14].mxu0 %vm223_vm0, %v13552_v0 }
 0x193   : > { %9309 = vmatprep.mubr.msk.f32.mxu0 %vm223_vm0, %v13553_v1 }
 0x196   : > { %9310 = vmatmul.mubr.msk.f32.gmra.mrb[16].mxu0 %vm223_vm0, %v13554_v3 }
 0x197   : > { %9312 = vmatprep.mubr.msk.f32.mxu0 %vm223_vm0, %v13555_v4 }
 0x19a   : > { %9313 = vmatmul.mubr.msk.f32.gmra.mrb[18].mxu0 %vm223_vm0, %v13556_v5 }
 0x19b   : > { %9315 = vmatprep.mubr.msk.f32.mxu0 %vm223_vm0, %v13557_v7 }
 0x19e   : > { %9316 = vmatmul.mubr.msk.f32.gmra.mrb[20].mxu0 %vm223_vm0, %v13558_v9 }
 0x19f   : > { %9318 = vmatprep.mubr.msk.f32.mxu0 %vm223_vm0, %v13559_v10 }
 0x1a2   : > { %9319 = vmatmul.mubr.msk.f32.gmra.mrb[22].mxu0 %vm223_vm0, %v13560_v11 }
 0x1a3   : > { %9321 = vmatprep.mubr.msk.f32.mxu0 %vm223_vm0, %v13561_v12 }
 0x1a6   : > { %9322 = vmatmul.mubr.msk.f32.gmra.mrb[24].mxu0 %vm223_vm0, %v13562_v13 }
 0x1a7   : > { %9324 = vmatprep.mubr.msk.f32.mxu0 %vm223_vm0, %v13563_v14 }
 0x1aa   : > { %9325 = vmatmul.mubr.msk.f32.gmra.mrb[26].mxu0 %vm223_vm0, %v13564_v16  ;;  %v3067_v16 = vld [vmem:[%s13374_s1 + $0x1d8] sm:$0xff] }
 0x1ab   : > { %9327 = vmatprep.mubr.msk.f32.mxu0 %vm223_vm0, %v13565_v17  ;;  %v3069_v17 = vld [vmem:[%s13374_s1 + $0x1e8] sm:$0xff] }
 0x1ae   : > { %9328 = vmatmul.mubr.msk.f32.gmra.mrb[28].mxu0 %vm223_vm0, %v13567_v43  ;;  %v10217_v43 = vpack.c.bf16 %v3067_v16, %v3066_v34  ;;  %v3071_v16 = vld [vmem:[%s13374_s1 + $0x1f8] sm:$0xff]  ;;  %v3045_v34 = vld [vmem:[#allocation2 + $0xc9] sm:$0xff] }
 0x1af   : > { %9330 = vmatprep.mubr.msk.f32.mxu0 %vm223_vm0, %v11952_v18  ;;  %v3068_v18 = vld [vmem:[%s13374_s1 + $0x1e0] sm:$0xff] }
 0x1b2   : > { %9331 = vmatmul.mubr.msk.f32.gmra.mrb[30].mxu0 %vm223_vm0, %v11958_v37  ;;  %v10221_v37 = vpack.c.bf16 %v3069_v17, %v3068_v18  ;;  %v3041_v17 = vld [vmem:[#allocation2 + $0x99] sm:$0xff]  ;;  %v3042_v18 = vld [vmem:[#allocation2 + $0xa9] sm:$0xff] }
 0x1b3   : > { %9349 = vmatprep.mubr.msk.f32.mxu0 %vm223_vm0, %v11406_v35  ;;  %v3070_v35 = vld [vmem:[%s13374_s1 + $0x1f0] sm:$0xff] }
 0x1b6   : > { %9350 = vmatmul.mubr.msk.f32.vlgmr.msra.gmra.mrb[0].mxu0 %vm223_vm0, %v11418_v39  ;;  %v10225_v39 = vpack.c.bf16 %v3071_v16, %v3070_v35  ;;  %v3046_v35 = vld [vmem:[#allocation2 + $0xd9] sm:$0xff]  ;;  %v3047_v16 = vld [vmem:[#allocation2 + $0xe1] sm:$0xff] }
 0x1b7   : > { %10216 = vmatpush3.bf16.msra.mxu0 %v10213_v25  ;;  %9352 = vmatprep.mubr.msk.f32.mxu0 %vm223_vm0, %v11420_v40  ;;  %v3457_v40 = vld [vmem:[%s13374_s1 + $0x200] sm:$0xff]  ;;  %v3458_v25 = vld [vmem:[%s13374_s1 + $0x208] sm:$0xff] }
 0x1b8   : > { %10218 = vmatprep.subr.bf16.mxu0 %v10217_v43 }
 0x1ba   : > { %9353 = vmatmul.mubr.msk.f32.gmra.mrb[2].mxu0 %vm223_vm0, %v11432_v45  ;;  %v10229_v45 = vpack.c.bf16 %v3458_v25, %v3457_v40  ;;  %v3049_v40 = vld [vmem:[#allocation2 + $0xf9] sm:$0xff]  ;;  %v3050_v25 = vld [vmem:[#allocation2 + $0x109] sm:$0xff] }
 0x1bb   : > { %9355 = vmatprep.mubr.msk.f32.mxu0 %vm223_vm0, %v11434_v46  ;;  %10220 = vmatpush3.bf16.msra.mxu0 %v10217_v43  ;;  %v2669_v46 = vld [vmem:[#allocation2 + $0x198] sm:$0xff] }
 0x1bc   : > { %10222 = vmatprep.subr.bf16.mxu0 %v10221_v37  ;;  %v3043_v43 = vld [vmem:[#allocation2 + $0xb1] sm:$0xff] }
 0x1be   : > { %9356 = vmatmul.mubr.msk.f32.gmra.mrb[4].mxu0 %vm223_vm0, %v11442_v50  ;;  %v2670_v50 = vld [vmem:[#allocation2 + $0x1a0] sm:$0xff] }
 0x1bf   : > { %9358 = vmatprep.mubr.msk.f32.mxu0 %vm223_vm0, %v11444_v51  ;;  %10224 = vmatpush3.bf16.msra.mxu0 %v10221_v37  ;;  %v3032_v51 = vld [vmem:[#allocation2 + $0x31] sm:$0xff]  ;;  %v3044_v37 = vld [vmem:[#allocation2 + $0xc1] sm:$0xff] }
 0x1c0   : > { %10226 = vmatprep.subr.bf16.mxu0 %v10225_v39 }
 0x1c2   : > { %9359 = vmatmul.mubr.msk.f32.gmra.mrb[6].mxu0 %vm223_vm0, %v11451_v52  ;;  %v3459_v52 = vld [vmem:[%s13374_s1 + $0x210] sm:$0xff] }
 0x1c3   : > { %9361 = vmatprep.mubr.msk.f32.mxu0 %vm223_vm0, %v11453_v53  ;;  %10228 = vmatpush3.bf16.msra.mxu0 %v10225_v39  ;;  %v3460_v53 = vld [vmem:[%s13374_s1 + $0x218] sm:$0xff] }
 0x1c4   : > { %10230 = vmatprep.subr.bf16.mxu0 %v10229_v45  ;;  %v3048_v39 = vld [vmem:[#allocation2 + $0xf1] sm:$0xff] }
 0x1c6   : > { %9362 = vmatmul.mubr.msk.f32.gmra.mrb[8].mxu0 %vm223_vm0, %v11459_v54  ;;  %v3993_v54 = vld [vmem:[%s13376_s3 + $0x40] sm:$0xff] }
 0x1c7   : > { %9364 = vmatprep.mubr.msk.f32.mxu0 %vm223_vm0, %v11461_v55  ;;  %v3994_v55 = vld [vmem:[%s13376_s3 + $0x48] sm:$0xff] }
 0x1ca   : > { %9365 = vmatmul.mubr.msk.f32.gmra.mrb[10].mxu0 %vm223_vm0, %v11467_v57  ;;  %v3995_v57 = vld [vmem:[%s13376_s3 + $0x50] sm:$0xff] }
 0x1cb   : > { %9367 = vmatprep.mubr.msk.f32.mxu0 %vm223_vm0, %v11469_v59  ;;  %v3033_v59 = vld [vmem:[#allocation2 + $0x39] sm:$0xff] }
 0x1ce   : > { %9368 = vmatmul.mubr.msk.f32.gmra.mrb[12].mxu0 %vm223_vm0, %v11475_v60  ;;  %v10245_v60 = vpack.c.bf16 %v3994_v55, %v3993_v54  ;;  %v3057_v54 = vld [vmem:[#allocation2 + $0x159] sm:$0xff]  ;;  %v3058_v55 = vld [vmem:[#allocation2 + $0x169] sm:$0xff] }
 0x1cf   : > { %9370 = vmatprep.mubr.msk.f32.mxu0 %vm223_vm0, %v11477_v61  ;;  %v3996_v61 = vld [vmem:[%s13376_s3 + $0x58] sm:$0xff] }
 0x1d0   : > { %10246 = vmatprep.subr.bf16.mxu1 %v10245_v60 }
 0x1d1   : > { %10248 = vmatpush3.bf16.msra.mxu1 %v10245_v60  ;;  %v3063_v60 = vld [vmem:[#allocation2 + $0x1a1] sm:$0xff] }
 0x1d2   : > { %9371 = vmatmul.mubr.msk.f32.gmra.mrb[14].mxu0 %vm223_vm0, %v11483_v62  ;;  %v3034_v62 = vld [vmem:[#allocation2 + $0x49] sm:$0xff] }
 0x1d3   : > { %9373 = vmatprep.mubr.msk.f32.mxu0 %vm223_vm0, %v11485_v63  ;;  %v10233_v63 = vpack.c.bf16 %v3460_v53, %v3459_v52  ;;  %v3055_v52 = vld [vmem:[#allocation2 + $0x141] sm:$0xff]  ;;  %v3056_v53 = vld [vmem:[#allocation2 + $0x151] sm:$0xff] }
 0x1d6   : > { %9374 = vmatmul.mubr.msk.f32.gmra.mrb[16].mxu0 %vm223_vm0, %v11491_v2  ;;  %v10249_v2 = vpack.c.bf16 %v3996_v61, %v3995_v57  ;;  %v3059_v57 = vld [vmem:[#allocation2 + $0x171] sm:$0xff]  ;;  %v4675_v61 = vld [vmem:[%s13376_s3 + $0x80] sm:$0xff] }
 0x1d7   : > { %9376 = vmatprep.mubr.msk.f32.mxu0 %vm223_vm0, %v11493_v26  ;;  %v3461_v26 = vld [vmem:[%s13374_s1 + $0x220] sm:$0xff] }
 0x1d8   : > { %10250 = vmatprep.subr.bf16.mxu1 %v10249_v2 }
 0x1d9   : > { %10252 = vmatpush3.bf16.msra.mxu1 %v10249_v2  ;;  %v12224_v2 = vld [vmem:[%s13375_s2] ss:$0 sm:$0xff] }
 0x1da   : > { %9377 = vmatmul.mubr.msk.f32.gmra.mrb[18].mxu0 %vm223_vm0, %v11499_v27  ;;  %v3462_v27 = vld [vmem:[%s13374_s1 + $0x228] sm:$0xff] }
 0x1db   : > { %9379 = vmatprep.mubr.msk.f32.mxu0 %vm223_vm0, %v11501_v28  ;;  %v3035_v28 = vld [vmem:[#allocation2 + $0x51] sm:$0xff] }
 0x1de   : > { %9380 = vmatmul.mubr.msk.f32.gmra.mrb[20].mxu0 %vm223_vm0, %v11507_v29  ;;  %v3036_v29 = vld [vmem:[#allocation2 + $0x61] sm:$0xff] }
 0x1df   : > { %9382 = vmatprep.mubr.msk.f32.mxu0 %vm223_vm0, %v11509_v31  ;;  %v10237_v31 = vpack.c.bf16 %v3462_v27, %v3461_v26 }
 0x1e2   : > { %9383 = vmatmul.mubr.msk.f32.gmra.mrb[22].mxu0 %vm223_vm0, %v11515_v32  ;;  %v3463_v32 = vld [vmem:[%s13374_s1 + $0x230] sm:$0xff] }
 0x1e3   : > { %9385 = vmatprep.mubr.msk.f32.mxu0 %vm223_vm0, %v11517_v33  ;;  %v3464_v33 = vld [vmem:[%s13374_s1 + $0x238] sm:$0xff] }
 0x1e6   : > { %9386 = vmatmul.mubr.msk.f32.gmra.mrb[24].mxu0 %vm223_vm0, %v11527_v38  ;;  %v3037_v38 = vld [vmem:[#allocation2 + $0x69] sm:$0xff] }
 0x1e7   : > { %9388 = vmatprep.mubr.msk.f32.mxu0 %vm223_vm0, %v11529_v41  ;;  %v3038_v41 = vld [vmem:[#allocation2 + $0x79] sm:$0xff] }
 0x1ea   : > { %9389 = vmatmul.mubr.msk.f32.gmra.mrb[26].mxu0 %vm223_vm0, %v11535_v42  ;;  %v10241_v42 = vpack.c.bf16 %v3464_v33, %v3463_v32 }
 0x1eb   : > { %9391 = vmatprep.mubr.msk.f32.mxu0 %vm223_vm0, %v11768_v24  ;;  %v3039_v24 = vld [vmem:[#allocation2 + $0x81] sm:$0xff] }
 0x1ee   : > { %9392 = vmatmul.mubr.msk.f32.gmra.mrb[28].mxu0 %vm223_vm0, %v11774_v21  ;;  %v3040_v21 = vld [vmem:[#allocation2 + $0x91] sm:$0xff] }
 0x1ef   : > { %9394 = vmatprep.mubr.msk.f32.mxu0 %vm223_vm0, %v2669_v46  ;;  %v3052_v46 = vld [vmem:[#allocation2 + $0x121] sm:$0xff] }
 0x1f2   : > { %9395 = vmatmul.mubr.msk.f32.gmra.mrb[30].mxu0 %vm223_vm0, %v2670_v50  ;;  %v3053_v50 = vld [vmem:[#allocation2 + $0x129] sm:$0xff] }
 0x1f3   : > { %9413 = vmatprep.mubr.msk.f32.mxu0 %vm223_vm0, %v3032_v51  ;;  %v3054_v51 = vld [vmem:[#allocation2 + $0x139] sm:$0xff] }
 0x1f6   : > { %9414 = vmatmul.mubr.msk.f32.vlgmr.msra.gmra.mrb[0].mxu0 %vm223_vm0, %v3033_v59  ;;  %v3062_v59 = vld [vmem:[#allocation2 + $0x199] sm:$0xff] }
 0x1f7   : > { %10232 = vmatpush3.bf16.msra.mxu0 %v10229_v45  ;;  %9416 = vmatprep.mubr.msk.f32.mxu0 %vm223_vm0, %v3034_v62  ;;  %v3051_v45 = vld [vmem:[#allocation2 + $0x111] sm:$0xff]  ;;  %v4676_v62 = vld [vmem:[%s13376_s3 + $0x88] sm:$0xff] }
 0x1f8   : > { %10234 = vmatprep.subr.bf16.mxu0 %v10233_v63 }
 0x1fa   : > { %9417 = vmatmul.mubr.msk.f32.gmra.mrb[2].mxu0 %vm223_vm0, %v3035_v28 }
 0x1fb   : > { %9419 = vmatprep.mubr.msk.f32.mxu0 %vm223_vm0, %v3036_v29  ;;  %10236 = vmatpush3.bf16.msra.mxu0 %v10233_v63  ;;  %v12218_v63 = vpack.c.bf16 %v4676_v62, %v4675_v61 }
 0x1fc   : > { %10238 = vmatprep.subr.bf16.mxu0 %v10237_v31 }
 0x1fe   : > { %9420 = vmatmul.mubr.msk.f32.gmra.mrb[4].mxu0 %vm223_vm0, %v3037_v38 }
 0x1ff   : > { %9422 = vmatprep.mubr.msk.f32.mxu0 %vm223_vm0, %v3038_v41  ;;  %10240 = vmatpush3.bf16.msra.mxu0 %v10237_v31 }
 0x200   : > { %10242 = vmatprep.subr.bf16.mxu0 %v10241_v42 }
 0x202   : > { %9423 = vmatmul.mubr.msk.f32.gmra.mrb[6].mxu0 %vm223_vm0, %v3039_v24 }
 0x203   : > { %9425 = vmatprep.mubr.msk.f32.mxu0 %vm223_vm0, %v3040_v21  ;;  %10244 = vmatpush3.bf16.msra.mxu0 %v10241_v42 }
 0x206   : > { %9426 = vmatmul.mubr.msk.f32.gmra.mrb[8].mxu0 %vm223_vm0, %v3041_v17 }
 0x207   : > { %9428 = vmatprep.mubr.msk.f32.mxu0 %vm223_vm0, %v3042_v18 }
 0x20a   : > { %9429 = vmatmul.mubr.msk.f32.gmra.mrb[10].mxu0 %vm223_vm0, %v3043_v43 }
 0x20b   : > { %9431 = vmatprep.mubr.msk.f32.mxu0 %vm223_vm0, %v3044_v37 }
 0x20e   : > { %9432 = vmatmul.mubr.msk.f32.gmra.mrb[12].mxu0 %vm223_vm0, %v3045_v34 }
 0x20f   : > { %9434 = vmatprep.mubr.msk.f32.mxu0 %vm223_vm0, %v3046_v35 }
 0x212   : > { %9435 = vmatmul.mubr.msk.f32.gmra.mrb[14].mxu0 %vm223_vm0, %v3047_v16 }
 0x213   : > { %9437 = vmatprep.mubr.msk.f32.mxu0 %vm223_vm0, %v3048_v39 }
 0x216   : > { %9438 = vmatmul.mubr.msk.f32.gmra.mrb[16].mxu0 %vm223_vm0, %v3049_v40 }
 0x217   : > { %9440 = vmatprep.mubr.msk.f32.mxu0 %vm223_vm0, %v3050_v25 }
 0x21a   : > { %9441 = vmatmul.mubr.msk.f32.gmra.mrb[18].mxu0 %vm223_vm0, %v3051_v45 }
 0x21b   : > { %9443 = vmatprep.mubr.msk.f32.mxu0 %vm223_vm0, %v3052_v46 }
 0x21e   : > { %9444 = vmatmul.mubr.msk.f32.gmra.mrb[20].mxu0 %vm223_vm0, %v3053_v50 }
 0x21f   : > { %9446 = vmatprep.mubr.msk.f32.mxu0 %vm223_vm0, %v3054_v51 }
 0x222   : > { %9447 = vmatmul.mubr.msk.f32.gmra.mrb[22].mxu0 %vm223_vm0, %v3055_v52 }
 0x223   : > { %9449 = vmatprep.mubr.msk.f32.mxu0 %vm223_vm0, %v3056_v53 }
 0x226   : > { %9450 = vmatmul.mubr.msk.f32.gmra.mrb[24].mxu0 %vm223_vm0, %v3057_v54 }
 0x227   : > { %9452 = vmatprep.mubr.msk.f32.mxu0 %vm223_vm0, %v3058_v55 }
 0x22a   : > { %9453 = vmatmul.mubr.msk.f32.gmra.mrb[26].mxu0 %vm223_vm0, %v3059_v57 }
 0x22b   : > { %9455 = vmatprep.mubr.msk.f32.mxu0 %vm223_vm0, %v11860_v6  ;;  %v13572_v6 = vld [vmem:[#allocation6_spill] sm:$0xff] }
 0x22e   : > { %9456 = vmatmul.mubr.msk.f32.gmra.mrb[28].mxu0 %vm223_vm0, %v11866_v8  ;;  %v3455_v8 = vld [vmem:[#allocation2 + $0x19a] sm:$0xff] }
 0x22f   : > { %9458 = vmatprep.mubr.msk.f32.mxu0 %vm223_vm0, %v3062_v59 }
 0x232   : > { %9459 = vmatmul.mubr.msk.f32.gmra.mrb[30].mxu0 %vm223_vm0, %v3063_v60 }
 0x233   : > { %9477 = vmatprep.mubr.msk.f32.mxu0 %vm223_vm0, %v13542_v15  ;;  %v13573_v15 = vld [vmem:[#allocation7_spill] sm:$0xff] }
 0x236   : > { %9478 = vmatmul.mubr.msk.f32.vlgmr.msra.gmra.mrb[0].mxu0 %vm223_vm0, %v13543_v30  ;;  %v3456_v30 = vld [vmem:[#allocation2 + $0x1a2] sm:$0xff] }
 0x237   : > { %9480 = vmatprep.mubr.msk.f32.mxu0 %vm223_vm0, %v11574_v47  ;;  %v13570_v47 = vld [vmem:[#allocation37_spill] sm:$0xff] }
 0x23a   : > { %9481 = vmatmul.mubr.msk.f32.gmra.mrb[2].mxu0 %vm223_vm0, %v11586_v20  ;;  %v13569_v20 = vld [vmem:[#allocation36_spill] sm:$0xff] }
 0x23b   : > { %9483 = vmatprep.mubr.msk.f32.mxu0 %vm223_vm0, %v11588_v23  ;;  %v13571_v23 = vld [vmem:[#allocation38_spill] sm:$0xff] }
 0x23e   : > { %9484 = vmatmul.mubr.msk.f32.gmra.mrb[4].mxu0 %vm223_vm0, %v13544_v19  ;;  %v3997_v19 = vld [vmem:[%s13376_s3 + $0x60] sm:$0xff] }
 0x23f   : > { %9486 = vmatprep.mubr.msk.f32.mxu0 %vm223_vm0, %v13545_v44  ;;  %v3998_v44 = vld [vmem:[%s13376_s3 + $0x68] sm:$0xff] }
 0x242   : > { %9487 = vmatmul.mubr.msk.f32.gmra.mrb[6].mxu0 %vm223_vm0, %v13546_v22  ;;  %v10253_v22 = vpack.c.bf16 %v3998_v44, %v3997_v19 }
 0x243   : > { %9489 = vmatprep.mubr.msk.f32.mxu0 %vm223_vm0, %v13547_v48  ;;  %v3999_v48 = vld [vmem:[%s13376_s3 + $0x70] sm:$0xff] }
 0x244   : > { %10254 = vmatprep.subr.bf16.mxu1 %v10253_v22 }
 0x245   : > { %10256 = vmatpush3.bf16.msra.mxu1 %v10253_v22 }
 0x246   : > { %9490 = vmatmul.mubr.msk.f32.gmra.mrb[8].mxu0 %vm223_vm0, %v13548_v49  ;;  %v4000_v49 = vld [vmem:[%s13376_s3 + $0x78] sm:$0xff] }
 0x247   : > { %9492 = vmatprep.mubr.msk.f32.mxu0 %vm223_vm0, %v13549_v36  ;;  %v10257_v36 = vpack.c.bf16 %v4000_v49, %v3999_v48 }
 0x249   : > { %10258 = vmatprep.subr.bf16.mxu1 %v10257_v36 }
 0x24a   : > { %9493 = vmatmul.mubr.msk.f32.gmra.mrb[10].mxu0 %vm223_vm0, %v13550_v56  ;;  %10260 = vmatpush3.bf16.msra.mxu1 %v10257_v36  ;;  %v3961_v56 = vld [vmem:[#allocation2 + $0x1] sm:$0xff] }
 0x24b   : > { %9495 = vmatprep.mubr.msk.f32.mxu0 %vm223_vm0, %v13551_v58  ;;  %9541 = vmatprep.mubr.msk.f32.mxu1 %vm223_vm0, %v3961_v56  ;;  %v3962_v58 = vld [vmem:[#allocation2 + $0x9] sm:$0xff] }
 0x24d   : > { %9542 = vmatmul.mubr.msk.f32.vlgmr.msra.gmra.mrb[0].mxu1 %vm223_vm0, %v3962_v58 }
 0x24e   : > { %9496 = vmatmul.mubr.msk.f32.gmra.mrb[12].mxu0 %vm223_vm0, %v13552_v0  ;;  %v3953_v0 = vld [vmem:[%s13376_s3] sm:$0xff] }
 0x24f   : > { %9498 = vmatprep.mubr.msk.f32.mxu0 %vm223_vm0, %v13553_v1  ;;  %v3954_v1 = vld [vmem:[%s13376_s3 + $0x8] sm:$0xff] }
 0x252   : > { %9499 = vmatmul.mubr.msk.f32.gmra.mrb[14].mxu0 %vm223_vm0, %v13554_v3  ;;  %v10261_v3 = vpack.c.bf16 %v3954_v1, %v3953_v0 }
 0x253   : > { %9501 = vmatprep.mubr.msk.f32.mxu0 %vm223_vm0, %v13555_v4  ;;  %v3955_v4 = vld [vmem:[%s13376_s3 + $0x10] sm:$0xff] }
 0x254   : > { %10262 = vmatprep.subr.bf16.mxu1 %v10261_v3 }
 0x255   : > { %10264 = vmatpush3.bf16.msra.mxu1 %v10261_v3 }
 0x256   : > { %9502 = vmatmul.mubr.msk.f32.gmra.mrb[16].mxu0 %vm223_vm0, %v13556_v5  ;;  %v3956_v5 = vld [vmem:[%s13376_s3 + $0x18] sm:$0xff] }
 0x257   : > { %9504 = vmatprep.mubr.msk.f32.mxu0 %vm223_vm0, %v13557_v7  ;;  %v10265_v7 = vpack.c.bf16 %v3956_v5, %v3955_v4 }
 0x259   : > { %10266 = vmatprep.subr.bf16.mxu1 %v10265_v7 }
 0x25a   : > { %9505 = vmatmul.mubr.msk.f32.gmra.mrb[18].mxu0 %vm223_vm0, %v13558_v9  ;;  %10268 = vmatpush3.bf16.msra.mxu1 %v10265_v7  ;;  %v3957_v9 = vld [vmem:[%s13376_s3 + $0x20] sm:$0xff] }
 0x25b   : > { %9507 = vmatprep.mubr.msk.f32.mxu0 %vm223_vm0, %v13559_v10  ;;  %v3958_v10 = vld [vmem:[%s13376_s3 + $0x28] sm:$0xff] }
 0x25e   : > { %9508 = vmatmul.mubr.msk.f32.gmra.mrb[20].mxu0 %vm223_vm0, %v13560_v11  ;;  %v10269_v11 = vpack.c.bf16 %v3958_v10, %v3957_v9 }
 0x25f   : > { %9510 = vmatprep.mubr.msk.f32.mxu0 %vm223_vm0, %v13561_v12  ;;  %v3959_v12 = vld [vmem:[%s13376_s3 + $0x30] sm:$0xff] }
 0x260   : > { %10270 = vmatprep.subr.bf16.mxu1 %v10269_v11 }
 0x261   : > { %10272 = vmatpush3.bf16.msra.mxu1 %v10269_v11 }
 0x262   : > { %9511 = vmatmul.mubr.msk.f32.gmra.mrb[22].mxu0 %vm223_vm0, %v13562_v13  ;;  %v3960_v13 = vld [vmem:[%s13376_s3 + $0x38] sm:$0xff] }
 0x263   : > { %9513 = vmatprep.mubr.msk.f32.mxu0 %vm223_vm0, %v13563_v14  ;;  %v10273_v14 = vpack.c.bf16 %v3960_v13, %v3959_v12 }
 0x265   : > { %10274 = vmatprep.subr.bf16.mxu1 %v10273_v14 }
 0x266   : > { %9514 = vmatmul.mubr.msk.f32.gmra.mrb[24].mxu0 %vm223_vm0, %v13569_v20  ;;  %10276 = vmatpush3.bf16.msra.mxu1 %v10273_v14 }
 0x267   : > { %9516 = vmatprep.mubr.msk.f32.mxu0 %vm223_vm0, %v13570_v47  ;;  %10278 = vmatprep.subr.bf16.mxu1 %v12218_v63 }
 0x26a   : > { %9517 = vmatmul.mubr.msk.f32.gmra.mrb[26].mxu0 %vm223_vm0, %v13571_v23 }
 0x26b   : > { %9519 = vmatprep.mubr.msk.f32.mxu0 %vm223_vm0, %v13572_v6 }
 0x26e   : > { %9520 = vmatmul.mubr.msk.f32.gmra.mrb[28].mxu0 %vm223_vm0, %v13573_v15 }
 0x26f   : > { %9522 = vmatprep.mubr.msk.f32.mxu0 %vm223_vm0, %v3455_v8 }
 0x272   : > { %9523 = vmatmul.mubr.msk.f32.gmra.mrb[30].mxu0 %vm223_vm0, %v3456_v30 }
 0x309   : > { %v9479_v26 = vpop.f32.mrb[0].mxu0 }
 0x30a   : > { %v3826_v27 = vadd.f32 %v9479_v26, %v12224_v2  ;;  %v3627_v28 = vpop.f32.mrb[1].mxu0 }
 0x30b   : > { %v3825_v29 = vadd.f32 %v12224_v2, %v3627_v28 }
 0x30c   : > { %v3858_v31 = vmax.f32 %v3826_v27, 0.0 }
 0x30d   : > { %v3857_v32 = vmax.f32 %v3825_v29, 0.0  ;;  %v9482_v33 = vpop.f32.mrb[2].mxu0 }
 0x30e   : > { %3890 = vst.msk [vmem:[#allocation2 + $0x21] sm:$0xff] %vm223_vm0, %v3858_v31  ;;  %v3828_v38 = vadd.f32 %v9482_v33, %v12224_v2  ;;  %v3637_v41 = vpop.f32.mrb[3].mxu0 }
 0x30f   : > { %3889 = vst.msk [vmem:[#allocation2 + $0x19] sm:$0xff] %vm223_vm0, %v3857_v32  ;;  %v3827_v42 = vadd.f32 %v12224_v2, %v3637_v41 }
 0x310   : > { %v3860_v24 = vmax.f32 %v3828_v38, 0.0 }
 0x311   : > { %v3859_v21 = vmax.f32 %v3827_v42, 0.0  ;;  %v9485_v17 = vpop.f32.mrb[4].mxu0 }
 0x312   : > { %3892 = vst.msk [vmem:[#allocation2 + $0x39] sm:$0xff] %vm223_vm0, %v3860_v24  ;;  %v3830_v18 = vadd.f32 %v9485_v17, %v12224_v2  ;;  %v3647_v43 = vpop.f32.mrb[5].mxu0 }
 0x313   : > { %3891 = vst.msk [vmem:[#allocation2 + $0x31] sm:$0xff] %vm223_vm0, %v3859_v21  ;;  %v3829_v37 = vadd.f32 %v12224_v2, %v3647_v43 }
 0x314   : > { %v3862_v34 = vmax.f32 %v3830_v18, 0.0 }
 0x315   : > { %v3861_v35 = vmax.f32 %v3829_v37, 0.0  ;;  %v9488_v16 = vpop.f32.mrb[6].mxu0  ;;  %v12244_v46 = vld [vmem:[#allocation2 + $0x21] sm:$0xff] }
 0x316   : > { %3894 = vst.msk [vmem:[#allocation2 + $0x51] sm:$0xff] %vm223_vm0, %v3862_v34  ;;  %v3832_v39 = vadd.f32 %v9488_v16, %v12224_v2  ;;  %v3657_v40 = vpop.f32.mrb[7].mxu0  ;;  %v12238_v25 = vld [vmem:[#allocation2 + $0x19] sm:$0xff] }
 0x317   : > { %3893 = vst.msk [vmem:[#allocation2 + $0x49] sm:$0xff] %vm223_vm0, %v3861_v35  ;;  %v3831_v45 = vadd.f32 %v12224_v2, %v3657_v40  ;;  %9544 = vmatprep.mubr.msk.f32.mxu1 %vm223_vm0, %v12238_v25 }
 0x318   : > { %v3864_v50 = vmax.f32 %v3832_v39, 0.0  ;;  %9545 = vmatmul.mubr.msk.f32.gmra.mrb[2].mxu1 %vm223_vm0, %v12244_v46 }
 0x319   : > { %v3863_v51 = vmax.f32 %v3831_v45, 0.0  ;;  %v9491_v52 = vpop.f32.mrb[8].mxu0  ;;  %v12256_v59 = vld [vmem:[#allocation2 + $0x39] sm:$0xff] }
 0x31a   : > { %3896 = vst.msk [vmem:[#allocation2 + $0x69] sm:$0xff] %vm223_vm0, %v3864_v50  ;;  %v3834_v53 = vadd.f32 %v9491_v52, %v12224_v2  ;;  %v3667_v54 = vpop.f32.mrb[9].mxu0  ;;  %v12250_v55 = vld [vmem:[#allocation2 + $0x31] sm:$0xff] }
 0x31b   : > { %3895 = vst.msk [vmem:[#allocation2 + $0x61] sm:$0xff] %vm223_vm0, %v3863_v51  ;;  %v3833_v57 = vadd.f32 %v12224_v2, %v3667_v54  ;;  %9547 = vmatprep.mubr.msk.f32.mxu1 %vm223_vm0, %v12250_v55 }
 0x31c   : > { %v3866_v60 = vmax.f32 %v3834_v53, 0.0  ;;  %9548 = vmatmul.mubr.msk.f32.gmra.mrb[4].mxu1 %vm223_vm0, %v12256_v59 }
 0x31d   : > { %v3865_v20 = vmax.f32 %v3833_v57, 0.0  ;;  %v9494_v47 = vpop.f32.mrb[10].mxu0  ;;  %v12268_v30 = vld [vmem:[#allocation2 + $0x51] sm:$0xff] }
 0x31e   : > { %3898 = vst.msk [vmem:[#allocation2 + $0x81] sm:$0xff] %vm223_vm0, %v3866_v60  ;;  %v3836_v23 = vadd.f32 %v9494_v47, %v12224_v2  ;;  %v3677_v6 = vpop.f32.mrb[11].mxu0  ;;  %v12262_v8 = vld [vmem:[#allocation2 + $0x49] sm:$0xff] }
 0x31f   : > { %3897 = vst.msk [vmem:[#allocation2 + $0x79] sm:$0xff] %vm223_vm0, %v3865_v20  ;;  %v3835_v15 = vadd.f32 %v12224_v2, %v3677_v6  ;;  %9550 = vmatprep.mubr.msk.f32.mxu1 %vm223_vm0, %v12262_v8 }
 0x320   : > { %v3868_v19 = vmax.f32 %v3836_v23, 0.0  ;;  %9551 = vmatmul.mubr.msk.f32.gmra.mrb[6].mxu1 %vm223_vm0, %v12268_v30 }
 0x321   : > { %v3867_v44 = vmax.f32 %v3835_v15, 0.0  ;;  %v9497_v22 = vpop.f32.mrb[12].mxu0  ;;  %v12280_v58 = vld [vmem:[#allocation2 + $0x69] sm:$0xff] }
 0x322   : > { %3900 = vst.msk [vmem:[#allocation2 + $0x99] sm:$0xff] %vm223_vm0, %v3868_v19  ;;  %v3838_v48 = vadd.f32 %v9497_v22, %v12224_v2  ;;  %v3687_v49 = vpop.f32.mrb[13].mxu0  ;;  %v12274_v36 = vld [vmem:[#allocation2 + $0x61] sm:$0xff] }
 0x323   : > { %3899 = vst.msk [vmem:[#allocation2 + $0x91] sm:$0xff] %vm223_vm0, %v3867_v44  ;;  %v3837_v56 = vadd.f32 %v12224_v2, %v3687_v49  ;;  %9553 = vmatprep.mubr.msk.f32.mxu1 %vm223_vm0, %v12274_v36 }
 0x324   : > { %v3870_v0 = vmax.f32 %v3838_v48, 0.0  ;;  %9554 = vmatmul.mubr.msk.f32.gmra.mrb[8].mxu1 %vm223_vm0, %v12280_v58 }
 0x325   : > { %v3869_v1 = vmax.f32 %v3837_v56, 0.0  ;;  %v9500_v3 = vpop.f32.mrb[14].mxu0  ;;  %v12292_v10 = vld [vmem:[#allocation2 + $0x81] sm:$0xff] }
 0x326   : > { %3902 = vst.msk [vmem:[#allocation2 + $0xb1] sm:$0xff] %vm223_vm0, %v3870_v0  ;;  %v3840_v4 = vadd.f32 %v9500_v3, %v12224_v2  ;;  %v3697_v5 = vpop.f32.mrb[15].mxu0  ;;  %v12286_v7 = vld [vmem:[#allocation2 + $0x79] sm:$0xff] }
 0x327   : > { %3901 = vst.msk [vmem:[#allocation2 + $0xa9] sm:$0xff] %vm223_vm0, %v3869_v1  ;;  %v3839_v9 = vadd.f32 %v12224_v2, %v3697_v5  ;;  %9556 = vmatprep.mubr.msk.f32.mxu1 %vm223_vm0, %v12286_v7 }
 0x328   : > { %v3872_v11 = vmax.f32 %v3840_v4, 0.0  ;;  %9557 = vmatmul.mubr.msk.f32.gmra.mrb[10].mxu1 %vm223_vm0, %v12292_v10 }
 0x329   : > { %v3871_v12 = vmax.f32 %v3839_v9, 0.0  ;;  %v9503_v13 = vpop.f32.mrb[16].mxu0  ;;  %v12304_v27 = vld [vmem:[#allocation2 + $0x99] sm:$0xff] }
 0x32a   : > { %3904 = vst.msk [vmem:[#allocation2 + $0xc9] sm:$0xff] %vm223_vm0, %v3872_v11  ;;  %v3842_v14 = vadd.f32 %v9503_v13, %v12224_v2  ;;  %v3707_v61 = vpop.f32.mrb[17].mxu0  ;;  %v12298_v62 = vld [vmem:[#allocation2 + $0x91] sm:$0xff] }
 0x32b   : > { %3903 = vst.msk [vmem:[#allocation2 + $0xc1] sm:$0xff] %vm223_vm0, %v3871_v12  ;;  %v3841_v26 = vadd.f32 %v12224_v2, %v3707_v61  ;;  %9559 = vmatprep.mubr.msk.f32.mxu1 %vm223_vm0, %v12298_v62 }
 0x32c   : > { %v3874_v28 = vmax.f32 %v3842_v14, 0.0  ;;  %9560 = vmatmul.mubr.msk.f32.gmra.mrb[12].mxu1 %vm223_vm0, %v12304_v27 }
 0x32d   : > { %v3873_v29 = vmax.f32 %v3841_v26, 0.0  ;;  %v9506_v31 = vpop.f32.mrb[18].mxu0  ;;  %v12316_v42 = vld [vmem:[#allocation2 + $0xb1] sm:$0xff] }
 0x32e   : > { %3906 = vst.msk [vmem:[#allocation2 + $0xe1] sm:$0xff] %vm223_vm0, %v3874_v28  ;;  %v3844_v32 = vadd.f32 %v9506_v31, %v12224_v2  ;;  %v3717_v33 = vpop.f32.mrb[19].mxu0  ;;  %v12310_v38 = vld [vmem:[#allocation2 + $0xa9] sm:$0xff] }
 0x32f   : > { %3905 = vst.msk [vmem:[#allocation2 + $0xd9] sm:$0xff] %vm223_vm0, %v3873_v29  ;;  %v3843_v41 = vadd.f32 %v12224_v2, %v3717_v33  ;;  %9562 = vmatprep.mubr.msk.f32.mxu1 %vm223_vm0, %v12310_v38 }
 0x330   : > { %v3876_v24 = vmax.f32 %v3844_v32, 0.0  ;;  %9563 = vmatmul.mubr.msk.f32.gmra.mrb[14].mxu1 %vm223_vm0, %v12316_v42 }
 0x331   : > { %v3875_v21 = vmax.f32 %v3843_v41, 0.0  ;;  %v9509_v17 = vpop.f32.mrb[20].mxu0  ;;  %v12328_v35 = vld [vmem:[#allocation2 + $0xc9] sm:$0xff] }
 0x332   : > { %3908 = vst.msk [vmem:[#allocation2 + $0xf9] sm:$0xff] %vm223_vm0, %v3876_v24  ;;  %v3846_v18 = vadd.f32 %v9509_v17, %v12224_v2  ;;  %v3727_v43 = vpop.f32.mrb[21].mxu0  ;;  %v12322_v37 = vld [vmem:[#allocation2 + $0xc1] sm:$0xff] }
 0x333   : > { %3907 = vst.msk [vmem:[#allocation2 + $0xf1] sm:$0xff] %vm223_vm0, %v3875_v21  ;;  %v3845_v34 = vadd.f32 %v12224_v2, %v3727_v43  ;;  %9565 = vmatprep.mubr.msk.f32.mxu1 %vm223_vm0, %v12322_v37  ;;  %v3921_v43 = vld [vmem:[#allocation2] sm:$0xff] }
 0x334   : > { %v3878_v16 = vmax.f32 %v3846_v18, 0.0  ;;  %9566 = vmatmul.mubr.msk.f32.gmra.mrb[16].mxu1 %vm223_vm0, %v12328_v35 }
 0x335   : > { %v3877_v39 = vmax.f32 %v3845_v34, 0.0  ;;  %v9512_v40 = vpop.f32.mrb[22].mxu0  ;;  %v12340_v53 = vld [vmem:[#allocation2 + $0xe1] sm:$0xff] }
 0x336   : > { %3910 = vst.msk [vmem:[#allocation2 + $0x111] sm:$0xff] %vm223_vm0, %v3878_v16  ;;  %v3848_v45 = vadd.f32 %v9512_v40, %v12224_v2  ;;  %v3737_v50 = vpop.f32.mrb[23].mxu0  ;;  %v12334_v51 = vld [vmem:[#allocation2 + $0xd9] sm:$0xff]  ;;  %v4677_v16 = vld [vmem:[%s13376_s3 + $0x90] sm:$0xff]  ;;  %v3922_v40 = vld [vmem:[#allocation2 + $0x8] sm:$0xff] }
 0x337   : > { %3909 = vst.msk [vmem:[#allocation2 + $0x109] sm:$0xff] %vm223_vm0, %v3877_v39  ;;  %v3847_v52 = vadd.f32 %v12224_v2, %v3737_v50  ;;  %9568 = vmatprep.mubr.msk.f32.mxu1 %vm223_vm0, %v12334_v51  ;;  %v4678_v39 = vld [vmem:[%s13376_s3 + $0x98] sm:$0xff]  ;;  %v4679_v50 = vld [vmem:[%s13376_s3 + $0xa0] sm:$0xff] }
 0x338   : > { %v3880_v54 = vmax.f32 %v3848_v45, 0.0  ;;  %9569 = vmatmul.mubr.msk.f32.gmra.mrb[18].mxu1 %vm223_vm0, %v12340_v53  ;;  %v10281_v45 = vpack.c.bf16 %v4678_v39, %v4677_v16 }
 0x339   : > { %v3879_v57 = vmax.f32 %v3847_v52, 0.0  ;;  %v9515_v60 = vpop.f32.mrb[24].mxu0  ;;  %v12352_v15 = vld [vmem:[#allocation2 + $0xf9] sm:$0xff]  ;;  %v4680_v52 = vld [vmem:[%s13376_s3 + $0xa8] sm:$0xff] }
 0x33a   : > { %3912 = vst.msk [vmem:[#allocation2 + $0x129] sm:$0xff] %vm223_vm0, %v3880_v54  ;;  %v3850_v20 = vadd.f32 %v9515_v60, %v12224_v2  ;;  %v3747_v47 = vpop.f32.mrb[25].mxu0  ;;  %v12346_v23 = vld [vmem:[#allocation2 + $0xf1] sm:$0xff]  ;;  %v12429_v60 = vld [vmem:[#allocation2 + $0x20] sm:$0xff] }
 0x33b   : > { %3911 = vst.msk [vmem:[#allocation2 + $0x121] sm:$0xff] %vm223_vm0, %v3879_v57  ;;  %v3849_v6 = vadd.f32 %v12224_v2, %v3747_v47  ;;  %9571 = vmatprep.mubr.msk.f32.mxu1 %vm223_vm0, %v12346_v23  ;;  %v12424_v54 = vld [vmem:[#allocation2 + $0x18] sm:$0xff]  ;;  %v10285_v57 = vpack.c.bf16 %v4680_v52, %v4679_v50 }
 0x33c   : > { %v3882_v19 = vmax.f32 %v3850_v20, 0.0  ;;  %9572 = vmatmul.mubr.msk.f32.gmra.mrb[20].mxu1 %vm223_vm0, %v12352_v15  ;;  %v4681_v20 = vld [vmem:[%s13376_s3 + $0xb0] sm:$0xff]  ;;  %v4682_v47 = vld [vmem:[%s13376_s3 + $0xb8] sm:$0xff] }
 0x33d   : > { %v3881_v44 = vmax.f32 %v3849_v6, 0.0  ;;  %v9518_v22 = vpop.f32.mrb[26].mxu0  ;;  %v12364_v1 = vld [vmem:[#allocation2 + $0x111] sm:$0xff] }
 0x33e   : > { %3914 = vst.msk [vmem:[#allocation2 + $0x141] sm:$0xff] %vm223_vm0, %v3882_v19  ;;  %v3852_v48 = vadd.f32 %v9518_v22, %v12224_v2  ;;  %v3757_v49 = vpop.f32.mrb[27].mxu0  ;;  %v12358_v56 = vld [vmem:[#allocation2 + $0x109] sm:$0xff]  ;;  %v12443_v19 = vld [vmem:[#allocation2 + $0x38] sm:$0xff] }
 0x33f   : > { %3913 = vst.msk [vmem:[#allocation2 + $0x139] sm:$0xff] %vm223_vm0, %v3881_v44  ;;  %v3851_v0 = vadd.f32 %v12224_v2, %v3757_v49  ;;  %9574 = vmatprep.mubr.msk.f32.mxu1 %vm223_vm0, %v12358_v56  ;;  %v12439_v6 = vld [vmem:[#allocation2 + $0x30] sm:$0xff]  ;;  %v5068_v44 = vld [vmem:[%s13376_s3 + $0xc0] sm:$0xff]  ;;  %v5069_v22 = vld [vmem:[%s13376_s3 + $0xc8] sm:$0xff] }
 0x340   : > { %v3884_v3 = vmax.f32 %v3852_v48, 0.0  ;;  %9575 = vmatmul.mubr.msk.f32.gmra.mrb[22].mxu1 %vm223_vm0, %v12364_v1  ;;  %v12453_v48 = vld [vmem:[#allocation2 + $0x48] sm:$0xff]  ;;  %v12457_v49 = vpack.c.bf16 %v5069_v22, %v5068_v44  ;;  %v12524_v16 = vld [vmem:[#allocation2 + $0x110] sm:$0xff]  ;;  %v5071_v22 = vld [vmem:[%s13376_s3 + $0xd8] sm:$0xff] }
 0x341   : > { %v3883_v4 = vmax.f32 %v3851_v0, 0.0  ;;  %v9521_v5 = vpop.f32.mrb[28].mxu0  ;;  %v12376_v14 = vld [vmem:[#allocation2 + $0x129] sm:$0xff] }
 0x342   : > { %3916 = vst.msk [vmem:[#allocation2 + $0x159] sm:$0xff] %vm223_vm0, %v3884_v3  ;;  %v3854_v9 = vadd.f32 %v9521_v5, %v12224_v2  ;;  %v3767_v11 = vpop.f32.mrb[29].mxu0  ;;  %v12370_v12 = vld [vmem:[#allocation2 + $0x121] sm:$0xff]  ;;  %v12459_v0 = vld [vmem:[#allocation2 + $0x50] sm:$0xff]  ;;  %v12472_v5 = vld [vmem:[#allocation2 + $0x78] sm:$0xff] }
 0x343   : > { %3915 = vst.msk [vmem:[#allocation2 + $0x151] sm:$0xff] %vm223_vm0, %v3883_v4  ;;  %v3853_v13 = vadd.f32 %v12224_v2, %v3767_v11  ;;  %9577 = vmatprep.mubr.msk.f32.mxu1 %vm223_vm0, %v12370_v12  ;;  %v12463_v3 = vld [vmem:[#allocation2 + $0x60] sm:$0xff]  ;;  %v12468_v4 = vld [vmem:[#allocation2 + $0x68] sm:$0xff]  ;;  %v12480_v11 = vld [vmem:[#allocation2 + $0x90] sm:$0xff] }
 0x344   : > { %v3886_v61 = vmax.f32 %v3854_v9, 0.0  ;;  %9578 = vmatmul.mubr.msk.f32.gmra.mrb[24].mxu1 %vm223_vm0, %v12376_v14  ;;  %v12476_v9 = vld [vmem:[#allocation2 + $0x80] sm:$0xff]  ;;  %v5070_v44 = vld [vmem:[%s13376_s3 + $0xd0] sm:$0xff] }
 0x345   : > { %v3885_v26 = vmax.f32 %v3853_v13, 0.0  ;;  %v9524_v28 = vpop.f32.mrb[30].mxu0  ;;  %v12388_v41 = vld [vmem:[#allocation2 + $0x141] sm:$0xff]  ;;  %v12484_v13 = vld [vmem:[#allocation2 + $0x98] sm:$0xff] }
 0x346   : > { %3918 = vst.msk [vmem:[#allocation2 + $0x171] sm:$0xff] %vm223_vm0, %v3886_v61  ;;  %v3856_v29 = vadd.f32 %v9524_v28, %v12224_v2  ;;  %v3777_v31 = vpop.f32.mrb[31].mxu0  ;;  %v12382_v32 = vld [vmem:[#allocation2 + $0x139] sm:$0xff]  ;;  %13575 = vst [vmem:[#allocation9_spill] sm:$0xff] %v12388_v41  ;;  %v12488_v61 = vld [vmem:[#allocation2 + $0xa8] sm:$0xff] }
 0x347   : > { %13574 = vst [vmem:[#allocation8_spill] sm:$0xff] %v12382_v32  ;;  %3917 = vst.msk [vmem:[#allocation2 + $0x169] sm:$0xff] %vm223_vm0, %v3885_v26  ;;  %v3855_v33 = vadd.f32 %v12224_v2, %v3777_v31  ;;  %9580 = vmatprep.mubr.msk.f32.mxu1 %vm223_vm0, %v12382_v32  ;;  %v12492_v26 = vld [vmem:[#allocation2 + $0xb0] sm:$0xff]  ;;  %v12496_v28 = vld [vmem:[#allocation2 + $0xc0] sm:$0xff] }
 0x348   : > { %v3888_v24 = vmax.f32 %v3856_v29, 0.0  ;;  %9581 = vmatmul.mubr.msk.f32.gmra.mrb[26].mxu1 %vm223_vm0, %v12388_v41  ;;  %v12500_v29 = vld [vmem:[#allocation2 + $0xc8] sm:$0xff]  ;;  %v12504_v31 = vld [vmem:[#allocation2 + $0xd8] sm:$0xff]  ;;  %v12528_v39 = vld [vmem:[#allocation2 + $0x120] sm:$0xff] }
 0x349   : > { %v3887_v21 = vmax.f32 %v3855_v33, 0.0  ;;  %v12398_v2 = vld [vmem:[#allocation2 + $0x159] sm:$0xff] }
 0x34a   : > { %3920 = vst.msk [vmem:[#allocation2 + $0x189] sm:$0xff] %vm223_vm0, %v3888_v24  ;;  %v12393_v17 = vld [vmem:[#allocation2 + $0x151] sm:$0xff]  ;;  %13577 = vst [vmem:[#allocation11_spill] sm:$0xff] %v12398_v2  ;;  %v12508_v33 = vld [vmem:[#allocation2 + $0xe0] sm:$0xff] }
 0x34b   : > { %13576 = vst [vmem:[#allocation10_spill] sm:$0xff] %v12393_v17  ;;  %3919 = vst.msk [vmem:[#allocation2 + $0x181] sm:$0xff] %vm223_vm0, %v3887_v21  ;;  %9583 = vmatprep.mubr.msk.f32.mxu1 %vm223_vm0, %v12393_v17  ;;  %v12512_v24 = vld [vmem:[#allocation2 + $0xf0] sm:$0xff]  ;;  %v12516_v21 = vld [vmem:[#allocation2 + $0xf8] sm:$0xff] }
 0x34c   : > { %9584 = vmatmul.mubr.msk.f32.gmra.mrb[28].mxu1 %vm223_vm0, %v12398_v2  ;;  %v12540_v50 = vld [vmem:[#allocation2 + $0x140] sm:$0xff]  ;;  %v12544_v52 = vld [vmem:[#allocation2 + $0x150] sm:$0xff]  ;;  %v5073_v17 = vld [vmem:[%s13376_s3 + $0xe8] sm:$0xff] }
 0x34d   : > { %v12406_v34 = vld [vmem:[#allocation2 + $0x171] sm:$0xff]  ;;  %v5072_v2 = vld [vmem:[%s13376_s3 + $0xe0] sm:$0xff] }
 0x34e   : > { %v12402_v18 = vld [vmem:[#allocation2 + $0x169] sm:$0xff]  ;;  %13579 = vst [vmem:[#allocation13_spill] sm:$0xff] %v12406_v34  ;;  %v12574_v41 = vld [vmem:[#allocation2 + $0x1a] sm:$0xff] }
 0x34f   : > { %13578 = vst [vmem:[#allocation12_spill] sm:$0xff] %v12402_v18  ;;  %9586 = vmatprep.mubr.msk.f32.mxu1 %vm223_vm0, %v12402_v18  ;;  %v10297_v18 = vpack.c.bf16 %v5071_v22, %v5070_v44  ;;  %13580 = vst [vmem:[#allocation14_spill] sm:$0xff] %v12574_v41  ;;  %v12579_v44 = vld [vmem:[#allocation2 + $0x22] sm:$0xff]  ;;  %v5074_v22 = vld [vmem:[%s13376_s3 + $0xf0] sm:$0xff] }
 0x350   : > { %9587 = vmatmul.mubr.msk.f32.gmra.mrb[30].mxu1 %vm223_vm0, %v12406_v34  ;;  %v4644_v34 = vld [vmem:[#allocation2 + $0xa] sm:$0xff]  ;;  %13581 = vst [vmem:[#allocation15_spill] sm:$0xff] %v12579_v44  ;;  %v5075_v32 = vld [vmem:[%s13376_s3 + $0xf8] sm:$0xff] }
 0x351   : > { %9605 = vmatprep.mubr.msk.f32.mxu1 %vm223_vm0, %v3921_v43  ;;  %v12520_v43 = vld [vmem:[#allocation2 + $0x108] sm:$0xff] }
 0x354   : > { %9606 = vmatmul.mubr.msk.f32.vlgmr.msra.gmra.mrb[0].mxu1 %vm223_vm0, %v3922_v40  ;;  %v12532_v40 = vld [vmem:[#allocation2 + $0x128] sm:$0xff] }
 0x355   : > { %9608 = vmatprep.mubr.msk.f32.mxu1 %vm223_vm0, %v12424_v54  ;;  %10280 = vmatpush3.bf16.msra.mxu1 %v12218_v63  ;;  %v10289_v63 = vpack.c.bf16 %v4682_v47, %v4681_v20  ;;  %v12552_v20 = vld [vmem:[#allocation2 + $0x168] sm:$0xff] }
 0x356   : > { %10282 = vmatprep.subr.bf16.mxu1 %v10281_v45  ;;  %v4643_v47 = vld [vmem:[#allocation2 + $0x2] sm:$0xff] }
 0x358   : > { %9609 = vmatmul.mubr.msk.f32.gmra.mrb[2].mxu1 %vm223_vm0, %v12429_v60 }
 0x359   : > { %9611 = vmatprep.mubr.msk.f32.mxu1 %vm223_vm0, %v12439_v6  ;;  %10284 = vmatpush3.bf16.msra.mxu1 %v10281_v45  ;;  %v12536_v45 = vld [vmem:[#allocation2 + $0x138] sm:$0xff] }
 0x35a   : > { %10286 = vmatprep.subr.bf16.mxu1 %v10285_v57 }
 0x35c   : > { %9612 = vmatmul.mubr.msk.f32.gmra.mrb[4].mxu1 %vm223_vm0, %v12443_v19 }
 0x35d   : > { %9614 = vmatprep.mubr.msk.f32.mxu1 %vm223_vm0, %v12453_v48  ;;  %10288 = vmatpush3.bf16.msra.mxu1 %v10285_v57  ;;  %v12548_v57 = vld [vmem:[#allocation2 + $0x158] sm:$0xff] }
 0x35e   : > { %10290 = vmatprep.subr.bf16.mxu1 %v10289_v63 }
 0x360   : > { %9615 = vmatmul.mubr.msk.f32.gmra.mrb[6].mxu1 %vm223_vm0, %v12459_v0 }
 0x361   : > { %9617 = vmatprep.mubr.msk.f32.mxu1 %vm223_vm0, %v12463_v3  ;;  %10292 = vmatpush3.bf16.msra.mxu1 %v10289_v63  ;;  %v12556_v63 = vld [vmem:[#allocation2 + $0x170] sm:$0xff] }
 0x362   : > { %10294 = vmatprep.subr.bf16.mxu1 %v12457_v49 }
 0x364   : > { %9618 = vmatmul.mubr.msk.f32.gmra.mrb[8].mxu1 %vm223_vm0, %v12468_v4 }
 0x365   : > { %9620 = vmatprep.mubr.msk.f32.mxu1 %vm223_vm0, %v12472_v5 }
 0x368   : > { %9621 = vmatmul.mubr.msk.f32.gmra.mrb[10].mxu1 %vm223_vm0, %v12476_v9 }
 0x369   : > { %9623 = vmatprep.mubr.msk.f32.mxu1 %vm223_vm0, %v12480_v11 }
 0x36c   : > { %9624 = vmatmul.mubr.msk.f32.gmra.mrb[12].mxu1 %vm223_vm0, %v12484_v13 }
 0x36d   : > { %9626 = vmatprep.mubr.msk.f32.mxu1 %vm223_vm0, %v12488_v61 }
 0x370   : > { %9627 = vmatmul.mubr.msk.f32.gmra.mrb[14].mxu1 %vm223_vm0, %v12492_v26 }
 0x371   : > { %9629 = vmatprep.mubr.msk.f32.mxu1 %vm223_vm0, %v12496_v28 }
 0x374   : > { %9630 = vmatmul.mubr.msk.f32.gmra.mrb[16].mxu1 %vm223_vm0, %v12500_v29 }
 0x375   : > { %9632 = vmatprep.mubr.msk.f32.mxu1 %vm223_vm0, %v12504_v31 }
 0x378   : > { %9633 = vmatmul.mubr.msk.f32.gmra.mrb[18].mxu1 %vm223_vm0, %v12508_v33 }
 0x379   : > { %9635 = vmatprep.mubr.msk.f32.mxu1 %vm223_vm0, %v12512_v24 }
 0x37c   : > { %9636 = vmatmul.mubr.msk.f32.gmra.mrb[20].mxu1 %vm223_vm0, %v12516_v21 }
 0x37d   : > { %9638 = vmatprep.mubr.msk.f32.mxu1 %vm223_vm0, %v12520_v43 }
 0x380   : > { %9639 = vmatmul.mubr.msk.f32.gmra.mrb[22].mxu1 %vm223_vm0, %v12524_v16 }
 0x381   : > { %9641 = vmatprep.mubr.msk.f32.mxu1 %vm223_vm0, %v12528_v39 }
 0x384   : > { %9642 = vmatmul.mubr.msk.f32.gmra.mrb[24].mxu1 %vm223_vm0, %v12532_v40 }
 0x385   : > { %9644 = vmatprep.mubr.msk.f32.mxu1 %vm223_vm0, %v12536_v45 }
 0x388   : > { %9645 = vmatmul.mubr.msk.f32.gmra.mrb[26].mxu1 %vm223_vm0, %v12540_v50 }
 0x389   : > { %9647 = vmatprep.mubr.msk.f32.mxu1 %vm223_vm0, %v12544_v52 }
 0x38c   : > { %9648 = vmatmul.mubr.msk.f32.gmra.mrb[28].mxu1 %vm223_vm0, %v12548_v57 }
 0x38d   : > { %9650 = vmatprep.mubr.msk.f32.mxu1 %vm223_vm0, %v12552_v20 }
 0x390   : > { %9651 = vmatmul.mubr.msk.f32.gmra.mrb[30].mxu1 %vm223_vm0, %v12556_v63 }
 0x391   : > { %9669 = vmatprep.mubr.msk.f32.mxu1 %vm223_vm0, %v4643_v47  ;;  %v10301_v47 = vpack.c.bf16 %v5073_v17, %v5072_v2  ;;  %v10305_v17 = vpack.c.bf16 %v5075_v32, %v5074_v22  ;;  %v12593_v2 = vld [vmem:[#allocation2 + $0x3a] sm:$0xff]  ;;  %v12611_v22 = vld [vmem:[#allocation2 + $0x62] sm:$0xff] }
 0x392   : > { %13582 = vst [vmem:[#allocation16_spill] sm:$0xff] %v12593_v2  ;;  %13583 = vst [vmem:[#allocation17_spill] sm:$0xff] %v12611_v22 }
 0x394   : > { %9670 = vmatmul.mubr.msk.f32.vlgmr.msra.gmra.mrb[0].mxu1 %vm223_vm0, %v4644_v34  ;;  %v12589_v34 = vld [vmem:[#allocation2 + $0x32] sm:$0xff] }
 0x395   : > { %9672 = vmatprep.mubr.msk.f32.mxu1 %vm223_vm0, %v12574_v41  ;;  %10296 = vmatpush3.bf16.msra.mxu1 %v12457_v49  ;;  %v5461_v49 = vld [vmem:[%s13376_s3 + $0x100] sm:$0xff]  ;;  %v5462_v41 = vld [vmem:[%s13376_s3 + $0x108] sm:$0xff] }
 0x396   : > { %10298 = vmatprep.subr.bf16.mxu1 %v10297_v18  ;;  %v10309_v32 = vpack.c.bf16 %v5462_v41, %v5461_v49  ;;  %v12623_v41 = vld [vmem:[#allocation2 + $0x82] sm:$0xff]  ;;  %v12627_v49 = vld [vmem:[#allocation2 + $0x92] sm:$0xff] }
 0x397   : > { %13586 = vst [vmem:[#allocation20_spill] sm:$0xff] %v12623_v41  ;;  %13587 = vst [vmem:[#allocation21_spill] sm:$0xff] %v12627_v49 }
 0x398   : > { %9673 = vmatmul.mubr.msk.f32.gmra.mrb[2].mxu1 %vm223_vm0, %v12579_v44  ;;  %v12603_v44 = vld [vmem:[#allocation2 + $0x4a] sm:$0xff] }
 0x399   : > { %9675 = vmatprep.mubr.msk.f32.mxu1 %vm223_vm0, %v12589_v34  ;;  %10300 = vmatpush3.bf16.msra.mxu1 %v10297_v18  ;;  %v12607_v18 = vld [vmem:[#allocation2 + $0x52] sm:$0xff] }
 0x39a   : > { %10302 = vmatprep.subr.bf16.mxu1 %v10301_v47 }
 0x39c   : > { %9676 = vmatmul.mubr.msk.f32.gmra.mrb[4].mxu1 %vm223_vm0, %v12593_v2  ;;  %v12615_v2 = vld [vmem:[#allocation2 + $0x6a] sm:$0xff] }
 0x39d   : > { %9678 = vmatprep.mubr.msk.f32.mxu1 %vm223_vm0, %v12603_v44  ;;  %10304 = vmatpush3.bf16.msra.mxu1 %v10301_v47  ;;  %13584 = vst [vmem:[#allocation18_spill] sm:$0xff] %v12615_v2  ;;  %v12619_v47 = vld [vmem:[#allocation2 + $0x7a] sm:$0xff] }
 0x39e   : > { %10306 = vmatprep.subr.bf16.mxu1 %v10305_v17  ;;  %13585 = vst [vmem:[#allocation19_spill] sm:$0xff] %v12619_v47 }
 0x3a0   : > { %9679 = vmatmul.mubr.msk.f32.gmra.mrb[6].mxu1 %vm223_vm0, %v12607_v18 }
 0x3a1   : > { %9681 = vmatprep.mubr.msk.f32.mxu1 %vm223_vm0, %v12611_v22  ;;  %10308 = vmatpush3.bf16.msra.mxu1 %v10305_v17  ;;  %v12631_v17 = vld [vmem:[#allocation2 + $0x9a] sm:$0xff]  ;;  %v5466_v22 = vld [vmem:[%s13376_s3 + $0x128] sm:$0xff] }
 0x3a2   : > { %10310 = vmatprep.subr.bf16.mxu1 %v10309_v32  ;;  %13588 = vst [vmem:[#allocation22_spill] sm:$0xff] %v12631_v17 }
 0x3a4   : > { %9682 = vmatmul.mubr.msk.f32.gmra.mrb[8].mxu1 %vm223_vm0, %v12615_v2  ;;  %v12635_v2 = vld [vmem:[#allocation2 + $0xaa] sm:$0xff] }
 0x3a5   : > { %9684 = vmatprep.mubr.msk.f32.mxu1 %vm223_vm0, %v12619_v47  ;;  %13589 = vst [vmem:[#allocation23_spill] sm:$0xff] %v12635_v2  ;;  %v12639_v47 = vld [vmem:[#allocation2 + $0xb2] sm:$0xff] }
 0x3a6   : > { %13590 = vst [vmem:[#allocation24_spill] sm:$0xff] %v12639_v47 }
 0x3a8   : > { %9685 = vmatmul.mubr.msk.f32.gmra.mrb[10].mxu1 %vm223_vm0, %v12623_v41  ;;  %v12643_v41 = vld [vmem:[#allocation2 + $0xc2] sm:$0xff] }
 0x3a9   : > { %9687 = vmatprep.mubr.msk.f32.mxu1 %vm223_vm0, %v12627_v49  ;;  %13591 = vst [vmem:[#allocation25_spill] sm:$0xff] %v12643_v41  ;;  %v12647_v49 = vld [vmem:[#allocation2 + $0xca] sm:$0xff] }
 0x3aa   : > { %13592 = vst [vmem:[#allocation26_spill] sm:$0xff] %v12647_v49 }
 0x3ac   : > { %9688 = vmatmul.mubr.msk.f32.gmra.mrb[12].mxu1 %vm223_vm0, %v12631_v17  ;;  %v12651_v17 = vld [vmem:[#allocation2 + $0xda] sm:$0xff] }
 0x3ad   : > { %9690 = vmatprep.mubr.msk.f32.mxu1 %vm223_vm0, %v12635_v2  ;;  %13593 = vst [vmem:[#allocation27_spill] sm:$0xff] %v12651_v17  ;;  %v12655_v2 = vld [vmem:[#allocation2 + $0xe2] sm:$0xff] }
 0x3ae   : > { %13594 = vst [vmem:[#allocation28_spill] sm:$0xff] %v12655_v2 }
 0x3b0   : > { %9691 = vmatmul.mubr.msk.f32.gmra.mrb[14].mxu1 %vm223_vm0, %v12639_v47  ;;  %v12659_v47 = vld [vmem:[#allocation2 + $0xf2] sm:$0xff] }
 0x3b1   : > { %9693 = vmatprep.mubr.msk.f32.mxu1 %vm223_vm0, %v12643_v41  ;;  %13595 = vst [vmem:[#allocation29_spill] sm:$0xff] %v12659_v47  ;;  %v12663_v41 = vld [vmem:[#allocation2 + $0xfa] sm:$0xff] }
 0x3b2   : > { %13596 = vst [vmem:[#allocation30_spill] sm:$0xff] %v12663_v41 }
 0x3b4   : > { %9694 = vmatmul.mubr.msk.f32.gmra.mrb[16].mxu1 %vm223_vm0, %v12647_v49  ;;  %v12667_v49 = vld [vmem:[#allocation2 + $0x10a] sm:$0xff] }
 0x3b5   : > { %9696 = vmatprep.mubr.msk.f32.mxu1 %vm223_vm0, %v12651_v17  ;;  %13597 = vst [vmem:[#allocation31_spill] sm:$0xff] %v12667_v49  ;;  %v12671_v17 = vld [vmem:[#allocation2 + $0x112] sm:$0xff] }
 0x3b6   : > { %13598 = vst [vmem:[#allocation32_spill] sm:$0xff] %v12671_v17 }
 0x3b8   : > { %9697 = vmatmul.mubr.msk.f32.gmra.mrb[18].mxu1 %vm223_vm0, %v12655_v2  ;;  %v12675_v2 = vld [vmem:[#allocation2 + $0x122] sm:$0xff] }
 0x3b9   : > { %9699 = vmatprep.mubr.msk.f32.mxu1 %vm223_vm0, %v12659_v47  ;;  %13599 = vst [vmem:[#allocation33_spill] sm:$0xff] %v12675_v2  ;;  %v12679_v47 = vld [vmem:[#allocation2 + $0x12a] sm:$0xff] }
 0x3ba   : > { %13600 = vst [vmem:[#allocation34_spill] sm:$0xff] %v12679_v47 }
 0x3bc   : > { %9700 = vmatmul.mubr.msk.f32.gmra.mrb[20].mxu1 %vm223_vm0, %v12663_v41  ;;  %v12683_v41 = vld [vmem:[#allocation2 + $0x13a] sm:$0xff] }
 0x3bd   : > { %9702 = vmatprep.mubr.msk.f32.mxu1 %vm223_vm0, %v12667_v49  ;;  %13601 = vst [vmem:[#allocation35_spill] sm:$0xff] %v12683_v41  ;;  %v12687_v49 = vld [vmem:[#allocation2 + $0x142] sm:$0xff] }
 0x3be   : > { %13602 = vst [vmem:[#allocation36_spill] sm:$0xff] %v12687_v49 }
 0x3c0   : > { %9703 = vmatmul.mubr.msk.f32.gmra.mrb[22].mxu1 %vm223_vm0, %v12671_v17  ;;  %v12691_v17 = vld [vmem:[#allocation2 + $0x152] sm:$0xff] }
 0x3c1   : > { %9705 = vmatprep.mubr.msk.f32.mxu1 %vm223_vm0, %v12675_v2  ;;  %13603 = vst [vmem:[#allocation37_spill] sm:$0xff] %v12691_v17  ;;  %v12695_v2 = vld [vmem:[#allocation2 + $0x15a] sm:$0xff] }
 0x3c2   : > { %13604 = vst [vmem:[#allocation38_spill] sm:$0xff] %v12695_v2 }
 0x3c4   : > { %9706 = vmatmul.mubr.msk.f32.gmra.mrb[24].mxu1 %vm223_vm0, %v12679_v47  ;;  %v12699_v47 = vld [vmem:[#allocation2 + $0x16a] sm:$0xff] }
 0x3c5   : > { %9708 = vmatprep.mubr.msk.f32.mxu1 %vm223_vm0, %v12683_v41  ;;  %13605 = vst [vmem:[#allocation6_spill] sm:$0xff] %v12699_v47  ;;  %v12703_v41 = vld [vmem:[#allocation2 + $0x172] sm:$0xff] }
 0x3c6   : > { %13606 = vst [vmem:[#allocation7_spill] sm:$0xff] %v12703_v41 }
 0x3c8   : > { %9709 = vmatmul.mubr.msk.f32.gmra.mrb[26].mxu1 %vm223_vm0, %v12687_v49  ;;  %v5463_v49 = vld [vmem:[%s13376_s3 + $0x110] sm:$0xff] }
 0x3c9   : > { %9711 = vmatprep.mubr.msk.f32.mxu1 %vm223_vm0, %v12691_v17  ;;  %v5464_v17 = vld [vmem:[%s13376_s3 + $0x118] sm:$0xff] }
 0x3cc   : > { %9712 = vmatmul.mubr.msk.f32.gmra.mrb[28].mxu1 %vm223_vm0, %v12695_v2  ;;  %v10313_v2 = vpack.c.bf16 %v5464_v17, %v5463_v49  ;;  %v5468_v49 = vld [vmem:[%s13376_s3 + $0x138] sm:$0xff]  ;;  %v5856_v17 = vld [vmem:[%s13376_s3 + $0x150] sm:$0xff] }
 0x3cd   : > { %9714 = vmatprep.mubr.msk.f32.mxu1 %vm223_vm0, %v12699_v47  ;;  %v5465_v47 = vld [vmem:[%s13376_s3 + $0x120] sm:$0xff] }
 0x3d0   : > { %9715 = vmatmul.mubr.msk.f32.gmra.mrb[30].mxu1 %vm223_vm0, %v12703_v41  ;;  %v10317_v41 = vpack.c.bf16 %v5466_v22, %v5465_v47  ;;  %v5855_v22 = vld [vmem:[%s13376_s3 + $0x148] sm:$0xff] }
 0x3d1   : > { %9733 = vmatprep.mubr.msk.f32.mxu1 %vm223_vm0, %v12424_v54  ;;  %v5467_v54 = vld [vmem:[%s13376_s3 + $0x130] sm:$0xff] }
 0x3d4   : > { %9734 = vmatmul.mubr.msk.f32.vlgmr.msra.gmra.mrb[0].mxu1 %vm223_vm0, %v12429_v60  ;;  %v10321_v60 = vpack.c.bf16 %v5468_v49, %v5467_v54  ;;  %v5857_v54 = vld [vmem:[%s13376_s3 + $0x158] sm:$0xff] }
 0x3d5   : > { %9736 = vmatprep.mubr.msk.f32.mxu1 %vm223_vm0, %v12439_v6  ;;  %10312 = vmatpush3.bf16.msra.mxu1 %v10309_v32  ;;  %v5854_v32 = vld [vmem:[%s13376_s3 + $0x140] sm:$0xff]  ;;  %v10329_v49 = vpack.c.bf16 %v5857_v54, %v5856_v17  ;;  %v5861_v17 = vld [vmem:[%s13376_s3 + $0x178] sm:$0xff] }
 0x3d6   : > { %10314 = vmatprep.subr.bf16.mxu1 %v10313_v2  ;;  %v10325_v47 = vpack.c.bf16 %v5855_v22, %v5854_v32  ;;  %v5859_v32 = vld [vmem:[%s13376_s3 + $0x168] sm:$0xff]  ;;  %v6640_v54 = vld [vmem:[%s13376_s3 + $0x1c0] sm:$0xff] }
 0x3d8   : > { %9737 = vmatmul.mubr.msk.f32.gmra.mrb[2].mxu1 %vm223_vm0, %v12443_v19 }
 0x3d9   : > { %9739 = vmatprep.mubr.msk.f32.mxu1 %vm223_vm0, %v12453_v48  ;;  %10316 = vmatpush3.bf16.msra.mxu1 %v10313_v2  ;;  %v12791_v2 = vld [vmem:[#allocation2 + $0x180] sm:$0xff] }
 0x3da   : > { %10318 = vmatprep.subr.bf16.mxu1 %v10317_v41 }
 0x3dc   : > { %9740 = vmatmul.mubr.msk.f32.gmra.mrb[4].mxu1 %vm223_vm0, %v12459_v0 }
 0x3dd   : > { %9742 = vmatprep.mubr.msk.f32.mxu1 %vm223_vm0, %v12463_v3  ;;  %10320 = vmatpush3.bf16.msra.mxu1 %v10317_v41  ;;  %v12795_v41 = vld [vmem:[#allocation2 + $0x188] sm:$0xff] }
 0x3de   : > { %10322 = vmatprep.subr.bf16.mxu1 %v10321_v60 }
 0x3e0   : > { %9743 = vmatmul.mubr.msk.f32.gmra.mrb[6].mxu1 %vm223_vm0, %v12468_v4 }
 0x3e1   : > { %9745 = vmatprep.mubr.msk.f32.mxu1 %vm223_vm0, %v12472_v5  ;;  %10324 = vmatpush3.bf16.msra.mxu1 %v10321_v60  ;;  %v5858_v60 = vld [vmem:[%s13376_s3 + $0x160] sm:$0xff] }
 0x3e2   : > { %10326 = vmatprep.subr.bf16.mxu1 %v10325_v47  ;;  %v10333_v22 = vpack.c.bf16 %v5859_v32, %v5858_v60  ;;  %v13616_v60 = vld [vmem:[#allocation17_spill] sm:$0xff] }
 0x3e4   : > { %9746 = vmatmul.mubr.msk.f32.gmra.mrb[8].mxu1 %vm223_vm0, %v12476_v9 }
 0x3e5   : > { %9748 = vmatprep.mubr.msk.f32.mxu1 %vm223_vm0, %v12480_v11 }
 0x3e8   : > { %9749 = vmatmul.mubr.msk.f32.gmra.mrb[10].mxu1 %vm223_vm0, %v12484_v13 }
 0x3e9   : > { %9751 = vmatprep.mubr.msk.f32.mxu1 %vm223_vm0, %v12488_v61 }
 0x3ec   : > { %9752 = vmatmul.mubr.msk.f32.gmra.mrb[12].mxu1 %vm223_vm0, %v12492_v26 }
 0x3ed   : > { %9754 = vmatprep.mubr.msk.f32.mxu1 %vm223_vm0, %v12496_v28 }
 0x3f0   : > { %9755 = vmatmul.mubr.msk.f32.gmra.mrb[14].mxu1 %vm223_vm0, %v12500_v29 }
 0x3f1   : > { %9757 = vmatprep.mubr.msk.f32.mxu1 %vm223_vm0, %v12504_v31 }
 0x3f4   : > { %9758 = vmatmul.mubr.msk.f32.gmra.mrb[16].mxu1 %vm223_vm0, %v12508_v33 }
 0x3f5   : > { %9760 = vmatprep.mubr.msk.f32.mxu1 %vm223_vm0, %v12512_v24 }
 0x3f8   : > { %9761 = vmatmul.mubr.msk.f32.gmra.mrb[18].mxu1 %vm223_vm0, %v12516_v21 }
 0x3f9   : > { %9763 = vmatprep.mubr.msk.f32.mxu1 %vm223_vm0, %v12520_v43 }
 0x3fc   : > { %9764 = vmatmul.mubr.msk.f32.gmra.mrb[20].mxu1 %vm223_vm0, %v12524_v16 }
 0x3fd   : > { %9766 = vmatprep.mubr.msk.f32.mxu1 %vm223_vm0, %v12528_v39 }
 0x400   : > { %9767 = vmatmul.mubr.msk.f32.gmra.mrb[22].mxu1 %vm223_vm0, %v12532_v40 }
 0x401   : > { %9769 = vmatprep.mubr.msk.f32.mxu1 %vm223_vm0, %v12536_v45 }
 0x404   : > { %9770 = vmatmul.mubr.msk.f32.gmra.mrb[24].mxu1 %vm223_vm0, %v12540_v50 }
 0x405   : > { %9772 = vmatprep.mubr.msk.f32.mxu1 %vm223_vm0, %v12544_v52 }
 0x408   : > { %9773 = vmatmul.mubr.msk.f32.gmra.mrb[26].mxu1 %vm223_vm0, %v12548_v57 }
 0x409   : > { %9775 = vmatprep.mubr.msk.f32.mxu1 %vm223_vm0, %v12552_v20 }
 0x40c   : > { %9776 = vmatmul.mubr.msk.f32.gmra.mrb[28].mxu1 %vm223_vm0, %v12556_v63 }
 0x40d   : > { %9778 = vmatprep.mubr.msk.f32.mxu1 %vm223_vm0, %v12791_v2 }
 0x410   : > { %9779 = vmatmul.mubr.msk.f32.gmra.mrb[30].mxu1 %vm223_vm0, %v12795_v41 }
 0x411   : > { %9797 = vmatprep.mubr.msk.f32.mxu1 %vm223_vm0, %v12238_v25  ;;  %v5860_v25 = vld [vmem:[%s13376_s3 + $0x170] sm:$0xff] }
 0x414   : > { %9798 = vmatmul.mubr.msk.f32.vlgmr.msra.gmra.mrb[0].mxu1 %vm223_vm0, %v12244_v46  ;;  %v10337_v46 = vpack.c.bf16 %v5861_v17, %v5860_v25  ;;  %v13618_v25 = vld [vmem:[#allocation19_spill] sm:$0xff]  ;;  %v13619_v17 = vld [vmem:[#allocation20_spill] sm:$0xff] }
 0x415   : > { %9800 = vmatprep.mubr.msk.f32.mxu1 %vm223_vm0, %v12250_v55  ;;  %10328 = vmatpush3.bf16.msra.mxu1 %v10325_v47  ;;  %v6247_v55 = vld [vmem:[%s13376_s3 + $0x180] sm:$0xff]  ;;  %v6248_v47 = vld [vmem:[%s13376_s3 + $0x188] sm:$0xff] }
 0x416   : > { %10330 = vmatprep.subr.bf16.mxu1 %v10329_v49 }
 0x418   : > { %9801 = vmatmul.mubr.msk.f32.gmra.mrb[2].mxu1 %vm223_vm0, %v12256_v59  ;;  %v10341_v59 = vpack.c.bf16 %v6248_v47, %v6247_v55  ;;  %v13621_v55 = vld [vmem:[#allocation22_spill] sm:$0xff]  ;;  %v13622_v47 = vld [vmem:[#allocation23_spill] sm:$0xff] }
 0x419   : > { %9803 = vmatprep.mubr.msk.f32.mxu1 %vm223_vm0, %v12262_v8  ;;  %10332 = vmatpush3.bf16.msra.mxu1 %v10329_v49  ;;  %v13607_v8 = vld [vmem:[#allocation8_spill] sm:$0xff]  ;;  %v6641_v49 = vld [vmem:[%s13376_s3 + $0x1c8] sm:$0xff] }
 0x41a   : > { %10334 = vmatprep.subr.bf16.mxu1 %v10333_v22  ;;  %v10357_v32 = vpack.c.bf16 %v6641_v49, %v6640_v54  ;;  %v12979_v54 = vld [vmem:[#allocation2 + $0x18a] sm:$0xff] }
 0x41b   : > { %v6642_v49 = vld [vmem:[%s13376_s3 + $0x1d0] sm:$0xff] }
 0x41c   : > { %9804 = vmatmul.mubr.msk.f32.gmra.mrb[4].mxu1 %vm223_vm0, %v12268_v30  ;;  %v13608_v30 = vld [vmem:[#allocation9_spill] sm:$0xff] }
 0x41d   : > { %9806 = vmatprep.mubr.msk.f32.mxu1 %vm223_vm0, %v12274_v36  ;;  %10336 = vmatpush3.bf16.msra.mxu1 %v10333_v22  ;;  %v13609_v36 = vld [vmem:[#allocation10_spill] sm:$0xff]  ;;  %13641 = vst [vmem:[#allocation9_spill] sm:$0xff] %v12979_v54 }
 0x41e   : > { %10338 = vmatprep.subr.bf16.mxu1 %v10337_v46  ;;  %v13617_v22 = vld [vmem:[#allocation18_spill] sm:$0xff] }
 0x420   : > { %9807 = vmatmul.mubr.msk.f32.gmra.mrb[6].mxu1 %vm223_vm0, %v12280_v58  ;;  %v13610_v58 = vld [vmem:[#allocation11_spill] sm:$0xff] }
 0x421   : > { %9809 = vmatprep.mubr.msk.f32.mxu1 %vm223_vm0, %v12286_v7  ;;  %10340 = vmatpush3.bf16.msra.mxu1 %v10337_v46  ;;  %v13611_v7 = vld [vmem:[#allocation12_spill] sm:$0xff]  ;;  %v13620_v46 = vld [vmem:[#allocation21_spill] sm:$0xff] }
 0x422   : > { %10342 = vmatprep.subr.bf16.mxu1 %v10341_v59 }
 0x424   : > { %9810 = vmatmul.mubr.msk.f32.gmra.mrb[8].mxu1 %vm223_vm0, %v12292_v10  ;;  %v13612_v10 = vld [vmem:[#allocation13_spill] sm:$0xff] }
 0x425   : > { %9812 = vmatprep.mubr.msk.f32.mxu1 %vm223_vm0, %v12298_v62  ;;  %v12883_v62 = vld [vmem:[#allocation2 + $0x181] sm:$0xff] }
 0x428   : > { %9813 = vmatmul.mubr.msk.f32.gmra.mrb[10].mxu1 %vm223_vm0, %v12304_v27  ;;  %v12887_v27 = vld [vmem:[#allocation2 + $0x189] sm:$0xff] }
 0x429   : > { %9815 = vmatprep.mubr.msk.f32.mxu1 %vm223_vm0, %v12310_v38  ;;  %v6249_v38 = vld [vmem:[%s13376_s3 + $0x190] sm:$0xff] }
 0x42c   : > { %9816 = vmatmul.mubr.msk.f32.gmra.mrb[12].mxu1 %vm223_vm0, %v12316_v42  ;;  %v6250_v42 = vld [vmem:[%s13376_s3 + $0x198] sm:$0xff] }
 0x42d   : > { %9818 = vmatprep.mubr.msk.f32.mxu1 %vm223_vm0, %v12322_v37  ;;  %v13613_v37 = vld [vmem:[#allocation14_spill] sm:$0xff] }
 0x430   : > { %9819 = vmatmul.mubr.msk.f32.gmra.mrb[14].mxu1 %vm223_vm0, %v12328_v35  ;;  %v10345_v35 = vpack.c.bf16 %v6250_v42, %v6249_v38  ;;  %v13630_v38 = vld [vmem:[#allocation31_spill] sm:$0xff]  ;;  %v13631_v42 = vld [vmem:[#allocation32_spill] sm:$0xff] }
 0x431   : > { %9821 = vmatprep.mubr.msk.f32.mxu1 %vm223_vm0, %v12334_v51  ;;  %v6251_v51 = vld [vmem:[%s13376_s3 + $0x1a0] sm:$0xff] }
 0x434   : > { %9822 = vmatmul.mubr.msk.f32.gmra.mrb[16].mxu1 %vm223_vm0, %v12340_v53  ;;  %v6252_v53 = vld [vmem:[%s13376_s3 + $0x1a8] sm:$0xff] }
 0x435   : > { %9824 = vmatprep.mubr.msk.f32.mxu1 %vm223_vm0, %v12346_v23  ;;  %v13614_v23 = vld [vmem:[#allocation15_spill] sm:$0xff] }
 0x438   : > { %9825 = vmatmul.mubr.msk.f32.gmra.mrb[18].mxu1 %vm223_vm0, %v12352_v15  ;;  %v10349_v15 = vpack.c.bf16 %v6252_v53, %v6251_v51  ;;  %v13634_v51 = vld [vmem:[#allocation35_spill] sm:$0xff]  ;;  %v13635_v53 = vld [vmem:[#allocation36_spill] sm:$0xff] }
 0x439   : > { %9827 = vmatprep.mubr.msk.f32.mxu1 %vm223_vm0, %v12358_v56  ;;  %v6253_v56 = vld [vmem:[%s13376_s3 + $0x1b0] sm:$0xff] }
 0x43c   : > { %9828 = vmatmul.mubr.msk.f32.gmra.mrb[20].mxu1 %vm223_vm0, %v12364_v1  ;;  %v6254_v1 = vld [vmem:[%s13376_s3 + $0x1b8] sm:$0xff] }
 0x43d   : > { %9830 = vmatprep.mubr.msk.f32.mxu1 %vm223_vm0, %v12370_v12  ;;  %v13615_v12 = vld [vmem:[#allocation16_spill] sm:$0xff] }
 0x440   : > { %9831 = vmatmul.mubr.msk.f32.gmra.mrb[22].mxu1 %vm223_vm0, %v12376_v14  ;;  %v10353_v14 = vpack.c.bf16 %v6254_v1, %v6253_v56  ;;  %v13638_v56 = vld [vmem:[#allocation6_spill] sm:$0xff]  ;;  %v13639_v1 = vld [vmem:[#allocation7_spill] sm:$0xff] }
 0x441   : > { %9833 = vmatprep.mubr.msk.f32.mxu1 %vm223_vm0, %v13607_v8  ;;  %v13624_v8 = vld [vmem:[#allocation25_spill] sm:$0xff] }
 0x444   : > { %9834 = vmatmul.mubr.msk.f32.gmra.mrb[24].mxu1 %vm223_vm0, %v13608_v30  ;;  %v13625_v30 = vld [vmem:[#allocation26_spill] sm:$0xff] }
 0x445   : > { %9836 = vmatprep.mubr.msk.f32.mxu1 %vm223_vm0, %v13609_v36  ;;  %v13626_v36 = vld [vmem:[#allocation27_spill] sm:$0xff] }
 0x448   : > { %9837 = vmatmul.mubr.msk.f32.gmra.mrb[26].mxu1 %vm223_vm0, %v13610_v58  ;;  %v13627_v58 = vld [vmem:[#allocation28_spill] sm:$0xff] }
 0x449   : > { %9839 = vmatprep.mubr.msk.f32.mxu1 %vm223_vm0, %v13611_v7  ;;  %v13628_v7 = vld [vmem:[#allocation29_spill] sm:$0xff] }
 0x44c   : > { %9840 = vmatmul.mubr.msk.f32.gmra.mrb[28].mxu1 %vm223_vm0, %v13612_v10  ;;  %v13629_v10 = vld [vmem:[#allocation30_spill] sm:$0xff] }
 0x44d   : > { %9842 = vmatprep.mubr.msk.f32.mxu1 %vm223_vm0, %v12883_v62 }
 0x450   : > { %9843 = vmatmul.mubr.msk.f32.gmra.mrb[30].mxu1 %vm223_vm0, %v12887_v27 }
 0x451   : > { %9861 = vmatprep.mubr.msk.f32.mxu1 %vm223_vm0, %v13613_v37  ;;  %v13632_v37 = vld [vmem:[#allocation33_spill] sm:$0xff] }
 0x454   : > { %9862 = vmatmul.mubr.msk.f32.vlgmr.msra.gmra.mrb[0].mxu1 %vm223_vm0, %v13614_v23  ;;  %v13636_v23 = vld [vmem:[#allocation37_spill] sm:$0xff] }
 0x455   : > { %9864 = vmatprep.mubr.msk.f32.mxu1 %vm223_vm0, %v12589_v34  ;;  %10344 = vmatpush3.bf16.msra.mxu1 %v10341_v59  ;;  %v13623_v59 = vld [vmem:[#allocation24_spill] sm:$0xff] }
 0x456   : > { %10346 = vmatprep.subr.bf16.mxu1 %v10345_v35 }
 0x458   : > { %9865 = vmatmul.mubr.msk.f32.gmra.mrb[2].mxu1 %vm223_vm0, %v13615_v12 }
 0x459   : > { %9867 = vmatprep.mubr.msk.f32.mxu1 %vm223_vm0, %v12603_v44  ;;  %10348 = vmatpush3.bf16.msra.mxu1 %v10345_v35  ;;  %v13633_v35 = vld [vmem:[#allocation34_spill] sm:$0xff] }
 0x45a   : > { %10350 = vmatprep.subr.bf16.mxu1 %v10349_v15 }
 0x45c   : > { %9868 = vmatmul.mubr.msk.f32.gmra.mrb[4].mxu1 %vm223_vm0, %v12607_v18 }
 0x45d   : > { %9870 = vmatprep.mubr.msk.f32.mxu1 %vm223_vm0, %v13616_v60  ;;  %10352 = vmatpush3.bf16.msra.mxu1 %v10349_v15  ;;  %v13637_v15 = vld [vmem:[#allocation38_spill] sm:$0xff] }
 0x45e   : > { %10354 = vmatprep.subr.bf16.mxu1 %v10353_v14 }
 0x460   : > { %9871 = vmatmul.mubr.msk.f32.gmra.mrb[6].mxu1 %vm223_vm0, %v13617_v22 }
 0x461   : > { %9873 = vmatprep.mubr.msk.f32.mxu1 %vm223_vm0, %v13618_v25  ;;  %10356 = vmatpush3.bf16.msra.mxu1 %v10353_v14  ;;  %v12975_v14 = vld [vmem:[#allocation2 + $0x182] sm:$0xff] }
 0x462   : > { %10358 = vmatprep.subr.bf16.mxu1 %v10357_v32  ;;  %13640 = vst [vmem:[#allocation8_spill] sm:$0xff] %v12975_v14 }
 0x464   : > { %9874 = vmatmul.mubr.msk.f32.gmra.mrb[8].mxu1 %vm223_vm0, %v13619_v17 }
 0x465   : > { %9876 = vmatprep.mubr.msk.f32.mxu1 %vm223_vm0, %v13620_v46 }
 0x468   : > { %9877 = vmatmul.mubr.msk.f32.gmra.mrb[10].mxu1 %vm223_vm0, %v13621_v55 }
 0x469   : > { %9879 = vmatprep.mubr.msk.f32.mxu1 %vm223_vm0, %v13622_v47 }
 0x46c   : > { %9880 = vmatmul.mubr.msk.f32.gmra.mrb[12].mxu1 %vm223_vm0, %v13623_v59 }
 0x46d   : > { %9882 = vmatprep.mubr.msk.f32.mxu1 %vm223_vm0, %v13624_v8 }
 0x470   : > { %9883 = vmatmul.mubr.msk.f32.gmra.mrb[14].mxu1 %vm223_vm0, %v13625_v30 }
 0x471   : > { %9885 = vmatprep.mubr.msk.f32.mxu1 %vm223_vm0, %v13626_v36 }
 0x474   : > { %9886 = vmatmul.mubr.msk.f32.gmra.mrb[16].mxu1 %vm223_vm0, %v13627_v58 }
 0x475   : > { %9888 = vmatprep.mubr.msk.f32.mxu1 %vm223_vm0, %v13628_v7 }
 0x478   : > { %9889 = vmatmul.mubr.msk.f32.gmra.mrb[18].mxu1 %vm223_vm0, %v13629_v10 }
 0x479   : > { %9891 = vmatprep.mubr.msk.f32.mxu1 %vm223_vm0, %v13630_v38 }
 0x47c   : > { %9892 = vmatmul.mubr.msk.f32.gmra.mrb[20].mxu1 %vm223_vm0, %v13631_v42 }
 0x47d   : > { %9894 = vmatprep.mubr.msk.f32.mxu1 %vm223_vm0, %v13632_v37 }
 0x480   : > { %9895 = vmatmul.mubr.msk.f32.gmra.mrb[22].mxu1 %vm223_vm0, %v13633_v35 }
 0x481   : > { %9897 = vmatprep.mubr.msk.f32.mxu1 %vm223_vm0, %v13634_v51 }
 0x484   : > { %9898 = vmatmul.mubr.msk.f32.gmra.mrb[24].mxu1 %vm223_vm0, %v13635_v53 }
 0x485   : > { %9900 = vmatprep.mubr.msk.f32.mxu1 %vm223_vm0, %v13636_v23 }
 0x488   : > { %9901 = vmatmul.mubr.msk.f32.gmra.mrb[26].mxu1 %vm223_vm0, %v13637_v15  ;;  %v6643_v15 = vld [vmem:[%s13376_s3 + $0x1d8] sm:$0xff] }
 0x489   : > { %9903 = vmatprep.mubr.msk.f32.mxu1 %vm223_vm0, %v13638_v56  ;;  %v6645_v56 = vld [vmem:[%s13376_s3 + $0x1e8] sm:$0xff] }
 0x48c   : > { %9904 = vmatmul.mubr.msk.f32.gmra.mrb[28].mxu1 %vm223_vm0, %v13639_v1  ;;  %v10361_v1 = vpack.c.bf16 %v6643_v15, %v6642_v49  ;;  %v6647_v15 = vld [vmem:[%s13376_s3 + $0x1f8] sm:$0xff] }
 0x48d   : > { %9906 = vmatprep.mubr.msk.f32.mxu1 %vm223_vm0, %v12975_v14  ;;  %v6644_v14 = vld [vmem:[%s13376_s3 + $0x1e0] sm:$0xff]  ;;  %v6627_v49 = vld [vmem:[#allocation2 + $0x111] sm:$0xff] }
 0x490   : > { %9907 = vmatmul.mubr.msk.f32.gmra.mrb[30].mxu1 %vm223_vm0, %v12979_v54  ;;  %v10365_v54 = vpack.c.bf16 %v6645_v56, %v6644_v14  ;;  %v6623_v56 = vld [vmem:[#allocation2 + $0xe1] sm:$0xff]  ;;  %v6625_v14 = vld [vmem:[#allocation2 + $0xf9] sm:$0xff] }
 0x491   : > { %9925 = vmatprep.mubr.msk.f32.mxu1 %vm223_vm0, %v12439_v6  ;;  %v6646_v6 = vld [vmem:[%s13376_s3 + $0x1f0] sm:$0xff] }
 0x494   : > { %9926 = vmatmul.mubr.msk.f32.vlgmr.msra.gmra.mrb[0].mxu1 %vm223_vm0, %v12443_v19  ;;  %v10369_v19 = vpack.c.bf16 %v6647_v15, %v6646_v6  ;;  %v6628_v6 = vld [vmem:[#allocation2 + $0x121] sm:$0xff]  ;;  %v6629_v15 = vld [vmem:[#allocation2 + $0x129] sm:$0xff] }
 0x495   : > { %9928 = vmatprep.mubr.msk.f32.mxu1 %vm223_vm0, %v12453_v48  ;;  %10360 = vmatpush3.bf16.msra.mxu1 %v10357_v32  ;;  %v7033_v48 = vld [vmem:[%s13376_s3 + $0x200] sm:$0xff]  ;;  %v7034_v32 = vld [vmem:[%s13376_s3 + $0x208] sm:$0xff] }
 0x496   : > { %10362 = vmatprep.subr.bf16.mxu1 %v10361_v1 }
 0x498   : > { %9929 = vmatmul.mubr.msk.f32.gmra.mrb[2].mxu1 %vm223_vm0, %v12459_v0  ;;  %v10373_v0 = vpack.c.bf16 %v7034_v32, %v7033_v48  ;;  %v6631_v48 = vld [vmem:[#allocation2 + $0x141] sm:$0xff]  ;;  %v6632_v32 = vld [vmem:[#allocation2 + $0x151] sm:$0xff] }
 0x499   : > { %9931 = vmatprep.mubr.msk.f32.mxu1 %vm223_vm0, %v12463_v3  ;;  %10364 = vmatpush3.bf16.msra.mxu1 %v10361_v1  ;;  %v6245_v3 = vld [vmem:[#allocation2 + $0x198] sm:$0xff] }
 0x49a   : > { %10366 = vmatprep.subr.bf16.mxu1 %v10365_v54  ;;  %v6624_v1 = vld [vmem:[#allocation2 + $0xf1] sm:$0xff] }
 0x49c   : > { %9932 = vmatmul.mubr.msk.f32.gmra.mrb[4].mxu1 %vm223_vm0, %v12468_v4  ;;  %v6246_v4 = vld [vmem:[#allocation2 + $0x1a0] sm:$0xff] }
 0x49d   : > { %9934 = vmatprep.mubr.msk.f32.mxu1 %vm223_vm0, %v12472_v5  ;;  %10368 = vmatpush3.bf16.msra.mxu1 %v10365_v54  ;;  %v7035_v5 = vld [vmem:[%s13376_s3 + $0x210] sm:$0xff] }
 0x49e   : > { %10370 = vmatprep.subr.bf16.mxu1 %v10369_v19  ;;  %v6626_v54 = vld [vmem:[#allocation2 + $0x109] sm:$0xff] }
 0x4a0   : > { %9935 = vmatmul.mubr.msk.f32.gmra.mrb[6].mxu1 %vm223_vm0, %v12476_v9  ;;  %v7036_v9 = vld [vmem:[%s13376_s3 + $0x218] sm:$0xff] }
 0x4a1   : > { %9937 = vmatprep.mubr.msk.f32.mxu1 %vm223_vm0, %v12480_v11  ;;  %10372 = vmatpush3.bf16.msra.mxu1 %v10369_v19  ;;  %v6608_v11 = vld [vmem:[#allocation2 + $0x31] sm:$0xff]  ;;  %v6630_v19 = vld [vmem:[#allocation2 + $0x139] sm:$0xff] }
 0x4a2   : > { %10374 = vmatprep.subr.bf16.mxu1 %v10373_v0 }
 0x4a4   : > { %9938 = vmatmul.mubr.msk.f32.gmra.mrb[8].mxu1 %vm223_vm0, %v12484_v13  ;;  %v10377_v13 = vpack.c.bf16 %v7036_v9, %v7035_v5  ;;  %v6638_v5 = vld [vmem:[#allocation2 + $0x199] sm:$0xff]  ;;  %v6639_v9 = vld [vmem:[#allocation2 + $0x1a1] sm:$0xff] }
 0x4a5   : > { %9940 = vmatprep.mubr.msk.f32.mxu1 %vm223_vm0, %v12488_v61  ;;  %v6609_v61 = vld [vmem:[#allocation2 + $0x39] sm:$0xff] }
 0x4a8   : > { %9941 = vmatmul.mubr.msk.f32.gmra.mrb[10].mxu1 %vm223_vm0, %v12492_v26  ;;  %v7037_v26 = vld [vmem:[%s13376_s3 + $0x220] sm:$0xff] }
 0x4a9   : > { %9943 = vmatprep.mubr.msk.f32.mxu1 %vm223_vm0, %v12496_v28  ;;  %v7038_v28 = vld [vmem:[%s13376_s3 + $0x228] sm:$0xff] }
 0x4ac   : > { %9944 = vmatmul.mubr.msk.f32.gmra.mrb[12].mxu1 %vm223_vm0, %v12500_v29  ;;  %v6610_v29 = vld [vmem:[#allocation2 + $0x49] sm:$0xff] }
 0x4ad   : > { %9946 = vmatprep.mubr.msk.f32.mxu1 %vm223_vm0, %v12504_v31  ;;  %v10381_v31 = vpack.c.bf16 %v7038_v28, %v7037_v26  ;;  %v7470_v28 = vld [vmem:[%s11172_s9 + $0x28] sm:$0xff] }
 0x4b0   : > { %9947 = vmatmul.mubr.msk.f32.gmra.mrb[14].mxu1 %vm223_vm0, %v12508_v33  ;;  %v6611_v33 = vld [vmem:[#allocation2 + $0x51] sm:$0xff] }
 0x4b1   : > { %9949 = vmatprep.mubr.msk.f32.mxu1 %vm223_vm0, %v12512_v24  ;;  %v7039_v24 = vld [vmem:[%s13376_s3 + $0x230] sm:$0xff] }
 0x4b4   : > { %9950 = vmatmul.mubr.msk.f32.gmra.mrb[16].mxu1 %vm223_vm0, %v12516_v21  ;;  %v7040_v21 = vld [vmem:[%s13376_s3 + $0x238] sm:$0xff] }
 0x4b5   : > { %9952 = vmatprep.mubr.msk.f32.mxu1 %vm223_vm0, %v12520_v43  ;;  %v6612_v43 = vld [vmem:[#allocation2 + $0x61] sm:$0xff] }
 0x4b8   : > { %9953 = vmatmul.mubr.msk.f32.gmra.mrb[18].mxu1 %vm223_vm0, %v12524_v16  ;;  %v10385_v16 = vpack.c.bf16 %v7040_v21, %v7039_v24 }
 0x4b9   : > { %9955 = vmatprep.mubr.msk.f32.mxu1 %vm223_vm0, %v12528_v39  ;;  %v6613_v39 = vld [vmem:[#allocation2 + $0x69] sm:$0xff] }
 0x4bc   : > { %9956 = vmatmul.mubr.msk.f32.gmra.mrb[20].mxu1 %vm223_vm0, %v12532_v40  ;;  %v6614_v40 = vld [vmem:[#allocation2 + $0x79] sm:$0xff] }
 0x4bd   : > { %9958 = vmatprep.mubr.msk.f32.mxu1 %vm223_vm0, %v12536_v45  ;;  %v6615_v45 = vld [vmem:[#allocation2 + $0x81] sm:$0xff] }
 0x4c0   : > { %9959 = vmatmul.mubr.msk.f32.gmra.mrb[22].mxu1 %vm223_vm0, %v12540_v50  ;;  %v6616_v50 = vld [vmem:[#allocation2 + $0x91] sm:$0xff] }
 0x4c1   : > { %9961 = vmatprep.mubr.msk.f32.mxu1 %vm223_vm0, %v12544_v52  ;;  %v6617_v52 = vld [vmem:[#allocation2 + $0x99] sm:$0xff] }
 0x4c4   : > { %9962 = vmatmul.mubr.msk.f32.gmra.mrb[24].mxu1 %vm223_vm0, %v12548_v57  ;;  %v6618_v57 = vld [vmem:[#allocation2 + $0xa9] sm:$0xff] }
 0x4c5   : > { %9964 = vmatprep.mubr.msk.f32.mxu1 %vm223_vm0, %v12552_v20  ;;  %v6619_v20 = vld [vmem:[#allocation2 + $0xb1] sm:$0xff] }
 0x4c8   : > { %9965 = vmatmul.mubr.msk.f32.gmra.mrb[26].mxu1 %vm223_vm0, %v12556_v63  ;;  %v6620_v63 = vld [vmem:[#allocation2 + $0xc1] sm:$0xff] }
 0x4c9   : > { %9967 = vmatprep.mubr.msk.f32.mxu1 %vm223_vm0, %v12791_v2  ;;  %v6621_v2 = vld [vmem:[#allocation2 + $0xc9] sm:$0xff] }
 0x4cc   : > { %9968 = vmatmul.mubr.msk.f32.gmra.mrb[28].mxu1 %vm223_vm0, %v12795_v41  ;;  %v6622_v41 = vld [vmem:[#allocation2 + $0xd9] sm:$0xff] }
 0x4cd   : > { %9970 = vmatprep.mubr.msk.f32.mxu1 %vm223_vm0, %v6245_v3  ;;  %v6634_v3 = vld [vmem:[#allocation2 + $0x169] sm:$0xff] }
 0x4d0   : > { %9971 = vmatmul.mubr.msk.f32.gmra.mrb[30].mxu1 %vm223_vm0, %v6246_v4  ;;  %v6635_v4 = vld [vmem:[#allocation2 + $0x171] sm:$0xff] }
 0x4d1   : > { %9989 = vmatprep.mubr.msk.f32.mxu1 %vm223_vm0, %v6608_v11 }
 0x4d4   : > { %9990 = vmatmul.mubr.msk.f32.vlgmr.msra.gmra.mrb[0].mxu1 %vm223_vm0, %v6609_v61 }
 0x4d5   : > { %9992 = vmatprep.mubr.msk.f32.mxu1 %vm223_vm0, %v6610_v29  ;;  %10376 = vmatpush3.bf16.msra.mxu1 %v10373_v0  ;;  %v6633_v0 = vld [vmem:[#allocation2 + $0x159] sm:$0xff] }
 0x4d6   : > { %10378 = vmatprep.subr.bf16.mxu1 %v10377_v13 }
 0x4d8   : > { %9993 = vmatmul.mubr.msk.f32.gmra.mrb[2].mxu1 %vm223_vm0, %v6611_v33  ;;  %v7469_v33 = vld [vmem:[%s11172_s9 + $0x20] sm:$0xff] }
 0x4d9   : > { %9995 = vmatprep.mubr.msk.f32.mxu1 %vm223_vm0, %v6612_v43  ;;  %10380 = vmatpush3.bf16.msra.mxu1 %v10377_v13 }
 0x4da   : > { %10382 = vmatprep.subr.bf16.mxu1 %v10381_v31 }
 0x4dc   : > { %9996 = vmatmul.mubr.msk.f32.gmra.mrb[4].mxu1 %vm223_vm0, %v6613_v39 }
 0x4dd   : > { %9998 = vmatprep.mubr.msk.f32.mxu1 %vm223_vm0, %v6614_v40  ;;  %10384 = vmatpush3.bf16.msra.mxu1 %v10381_v31 }
 0x4de   : > { %10386 = vmatprep.subr.bf16.mxu1 %v10385_v16 }
 0x4e0   : > { %9999 = vmatmul.mubr.msk.f32.gmra.mrb[6].mxu1 %vm223_vm0, %v6615_v45  ;;  %v7472_v45 = vld [vmem:[%s11172_s9 + $0x38] sm:$0xff] }
 0x4e1   : > { %10001 = vmatprep.mubr.msk.f32.mxu1 %vm223_vm0, %v6616_v50  ;;  %10388 = vmatpush3.bf16.msra.mxu1 %v10385_v16 }
 0x4e4   : > { %10002 = vmatmul.mubr.msk.f32.gmra.mrb[8].mxu1 %vm223_vm0, %v6617_v52 }
 0x4e5   : > { %10004 = vmatprep.mubr.msk.f32.mxu1 %vm223_vm0, %v6618_v57  ;;  %v7471_v57 = vld [vmem:[%s11172_s9 + $0x30] sm:$0xff] }
 0x4e8   : > { %10005 = vmatmul.mubr.msk.f32.gmra.mrb[10].mxu1 %vm223_vm0, %v6619_v20 }
 0x4e9   : > { %10007 = vmatprep.mubr.msk.f32.mxu1 %vm223_vm0, %v6620_v63 }
 0x4ec   : > { %10008 = vmatmul.mubr.msk.f32.gmra.mrb[12].mxu1 %vm223_vm0, %v6621_v2 }
 0x4ed   : > { %10010 = vmatprep.mubr.msk.f32.mxu1 %vm223_vm0, %v6622_v41 }
 0x4f0   : > { %10011 = vmatmul.mubr.msk.f32.gmra.mrb[14].mxu1 %vm223_vm0, %v6623_v56 }
 0x4f1   : > { %10013 = vmatprep.mubr.msk.f32.mxu1 %vm223_vm0, %v6624_v1 }
 0x4f4   : > { %10014 = vmatmul.mubr.msk.f32.gmra.mrb[16].mxu1 %vm223_vm0, %v6625_v14  ;;  %v7474_v14 = vld [vmem:[%s11172_s9 + $0x48] sm:$0xff] }
 0x4f5   : > { %10016 = vmatprep.mubr.msk.f32.mxu1 %vm223_vm0, %v6626_v54 }
 0x4f8   : > { %10017 = vmatmul.mubr.msk.f32.gmra.mrb[18].mxu1 %vm223_vm0, %v6627_v49 }
 0x4f9   : > { %10019 = vmatprep.mubr.msk.f32.mxu1 %vm223_vm0, %v6628_v6  ;;  %v7473_v6 = vld [vmem:[%s11172_s9 + $0x40] sm:$0xff] }
 0x4fc   : > { %10020 = vmatmul.mubr.msk.f32.gmra.mrb[20].mxu1 %vm223_vm0, %v6629_v15 }
 0x4fd   : > { %10022 = vmatprep.mubr.msk.f32.mxu1 %vm223_vm0, %v6630_v19 }
 0x500   : > { %10023 = vmatmul.mubr.msk.f32.gmra.mrb[22].mxu1 %vm223_vm0, %v6631_v48 }
 0x501   : > { %10025 = vmatprep.mubr.msk.f32.mxu1 %vm223_vm0, %v6632_v32 }
 0x504   : > { %10026 = vmatmul.mubr.msk.f32.gmra.mrb[24].mxu1 %vm223_vm0, %v6633_v0 }
 0x505   : > { %10028 = vmatprep.mubr.msk.f32.mxu1 %vm223_vm0, %v6634_v3 }
 0x508   : > { %10029 = vmatmul.mubr.msk.f32.gmra.mrb[26].mxu1 %vm223_vm0, %v6635_v4  ;;  %v7476_v4 = vld [vmem:[%s11172_s9 + $0x58] sm:$0xff] }
 0x509   : > { %10031 = vmatprep.mubr.msk.f32.mxu1 %vm223_vm0, %v12883_v62  ;;  %v13645_v62 = vld [vmem:[#allocation8_spill] sm:$0xff] }
 0x50c   : > { %10032 = vmatmul.mubr.msk.f32.gmra.mrb[28].mxu1 %vm223_vm0, %v12887_v27  ;;  %v7031_v27 = vld [vmem:[#allocation2 + $0x19a] sm:$0xff] }
 0x50d   : > { %10034 = vmatprep.mubr.msk.f32.mxu1 %vm223_vm0, %v6638_v5 }
 0x510   : > { %10035 = vmatmul.mubr.msk.f32.gmra.mrb[30].mxu1 %vm223_vm0, %v6639_v9 }
 0x511   : > { %10053 = vmatprep.mubr.msk.f32.mxu1 %vm223_vm0, %v12589_v34  ;;  %v13643_v34 = vld [vmem:[#allocation6_spill] sm:$0xff] }
 0x514   : > { %10054 = vmatmul.mubr.msk.f32.vlgmr.msra.gmra.mrb[0].mxu1 %vm223_vm0, %v13615_v12  ;;  %v13646_v12 = vld [vmem:[#allocation9_spill] sm:$0xff] }
 0x515   : > { %10056 = vmatprep.mubr.msk.f32.mxu1 %vm223_vm0, %v12603_v44  ;;  %v13642_v44 = vld [vmem:[#allocation38_spill] sm:$0xff] }
 0x518   : > { %10057 = vmatmul.mubr.msk.f32.gmra.mrb[2].mxu1 %vm223_vm0, %v12607_v18  ;;  %v13644_v18 = vld [vmem:[#allocation7_spill] sm:$0xff] }
 0x519   : > { %10059 = vmatprep.mubr.msk.f32.mxu1 %vm223_vm0, %v13616_v60  ;;  %v7032_v60 = vld [vmem:[#allocation2 + $0x1a2] sm:$0xff] }
 0x51c   : > { %10060 = vmatmul.mubr.msk.f32.gmra.mrb[4].mxu1 %vm223_vm0, %v13617_v22  ;;  %v13187_v22 = vld [vmem:[%s13377_s4] ss:$0 sm:$0xff] }
 0x51d   : > { %10062 = vmatprep.mubr.msk.f32.mxu1 %vm223_vm0, %v13618_v25 }
 0x520   : > { %10063 = vmatmul.mubr.msk.f32.gmra.mrb[6].mxu1 %vm223_vm0, %v13619_v17 }
 0x521   : > { %10065 = vmatprep.mubr.msk.f32.mxu1 %vm223_vm0, %v13620_v46 }
 0x524   : > { %10066 = vmatmul.mubr.msk.f32.gmra.mrb[8].mxu1 %vm223_vm0, %v13621_v55  ;;  %v7466_v55 = vld [vmem:[%s11172_s9 + $0x8] sm:$0xff] }
 0x525   : > { %10068 = vmatprep.mubr.msk.f32.mxu1 %vm223_vm0, %v13622_v47 }
 0x528   : > { %10069 = vmatmul.mubr.msk.f32.gmra.mrb[10].mxu1 %vm223_vm0, %v13623_v59 }
 0x529   : > { %10071 = vmatprep.mubr.msk.f32.mxu1 %vm223_vm0, %v13624_v8  ;;  %v7465_v8 = vld [vmem:[%s11172_s9] sm:$0xff] }
 0x52c   : > { %10072 = vmatmul.mubr.msk.f32.gmra.mrb[12].mxu1 %vm223_vm0, %v13625_v30 }
 0x52d   : > { %10074 = vmatprep.mubr.msk.f32.mxu1 %vm223_vm0, %v13626_v36 }
 0x530   : > { %10075 = vmatmul.mubr.msk.f32.gmra.mrb[14].mxu1 %vm223_vm0, %v13627_v58 }
 0x531   : > { %10077 = vmatprep.mubr.msk.f32.mxu1 %vm223_vm0, %v13628_v7 }
 0x534   : > { %10078 = vmatmul.mubr.msk.f32.gmra.mrb[16].mxu1 %vm223_vm0, %v13629_v10 }
 0x535   : > { %10080 = vmatprep.mubr.msk.f32.mxu1 %vm223_vm0, %v13630_v38 }
 0x538   : > { %10081 = vmatmul.mubr.msk.f32.gmra.mrb[18].mxu1 %vm223_vm0, %v13631_v42  ;;  %v7468_v42 = vld [vmem:[%s11172_s9 + $0x18] sm:$0xff] }
 0x539   : > { %10083 = vmatprep.mubr.msk.f32.mxu1 %vm223_vm0, %v13632_v37 }
 0x53c   : > { %10084 = vmatmul.mubr.msk.f32.gmra.mrb[20].mxu1 %vm223_vm0, %v13633_v35 }
 0x53d   : > { %10086 = vmatprep.mubr.msk.f32.mxu1 %vm223_vm0, %v13634_v51  ;;  %v7467_v51 = vld [vmem:[%s11172_s9 + $0x10] sm:$0xff] }
 0x540   : > { %10087 = vmatmul.mubr.msk.f32.gmra.mrb[22].mxu1 %vm223_vm0, %v13635_v53 }
 0x541   : > { %10089 = vmatprep.mubr.msk.f32.mxu1 %vm223_vm0, %v13636_v23 }
 0x544   : > { %10090 = vmatmul.mubr.msk.f32.gmra.mrb[24].mxu1 %vm223_vm0, %v13642_v44  ;;  %v7475_v44 = vld [vmem:[%s11172_s9 + $0x50] sm:$0xff] }
 0x545   : > { %10092 = vmatprep.mubr.msk.f32.mxu1 %vm223_vm0, %v13643_v34 }
 0x548   : > { %10093 = vmatmul.mubr.msk.f32.gmra.mrb[26].mxu1 %vm223_vm0, %v13644_v18 }
 0x549   : > { %10095 = vmatprep.mubr.msk.f32.mxu1 %vm223_vm0, %v13645_v62 }
 0x54c   : > { %10096 = vmatmul.mubr.msk.f32.gmra.mrb[28].mxu1 %vm223_vm0, %v13646_v12 }
 0x54d   : > { %10098 = vmatprep.mubr.msk.f32.mxu1 %vm223_vm0, %v7031_v27 }
 0x550   : > { %10099 = vmatmul.mubr.msk.f32.gmra.mrb[30].mxu1 %vm223_vm0, %v7032_v60 }
 0x5e7   : > { %v10055_v25 = vpop.f32.mrb[0].mxu1 }
 0x5e8   : > { %v7402_v17 = vadd.f32 %v10055_v25, %v13187_v22  ;;  %v7203_v46 = vpop.f32.mrb[1].mxu1  ;;  %v7478_v25 = vld [vmem:[%s11172_s9 + $0x68] sm:$0xff] }
 0x5e9   : > { %v7401_v47 = vadd.f32 %v13187_v22, %v7203_v46 }
 0x5ea   : > { %v7434_v59 = vmul.f32 0.5, %v7402_v17 }
 0x5eb   : > { %v7433_v30 = vmul.f32 0.5, %v7401_v47  ;;  %v10058_v36 = vpop.f32.mrb[2].mxu1 }
 0x5ec   : > { %v7498_v58 = vadd.f32 %v7466_v55, %v7434_v59  ;;  %v7404_v7 = vadd.f32 %v10058_v36, %v13187_v22  ;;  %v7213_v10 = vpop.f32.mrb[3].mxu1  ;;  %v7477_v55 = vld [vmem:[%s11172_s9 + $0x60] sm:$0xff] }
 0x5ed   : > { %v7497_v38 = vadd.f32 %v7465_v8, %v7433_v30  ;;  %v7403_v37 = vadd.f32 %v13187_v22, %v7213_v10 }
 0x5ee   : > { %7530 = vst.msk [vmem:[%s13198_s23 + $0x8] sm:$0xff] %vm223_vm0, %v7498_v58  ;;  %v7436_v35 = vmul.f32 0.5, %v7404_v7  ;;  %v7480_v7 = vld [vmem:[%s11172_s9 + $0x78] sm:$0xff] }
 0x5ef   : > { %7529 = vst.msk [vmem:[%s13198_s23] sm:$0xff] %vm223_vm0, %v7497_v38  ;;  %v7435_v53 = vmul.f32 0.5, %v7403_v37  ;;  %v10061_v23 = vpop.f32.mrb[4].mxu1 }
 0x5f0   : > { %v7500_v11 = vadd.f32 %v7468_v42, %v7436_v35  ;;  %v7406_v13 = vadd.f32 %v10061_v23, %v13187_v22  ;;  %v7223_v61 = vpop.f32.mrb[5].mxu1  ;;  %v7479_v42 = vld [vmem:[%s11172_s9 + $0x70] sm:$0xff] }
 0x5f1   : > { %v7499_v26 = vadd.f32 %v7467_v51, %v7435_v53  ;;  %v7405_v29 = vadd.f32 %v13187_v22, %v7223_v61 }
 0x5f2   : > { %7532 = vst.msk [vmem:[%s13198_s23 + $0x18] sm:$0xff] %vm223_vm0, %v7500_v11  ;;  %v7438_v31 = vmul.f32 0.5, %v7406_v13  ;;  %v7482_v13 = vld [vmem:[%s11172_s9 + $0x88] sm:$0xff] }
 0x5f3   : > { %7531 = vst.msk [vmem:[%s13198_s23 + $0x10] sm:$0xff] %vm223_vm0, %v7499_v26  ;;  %v7437_v24 = vmul.f32 0.5, %v7405_v29  ;;  %v10064_v21 = vpop.f32.mrb[6].mxu1 }
 0x5f4   : > { %v7502_v43 = vadd.f32 %v7470_v28, %v7438_v31  ;;  %v7408_v16 = vadd.f32 %v10064_v21, %v13187_v22  ;;  %v7233_v39 = vpop.f32.mrb[7].mxu1  ;;  %v7481_v28 = vld [vmem:[%s11172_s9 + $0x80] sm:$0xff] }
 0x5f5   : > { %v7501_v40 = vadd.f32 %v7469_v33, %v7437_v24  ;;  %v7407_v50 = vadd.f32 %v13187_v22, %v7233_v39 }
 0x5f6   : > { %7534 = vst.msk [vmem:[%s13198_s23 + $0x28] sm:$0xff] %vm223_vm0, %v7502_v43  ;;  %v7440_v52 = vmul.f32 0.5, %v7408_v16  ;;  %v7484_v16 = vld [vmem:[%s11172_s9 + $0x98] sm:$0xff] }
 0x5f7   : > { %7533 = vst.msk [vmem:[%s13198_s23 + $0x20] sm:$0xff] %vm223_vm0, %v7501_v40  ;;  %v7439_v20 = vmul.f32 0.5, %v7407_v50  ;;  %v10067_v63 = vpop.f32.mrb[8].mxu1 }
 0x5f8   : > { %v7504_v2 = vadd.f32 %v7472_v45, %v7440_v52  ;;  %v7410_v41 = vadd.f32 %v10067_v63, %v13187_v22  ;;  %v7243_v56 = vpop.f32.mrb[9].mxu1  ;;  %v7483_v45 = vld [vmem:[%s11172_s9 + $0x90] sm:$0xff] }
 0x5f9   : > { %v7503_v1 = vadd.f32 %v7471_v57, %v7439_v20  ;;  %v7409_v54 = vadd.f32 %v13187_v22, %v7243_v56 }
 0x5fa   : > { %7536 = vst.msk [vmem:[%s13198_s23 + $0x38] sm:$0xff] %vm223_vm0, %v7504_v2  ;;  %v7442_v49 = vmul.f32 0.5, %v7410_v41  ;;  %v7486_v41 = vld [vmem:[%s11172_s9 + $0xa8] sm:$0xff] }
 0x5fb   : > { %7535 = vst.msk [vmem:[%s13198_s23 + $0x30] sm:$0xff] %vm223_vm0, %v7503_v1  ;;  %v7441_v15 = vmul.f32 0.5, %v7409_v54  ;;  %v10070_v19 = vpop.f32.mrb[10].mxu1 }
 0x5fc   : > { %v7506_v48 = vadd.f32 %v7474_v14, %v7442_v49  ;;  %v7412_v32 = vadd.f32 %v10070_v19, %v13187_v22  ;;  %v7253_v0 = vpop.f32.mrb[11].mxu1  ;;  %v7485_v14 = vld [vmem:[%s11172_s9 + $0xa0] sm:$0xff] }
 0x5fd   : > { %v7505_v3 = vadd.f32 %v7473_v6, %v7441_v15  ;;  %v7411_v5 = vadd.f32 %v13187_v22, %v7253_v0 }
 0x5fe   : > { %7538 = vst.msk [vmem:[%s13198_s23 + $0x48] sm:$0xff] %vm223_vm0, %v7506_v48  ;;  %v7444_v9 = vmul.f32 0.5, %v7412_v32  ;;  %v7488_v32 = vld [vmem:[%s11172_s9 + $0xb8] sm:$0xff] }
 0x5ff   : > { %7537 = vst.msk [vmem:[%s13198_s23 + $0x40] sm:$0xff] %vm223_vm0, %v7505_v3  ;;  %v7443_v34 = vmul.f32 0.5, %v7411_v5  ;;  %v10073_v18 = vpop.f32.mrb[12].mxu1 }
 0x600   : > { %v7508_v62 = vadd.f32 %v7476_v4, %v7444_v9  ;;  %v7414_v27 = vadd.f32 %v10073_v18, %v13187_v22  ;;  %v7263_v12 = vpop.f32.mrb[13].mxu1  ;;  %v7487_v4 = vld [vmem:[%s11172_s9 + $0xb0] sm:$0xff] }
 0x601   : > { %v7507_v60 = vadd.f32 %v7475_v44, %v7443_v34  ;;  %v7413_v17 = vadd.f32 %v13187_v22, %v7263_v12 }
 0x602   : > { %7540 = vst.msk [vmem:[%s13198_s23 + $0x58] sm:$0xff] %vm223_vm0, %v7508_v62  ;;  %v7446_v46 = vmul.f32 0.5, %v7414_v27  ;;  %v7490_v27 = vld [vmem:[%s11172_s9 + $0xc8] sm:$0xff] }
 0x603   : > { %7539 = vst.msk [vmem:[%s13198_s23 + $0x50] sm:$0xff] %vm223_vm0, %v7507_v60  ;;  %v7445_v47 = vmul.f32 0.5, %v7413_v17  ;;  %v10076_v59 = vpop.f32.mrb[14].mxu1 }
 0x604   : > { %v7510_v8 = vadd.f32 %v7478_v25, %v7446_v46  ;;  %v7416_v30 = vadd.f32 %v10076_v59, %v13187_v22  ;;  %v7273_v36 = vpop.f32.mrb[15].mxu1  ;;  %v7489_v25 = vld [vmem:[%s11172_s9 + $0xc0] sm:$0xff] }
 0x605   : > { %v7509_v58 = vadd.f32 %v7477_v55, %v7445_v47  ;;  %v7415_v10 = vadd.f32 %v13187_v22, %v7273_v36 }
 0x606   : > { %7542 = vst.msk [vmem:[%s13198_s23 + $0x68] sm:$0xff] %vm223_vm0, %v7510_v8  ;;  %v7448_v38 = vmul.f32 0.5, %v7416_v30  ;;  %v7492_v30 = vld [vmem:[%s11172_s9 + $0xd8] sm:$0xff] }
 0x607   : > { %7541 = vst.msk [vmem:[%s13198_s23 + $0x60] sm:$0xff] %vm223_vm0, %v7509_v58  ;;  %v7447_v37 = vmul.f32 0.5, %v7415_v10  ;;  %v10079_v35 = vpop.f32.mrb[16].mxu1 }
 0x608   : > { %v7512_v51 = vadd.f32 %v7480_v7, %v7448_v38  ;;  %v7418_v53 = vadd.f32 %v10079_v35, %v13187_v22  ;;  %v7283_v23 = vpop.f32.mrb[17].mxu1  ;;  %v7491_v7 = vld [vmem:[%s11172_s9 + $0xd0] sm:$0xff] }
 0x609   : > { %v7511_v11 = vadd.f32 %v7479_v42, %v7447_v37  ;;  %v7417_v61 = vadd.f32 %v13187_v22, %v7283_v23 }
 0x60a   : > { %7544 = vst.msk [vmem:[%s13198_s23 + $0x78] sm:$0xff] %vm223_vm0, %v7512_v51  ;;  %v7450_v26 = vmul.f32 0.5, %v7418_v53  ;;  %v7494_v53 = vld [vmem:[%s11172_s9 + $0xe8] sm:$0xff] }
 0x60b   : > { %7543 = vst.msk [vmem:[%s13198_s23 + $0x70] sm:$0xff] %vm223_vm0, %v7511_v11  ;;  %v7449_v29 = vmul.f32 0.5, %v7417_v61  ;;  %v10082_v31 = vpop.f32.mrb[18].mxu1 }
 0x60c   : > { %v7514_v33 = vadd.f32 %v7482_v13, %v7450_v26  ;;  %v7420_v24 = vadd.f32 %v10082_v31, %v13187_v22  ;;  %v7293_v21 = vpop.f32.mrb[19].mxu1  ;;  %v7493_v13 = vld [vmem:[%s11172_s9 + $0xe0] sm:$0xff] }
 0x60d   : > { %v7513_v43 = vadd.f32 %v7481_v28, %v7449_v29  ;;  %v7419_v39 = vadd.f32 %v13187_v22, %v7293_v21 }
 0x60e   : > { %7546 = vst.msk [vmem:[%s13198_s23 + $0x88] sm:$0xff] %vm223_vm0, %v7514_v33  ;;  %v7452_v40 = vmul.f32 0.5, %v7420_v24  ;;  %v7496_v24 = vld [vmem:[%s11172_s9 + $0xf8] sm:$0xff] }
 0x60f   : > { %7545 = vst.msk [vmem:[%s13198_s23 + $0x80] sm:$0xff] %vm223_vm0, %v7513_v43  ;;  %v7451_v50 = vmul.f32 0.5, %v7419_v39  ;;  %v10085_v52 = vpop.f32.mrb[20].mxu1 }
 0x610   : > { %v7516_v57 = vadd.f32 %v7484_v16, %v7452_v40  ;;  %v7422_v20 = vadd.f32 %v10085_v52, %v13187_v22  ;;  %v7303_v63 = vpop.f32.mrb[21].mxu1  ;;  %v7495_v16 = vld [vmem:[%s11172_s9 + $0xf0] sm:$0xff]  ;;  %s10943_s9 = scalar_lea.vmem %s13324_s26, 4096 }
 0x611   : > { %v7515_v2 = vadd.f32 %v7483_v45, %v7451_v50  ;;  %v7421_v56 = vadd.f32 %v13187_v22, %v7303_v63  ;;  %p10944_p11 = scmp.ne.s32.totalorder %s13324_s26, %s10943_s9  ;;  %p10951_p1 = scmp.lt.s32.totalorder %s10949_s11, %s10943_s9 }
 0x612   : > { %7548 = vst.msk [vmem:[%s13198_s23 + $0x98] sm:$0xff] %vm223_vm0, %v7516_v57  ;;  %v7454_v1 = vmul.f32 0.5, %v7422_v20 }
 0x613   : > { %7547 = vst.msk [vmem:[%s13198_s23 + $0x90] sm:$0xff] %vm223_vm0, %v7515_v2  ;;  %v7453_v54 = vmul.f32 0.5, %v7421_v56  ;;  %v10088_v49 = vpop.f32.mrb[22].mxu1  ;;  %p10945_p12 = pnand %p10944_p11, %p11079_p5  ;;  %p10952_p2 = por %p10951_p1, %p10950_p0 }
 0x614   : > { %v7518_v6 = vadd.f32 %v7486_v41, %v7454_v1  ;;  %v7424_v15 = vadd.f32 %v10088_v49, %v13187_v22  ;;  %v7313_v19 = vpop.f32.mrb[23].mxu1 }
 0x615   : > { %v7517_v48 = vadd.f32 %v7485_v14, %v7453_v54  ;;  %v7423_v0 = vadd.f32 %v13187_v22, %v7313_v19  ;;  %p10946_p13 = pneg %p10945_p12 }
 0x616   : > { %7550 = vst.msk [vmem:[%s13198_s23 + $0xa8] sm:$0xff] %vm223_vm0, %v7518_v6  ;;  %v7456_v3 = vmul.f32 0.5, %v7424_v15 }
 0x617   : > { %7549 = vst.msk [vmem:[%s13198_s23 + $0xa0] sm:$0xff] %vm223_vm0, %v7517_v48  ;;  %v7455_v5 = vmul.f32 0.5, %v7423_v0  ;;  %v10091_v9 = vpop.f32.mrb[24].mxu1  ;;  %p10953_p3 = pnand %p10952_p2, %p10946_p13 }
 0x618   : > { %v7520_v44 = vadd.f32 %v7488_v32, %v7456_v3  ;;  %v7426_v34 = vadd.f32 %v10091_v9, %v13187_v22  ;;  %v7323_v18 = vpop.f32.mrb[25].mxu1 }
 0x619   : > { %v7519_v62 = vadd.f32 %v7487_v4, %v7455_v5  ;;  %v7425_v12 = vadd.f32 %v13187_v22, %v7323_v18 }
 0x61a   : > { %7552 = vst.msk [vmem:[%s13198_s23 + $0xb8] sm:$0xff] %vm223_vm0, %v7520_v44  ;;  %v7458_v60 = vmul.f32 0.5, %v7426_v34 }
 0x61b   : > { %7551 = vst.msk [vmem:[%s13198_s23 + $0xb0] sm:$0xff] %vm223_vm0, %v7519_v62  ;;  %v7457_v17 = vmul.f32 0.5, %v7425_v12  ;;  %v10094_v46 = vpop.f32.mrb[26].mxu1 }
 0x61c   : > { %v7522_v55 = vadd.f32 %v7490_v27, %v7458_v60  ;;  %v7428_v47 = vadd.f32 %v10094_v46, %v13187_v22  ;;  %v7333_v59 = vpop.f32.mrb[27].mxu1 }
 0x61d   : > { %v7521_v8 = vadd.f32 %v7489_v25, %v7457_v17  ;;  %v7427_v36 = vadd.f32 %v13187_v22, %v7333_v59 }
 0x61e   : > { %7554 = vst.msk [vmem:[%s13198_s23 + $0xc8] sm:$0xff] %vm223_vm0, %v7522_v55  ;;  %v7460_v58 = vmul.f32 0.5, %v7428_v47 }
 0x61f   : > { %7553 = vst.msk [vmem:[%s13198_s23 + $0xc0] sm:$0xff] %vm223_vm0, %v7521_v8  ;;  %v7459_v10 = vmul.f32 0.5, %v7427_v36  ;;  %v10097_v38 = vpop.f32.mrb[28].mxu1 }
 0x620   : > { %v7524_v42 = vadd.f32 %v7492_v30, %v7460_v58  ;;  %v7430_v37 = vadd.f32 %v10097_v38, %v13187_v22  ;;  %v7343_v35 = vpop.f32.mrb[29].mxu1 }
 0x621   : > { %v7523_v51 = vadd.f32 %v7491_v7, %v7459_v10  ;;  %v7429_v23 = vadd.f32 %v13187_v22, %v7343_v35 }
 0x622   : > { %7556 = vst.msk [vmem:[%s13198_s23 + $0xd8] sm:$0xff] %vm223_vm0, %v7524_v42  ;;  %v7462_v11 = vmul.f32 0.5, %v7430_v37 }
 0x623   : > { %7555 = vst.msk [vmem:[%s13198_s23 + $0xd0] sm:$0xff] %vm223_vm0, %v7523_v51  ;;  %v7461_v61 = vmul.f32 0.5, %v7429_v23  ;;  %v10100_v26 = vpop.f32.mrb[30].mxu1 }
 0x624   : > { %v7526_v28 = vadd.f32 %v7494_v53, %v7462_v11  ;;  %v7432_v29 = vadd.f32 %v10100_v26, %v13187_v22  ;;  %v7353_v31 = vpop.f32.mrb[31].mxu1 }
 0x625   : > { %v7525_v33 = vadd.f32 %v7493_v13, %v7461_v61  ;;  %v7431_v21 = vadd.f32 %v13187_v22, %v7353_v31 }
 0x626   : > { %7558 = vst.msk [vmem:[%s13198_s23 + $0xe8] sm:$0xff] %vm223_vm0, %v7526_v28  ;;  %v7464_v43 = vmul.f32 0.5, %v7432_v29 }
 0x627   : > { %7557 = vst.msk [vmem:[%s13198_s23 + $0xe0] sm:$0xff] %vm223_vm0, %v7525_v33  ;;  %v7463_v39 = vmul.f32 0.5, %v7431_v21 }
 0x628   : > { %v7528_v40 = vadd.f32 %v7496_v24, %v7464_v43 }
 0x629   : > { %v7527_v22 = vadd.f32 %v7495_v16, %v7463_v39 }
 0x62a   : > { %7560 = vst.msk [vmem:[%s13198_s23 + $0xf8] sm:$0xff] %vm223_vm0, %v7528_v40 }
 0x62b   : > { %7559 = vst.msk [vmem:[%s13198_s23 + $0xf0] sm:$0xff] %vm223_vm0, %v7527_v22 }
 0x62c   : > { %10956 = shalt.err (!%p10953_p3)
}
 0x62d   : > { %s10957_s12 = scalar_lea.hbm %s13322_s7, 4096  ;;  %s10961_s15 = scalar_lea.hbm %s13378_s5, 8192 }
 0x62e   : > { %p10958_p4 = scmp.ne.s32.totalorder %s13322_s7, %s10957_s12  ;;  %p10962_p9 = scmp.lt.u32.totalorder %s13322_s7, %s13378_s5 }
 0x62f   : > { %p10963_p10 = scmp.lt.u32.totalorder %s10961_s15, %s10957_s12  ;;  %p10965_p12 = scmp.lt.u32.totalorder %s10957_s12, %s13322_s7 }
 0x630   : > { %p10959_p7 = pnand %p10958_p4, %p11079_p5 }
 0x631   : > { %p10964_p11 = por %p10963_p10, %p10962_p9 }
 0x632   : > { %p10960_p8 = pneg %p10959_p7 }
 0x633   : > { %p10966_p13 = por %p10965_p12, %p10964_p11 }
 0x635   : > { %p10967_p0 = pnand %p10966_p13, %p10960_p8 }
 0x637   : > { %10970 = shalt.err (!%p10967_p0)
}
 0x638   : > { %s11009_s23 = smov 128   ;;  %s11010_s25 = smov 8  }
 0x639   : > { %10901 = dma.vmem_to_hbm [thread:$0]  (%p11079_p5), %s13324_s26, 4096, %s13322_s7, %s13332_s22, %s11009_s23, %s11009_s23, %s11010_s25  }
 0x63a PF: > { %p10907_p1 = scmp.ge.s32.totalorder %s11005_s21, 2  ;;  %s7590_s30 = sand.u32 1, %s10993_s18  }
 0x63b   : > { %s7591_s6 = scalar_lea.sflag [#allocation4], %s7590_s30 }
 0x63c   : > { %p10904_p2 = pnand %p10907_p1, %p11083_p6 }
 0x63e   : > { %10988 = dma.done.wait (!%p10904_p2), %s7591_s6, 4096  }
 0x63f   : > { %10990 = vsyncadd (!%p10904_p2), %s7591_s6, 4294963200  ;;  %p15_p3 = scmp.ge.s32.totalorder %s11066_s24, 4   ;;  %s13647_s18 = smov %s10997_s19 }
 0x640   : > { %s13648_s19 = smov %s11001_s20  ;;  %s13649_s20 = smov %s11077_s27 }
 0x641   : > { %s13650_s21 = smov %s11066_s24  ;;  %17 = sbr.rel (!%p15_p3) target bundleno = 3 (0x3), region = 77 }
 0x648   :  { %7596 = vsyncpa [#allocation4], 1 }
 0x649   :  { %7598 = vsyncpa [#allocation4 + $0x1], 1 }

</bundles_post_ra>
